<compile_context>
chip_gen: v5e
topology: v5e:2x2
jax: 0.10.0
libtpu: 0.0.40
codegen_flags: <defaults>
</compile_context>

<pallas_src>
import math
from functools import partial

import jax
import jax.numpy as jnp
from jax.experimental import pallas as pl
from jax.experimental.pallas import tpu as pltpu


# ----------------------------------------------------------------------------
# Pallas kernel 1: fused matmul + bias (conv-as-matmul workhorse)
# ----------------------------------------------------------------------------
def _mm_bias_kernel(a_ref, w_ref, b_ref, o_ref):
    # a_ref: (tm, K) activation tile, w_ref: (K, N) resident weight,
    # b_ref: (1, N) bias row, o_ref: (tm, N) output tile.
    acc = jnp.dot(a_ref[...], w_ref[...], preferred_element_type=jnp.float32)
    o_ref[...] = (acc + b_ref[...].astype(jnp.float32)).astype(o_ref.dtype)


def matmul_bias(a, w, b, *, tm=256, out_dtype=None):
    """a @ w + b, tiled over M with large MXU-friendly tiles (no padding copies)."""
    M, K = a.shape
    Kw, N = w.shape
    assert K == Kw and b.shape == (N,)
    out_dtype = out_dtype or a.dtype

    tm = min(tm, M)
    if tm != M and tm % 8 != 0:       # block 2nd-minor dim must be 8-aligned or full
        tm = M
    grid = (pl.cdiv(M, tm),)

    itemsize = jnp.dtype(a.dtype).itemsize
    cost = pl.CostEstimate(
        flops=2 * M * K * N,
        transcendentals=0,
        bytes_accessed=(M * K + K * N + N + M * N) * itemsize,
    )
    return pl.pallas_call(
        _mm_bias_kernel,
        out_shape=jax.ShapeDtypeStruct((M, N), out_dtype),
        grid_spec=pltpu.PrefetchScalarGridSpec(
            num_scalar_prefetch=0,
            grid=grid,
            in_specs=[
                pl.BlockSpec((tm, K), lambda i: (i, 0)),
                # constant index_map -> weight / bias stay resident in VMEM
                pl.BlockSpec((K, N), lambda i: (0, 0)),
                pl.BlockSpec((1, N), lambda i: (0, 0)),
            ],
            out_specs=pl.BlockSpec((tm, N), lambda i: (i, 0)),
        ),
        compiler_params=pltpu.CompilerParams(dimension_semantics=("parallel",)),
        cost_estimate=cost,
    )(a, w, b.reshape(1, N))


# ----------------------------------------------------------------------------
# Pallas kernel 2: fused "simplified attention"  softmax(q k^T / sqrt(C)) @ v
# ----------------------------------------------------------------------------
def _attn_kernel(q_ref, k_ref, v_ref, o_ref, *, scale):
    # channels-last layout: q (1, tq, Cq), k/v (1, HW, Cq), o (1, tq, Cq)
    q = q_ref[0]
    k = k_ref[0]
    v = v_ref[0]
    # scores[i, j] = sum_c q[i, c] * k[j, c]  (== q^T k of the NCHW formulation)
    s = jax.lax.dot_general(
        q, k, (((1,), (1,)), ((), ())),
        preferred_element_type=jnp.float32) * scale              # (tq, HW)
    m = jnp.max(s, axis=-1, keepdims=True)
    p = jnp.exp(s - m)
    attn = p / jnp.sum(p, axis=-1, keepdims=True)
    # out[i, c] = sum_j attn[i, j] * v[j, c]  (== (v attn^T)^T of the NCHW form)
    o = jnp.dot(attn, v.astype(jnp.float32), preferred_element_type=jnp.float32)
    o_ref[0] = o.astype(o_ref.dtype)


def channel_attention(q, k, v, *, scale, tq=256):
    """q, k, v: (B, HW, Cq) channels-last. Returns (B, HW, Cq)."""
    B, HW, Cq = q.shape
    tq = min(tq, HW)
    if tq != HW and tq % 8 != 0:
        tq = HW
    grid = (B, pl.cdiv(HW, tq))
    itemsize = jnp.dtype(q.dtype).itemsize
    cost = pl.CostEstimate(
        flops=4 * B * HW * HW * Cq,
        transcendentals=B * HW * HW,
        bytes_accessed=4 * B * HW * Cq * itemsize,
    )
    # TODO(synk): for HW >> 1k the (tq, HW) score tile should switch to an
    # online-softmax (flash) loop over kv tiles; at these sizes it fits VMEM.
    return pl.pallas_call(
        partial(_attn_kernel, scale=scale),
        out_shape=jax.ShapeDtypeStruct((B, HW, Cq), q.dtype),
        grid_spec=pltpu.PrefetchScalarGridSpec(
            num_scalar_prefetch=0,
            grid=grid,
            in_specs=[
                pl.BlockSpec((1, tq, Cq), lambda b, i: (b, i, 0)),
                pl.BlockSpec((1, HW, Cq), lambda b, i: (b, 0, 0)),
                pl.BlockSpec((1, HW, Cq), lambda b, i: (b, 0, 0)),
            ],
            out_specs=pl.BlockSpec((1, tq, Cq), lambda b, i: (b, i, 0)),
        ),
        compiler_params=pltpu.CompilerParams(
            dimension_semantics=("parallel", "parallel")),
        cost_estimate=cost,
    )(q, k, v)


# ----------------------------------------------------------------------------
# Patch extraction / deformable sampling helpers (plain JAX)
# ----------------------------------------------------------------------------
def _im2col_3x3(x):
    """x: (B, Cin, H, W), stride 1, pad 1 -> (B*H*W, 9*Cin), feature order (k, cin)."""
    B, Cin, H, W = x.shape
    xp = jnp.pad(x, ((0, 0), (0, 0), (1, 1), (1, 1)))
    taps = [xp[:, :, i:i + H, j:j + W] for i in range(3) for j in range(3)]
    p = jnp.stack(taps, axis=0)                  # (9, B, Cin, H, W)
    p = jnp.transpose(p, (1, 3, 4, 0, 2))        # (B, H, W, 9, Cin)
    return p.reshape(B * H * W, 9 * Cin)


def _w3x3_to_mat(w):
    """(Cout, Cin, 3, 3) torch-style conv weight -> (9*Cin, Cout), (k, cin) order."""
    cout, cin = w.shape[0], w.shape[1]
    return jnp.transpose(w, (2, 3, 1, 0)).reshape(9 * cin, cout)


# TODO(synk): the bilinear offset sampling is a data-dependent gather with no
# clean BlockSpec expression; it runs in plain JAX, while the 9-tap weighted
# aggregation (the actual conv arithmetic) runs in the Pallas matmul kernel.
def _deform_sample(x, off):
    """Bilinear-sample the 3x3 deformable taps (zero outside the image).

    x:   (B, Cin, H, W)
    off: (B, H, W, 9, 2) with last dim (dy, dx) per kernel tap (torchvision order)
    returns (B*H*W, 9*Cin) in (k, cin) feature order.
    """
    B, Cin, H, W = x.shape
    ks = jnp.arange(9)
    kh = (ks // 3).astype(x.dtype)
    kw = (ks % 3).astype(x.dtype)
    hh = jnp.arange(H, dtype=x.dtype)
    ww = jnp.arange(W, dtype=x.dtype)
    # sample positions for stride=1, pad=1, dilation=1
    py = hh[:, None, None] + kh[None, None, :] - 1.0 + off[..., 0]   # (B, H, W, 9)
    px = ww[None, :, None] + kw[None, None, :] - 1.0 + off[..., 1]
    y0 = jnp.floor(py)
    x0 = jnp.floor(px)
    xf = x.reshape(B, Cin, H * W)

    def corner(yc, xc):
        wgt = (1.0 - jnp.abs(py - yc)) * (1.0 - jnp.abs(px - xc))
        valid = (yc >= 0) & (yc <= H - 1) & (xc >= 0) & (xc <= W - 1)
        wgt = jnp.where(valid, wgt, 0.0)
        yi = jnp.clip(yc, 0, H - 1).astype(jnp.int32)
        xi = jnp.clip(xc, 0, W - 1).astype(jnp.int32)
        flat = (yi * W + xi).reshape(B, 1, H * W * 9)
        flat = jnp.broadcast_to(flat, (B, Cin, H * W * 9))
        g = jnp.take_along_axis(xf, flat, axis=2).reshape(B, Cin, H, W, 9)
        return g * wgt[:, None]

    s = (corner(y0, x0) + corner(y0, x0 + 1.0)
         + corner(y0 + 1.0, x0) + corner(y0 + 1.0, x0 + 1.0))     # (B, Cin, H, W, 9)
    s = jnp.transpose(s, (0, 2, 3, 4, 1))                          # (B, H, W, 9, Cin)
    return s.reshape(B * H * W, 9 * Cin)


# ----------------------------------------------------------------------------
# GLFAM forward (Pallas path)
# ----------------------------------------------------------------------------
@partial(jax.jit, static_argnames=("heads",))
def glfam_forward(x, params, *, heads=4):
    B, C, H, W = x.shape
    c2, c4 = C // 2, C // 4
    M = B * H * W
    x1 = x[:, :c2]
    x2 = x[:, c2:]

    # ---- branch 1: deformable conv 3x3 + GELU --------------------------------
    off_flat = matmul_bias(_im2col_3x3(x1), _w3x3_to_mat(params["w_off"]),
                           params["b_off"])                        # (M, 18)
    off = off_flat.reshape(B, H, W, 9, 2)                          # (dy, dx) per tap
    samp = _deform_sample(x1, off)                                 # (M, 9*c2)
    x1_out = matmul_bias(samp, _w3x3_to_mat(params["w_def"]),
                         params["b_def"])                          # (M, c2)
    # TODO(synk): exact-erf GELU kept outside the kernel (erf lowering support
    # in Mosaic is version-dependent); it is a cheap elementwise XLA fusion.
    x1_out = jax.nn.gelu(x1_out, approximate=False)                # torch nn.GELU (erf)

    # ---- branch 2: 1x1 conv + GELU + simplified attention --------------------
    x2_cl = jnp.transpose(x2, (0, 2, 3, 1)).reshape(M, c2)         # channels-last
    w_qkvl = params["w_qkvl"].reshape(heads * c4, c2).T            # (c2, heads*c4)
    x2f = matmul_bias(x2_cl, w_qkvl, params["b_qkvl"])             # (M, heads*c4)
    x2f = jax.nn.gelu(x2f, approximate=False)
    x2f = x2f.reshape(B, H * W, heads, c4)

    q = jnp.mean(x2f[:, :, :heads - 3, :], axis=2)                 # (B, HW, c4)
    k = x2f[:, :, heads - 3, :]
    v = x2f[:, :, heads - 2, :]
    z1 = x2f[:, :, heads - 1, :]

    out2 = channel_attention(q, k, v, scale=1.0 / math.sqrt(C))    # (B, HW, c4)

    # ---- concat (channels-last) and a single transpose back to NCHW ----------
    y = jnp.concatenate([x1_out.reshape(B, H * W, c2), z1, out2], axis=-1)
    y = jnp.transpose(y.reshape(B, H, W, C), (0, 3, 1, 2))
    return y


class GLFAM:
    """JAX/Pallas port of the PyTorch GLFAM module (forward only)."""

    def __init__(self, dim, heads=4, key=jax.random.PRNGKey(0)):
        assert dim % 4 == 0 and heads >= 4
        self.dim, self.heads = dim, heads
        c2, c4 = dim // 2, dim // 4
        ks = jax.random.split(key, 6)
        nrm = lambda k, shp, s: s * jax.random.normal(k, shp, jnp.float32)
        self.params = {
            # offset_conv: Conv2d(c2 -> 2*3*3, k=3, p=1); small init keeps the
            # learned offsets in a realistic sub-pixel range.
            "w_off": nrm(ks[0], (18, c2, 3, 3), 0.1 / math.sqrt(9 * c2)),
            "b_off": nrm(ks[1], (18,), 0.1),
            # deform_conv: DeformConv2d(c2 -> c2, k=3, p=1)
            "w_def": nrm(ks[2], (c2, c2, 3, 3), 1.0 / math.sqrt(9 * c2)),
            "b_def": nrm(ks[3], (c2,), 0.02),
            # qkvl: Conv2d(c2 -> heads*c4, k=1)
            "w_qkvl": nrm(ks[4], (heads * c4, c2, 1, 1), 1.0 / math.sqrt(c2)),
            "b_qkvl": nrm(ks[5], (heads * c4,), 0.02),
        }

    def __call__(self, x):
        return glfam_forward(x, self.params, heads=self.heads)


# ----------------------------------------------------------------------------
# Pure JAX/XLA reference (no Pallas) for correctness checking
# ----------------------------------------------------------------------------
def glfam_reference(x, params, heads=4):
    B, C, H, W = x.shape
    c2, c4 = C // 2, C // 4
    hi = jax.lax.Precision.HIGHEST
    x1, x2 = x[:, :c2], x[:, c2:]

    off = jax.lax.conv_general_dilated(
        x1, params["w_off"], (1, 1), ((1, 1), (1, 1)),
        dimension_numbers=("NCHW", "OIHW", "NCHW"), precision=hi)
    off = off + params["b_off"][None, :, None, None]
    off = jnp.transpose(off, (0, 2, 3, 1)).reshape(B, H, W, 9, 2)
    samp = _deform_sample(x1, off)
    x1o = jnp.dot(samp, _w3x3_to_mat(params["w_def"]), precision=hi) + params["b_def"]
    x1o = jax.nn.gelu(x1o, approximate=False).reshape(B, H, W, c2)
    x1o = jnp.transpose(x1o, (0, 3, 1, 2))                        # (B, c2, H, W)

    x2o = jax.lax.conv_general_dilated(
        x2, params["w_qkvl"], (1, 1), ((0, 0), (0, 0)),
        dimension_numbers=("NCHW", "OIHW", "NCHW"), precision=hi)
    x2o = jax.nn.gelu(x2o + params["b_qkvl"][None, :, None, None], approximate=False)
    x2o = x2o.reshape(B, heads, c4, H, W)
    q = jnp.mean(x2o[:, :heads - 3], axis=1).reshape(B, c4, H * W)
    k = x2o[:, heads - 3].reshape(B, c4, H * W)
    v = x2o[:, heads - 2].reshape(B, c4, H * W)
    z1 = x2o[:, heads - 1]
    attn = jnp.einsum("bci,bcj->bij", q, k, precision=hi) / (C ** 0.5)
    attn = jax.nn.softmax(attn, axis=-1)
    out2 = jnp.einsum("bcj,bij->bci", v, attn, precision=hi).reshape(B, c4, H, W)
    return jnp.concatenate([x1o, z1, out2], axis=1)


# ----------------------------------------------------------------------------
if __name__ == "__main__":
    key = jax.random.PRNGKey(0)
    kx, kp = jax.random.split(key)

    B, C, H, W = 2, 16, 16, 16     # C must be divisible by 4 (module splits C/2, C/4)
    heads = 4
    x = jax.random.normal(kx, (B, C, H, W), dtype=jnp.float32)

    mod = GLFAM(C, heads=heads, key=kp)
    y = jax.block_until_ready(mod(x))
    assert y.shape == (B, C, H, W)

    ref = jax.block_until_ready(glfam_reference(x, mod.params, heads=heads))
    err = float(jnp.max(jnp.abs(y - ref)))
    assert err < 5e-3, f"mismatch vs reference, max abs err = {err}"

    print("KERNEL_OK")
</pallas_src>

<mosaic_0001>
module attributes {stable_mosaic.version = 11 : i64} {
  func.func @_mm_bias_kernel(%arg0: i32, %arg1: memref<256x8xf32, #tpu.memory_space<vmem>>, %arg2: memref<8x16xf32, #tpu.memory_space<vmem>>, %arg3: memref<1x16xf32, #tpu.memory_space<vmem>>, %arg4: memref<256x16xf32, #tpu.memory_space<vmem>>) attributes {dimension_semantics = [#tpu.dimension_semantics<parallel>], iteration_bounds = array<i64: 2>, scalar_prefetch = 0 : i64, scratch_operands = 0 : i64, tpu.core_type = #tpu.core_type<tc>, window_params = [{transform_indices = @transform_0, window_bounds = array<i64: 256, 8>}, {pipeline_mode = #tpu.pipeline_mode<synchronous>, transform_indices = @transform_1, window_bounds = array<i64: 8, 16>}, {pipeline_mode = #tpu.pipeline_mode<synchronous>, transform_indices = @transform_2, window_bounds = array<i64: 1, 16>}, {transform_indices = @transform_3, window_bounds = array<i64: 256, 16>}]} {
    %c0 = arith.constant 0 : index
    %c0_0 = arith.constant 0 : index
    %0 = vector.load %arg1[%c0, %c0_0] : memref<256x8xf32, #tpu.memory_space<vmem>>, vector<256x8xf32>
    %c0_1 = arith.constant 0 : index
    %c0_2 = arith.constant 0 : index
    %1 = vector.load %arg2[%c0_1, %c0_2] : memref<8x16xf32, #tpu.memory_space<vmem>>, vector<8x16xf32>
    %cst = arith.constant dense<0.000000e+00> : vector<256x16xf32>
    %2 = tpu.matmul %0, %1, %cst {dimension_numbers = #tpu.dot_dimension_numbers<[1], [0], [0], [1], [0, 0, 1, 1], [], []>} : vector<256x8xf32>, vector<8x16xf32>, vector<256x16xf32> -> vector<256x16xf32>
    %c0_3 = arith.constant 0 : index
    %c0_4 = arith.constant 0 : index
    %3 = vector.load %arg3[%c0_3, %c0_4] : memref<1x16xf32, #tpu.memory_space<vmem>>, vector<1x16xf32>
    %4 = vector.broadcast %3 : vector<1x16xf32> to vector<256x16xf32>
    %5 = arith.addf %2, %4 : vector<256x16xf32>
    %c0_5 = arith.constant 0 : index
    %c0_6 = arith.constant 0 : index
    %6 = vector.load %arg4[%c0_5, %c0_6] : memref<256x16xf32, #tpu.memory_space<vmem>>, vector<256x16xf32>
    tpu.vector_store %arg4[%c0_5, %c0_6], %5 {strides = array<i32>} : memref<256x16xf32, #tpu.memory_space<vmem>>, vector<256x16xf32>,
    return
  }
  func.func @transform_0(%arg0: i32) -> (i32, i32) {
    %c0_i32 = arith.constant 0 : i32
    %c0_i32_0 = arith.constant 0 : i32
    return %arg0, %c0_i32 : i32, i32
  }
  func.func @transform_1(%arg0: i32) -> (i32, i32) {
    %c0_i32 = arith.constant 0 : i32
    %c0_i32_0 = arith.constant 0 : i32
    %c0_i32_1 = arith.constant 0 : i32
    return %c0_i32, %c0_i32_0 : i32, i32
  }
  func.func @transform_2(%arg0: i32) -> (i32, i32) {
    %c0_i32 = arith.constant 0 : i32
    %c0_i32_0 = arith.constant 0 : i32
    %c0_i32_1 = arith.constant 0 : i32
    return %c0_i32, %c0_i32_0 : i32, i32
  }
  func.func @transform_3(%arg0: i32) -> (i32, i32) {
    %c0_i32 = arith.constant 0 : i32
    %c0_i32_0 = arith.constant 0 : i32
    return %arg0, %c0_i32 : i32, i32
  }
}

module attributes {stable_mosaic.version = 11 : i64} {
  func.func @_attn_kernel(%arg0: i32, %arg1: i32, %arg2: memref<1x256x4xf32, #tpu.memory_space<vmem>>, %arg3: memref<1x256x4xf32, #tpu.memory_space<vmem>>, %arg4: memref<1x256x4xf32, #tpu.memory_space<vmem>>, %arg5: memref<1x256x4xf32, #tpu.memory_space<vmem>>) attributes {dimension_semantics = [#tpu.dimension_semantics<parallel>, #tpu.dimension_semantics<parallel>], iteration_bounds = array<i64: 2, 1>, scalar_prefetch = 0 : i64, scratch_operands = 0 : i64, tpu.core_type = #tpu.core_type<tc>, window_params = [{transform_indices = @transform_0, window_bounds = array<i64: 1, 256, 4>}, {transform_indices = @transform_1, window_bounds = array<i64: 1, 256, 4>}, {transform_indices = @transform_2, window_bounds = array<i64: 1, 256, 4>}, {transform_indices = @transform_3, window_bounds = array<i64: 1, 256, 4>}]} {
    %c0 = arith.constant 0 : index
    %c0_0 = arith.constant 0 : index
    %c0_1 = arith.constant 0 : index
    %0 = vector.load %arg2[%c0, %c0_0, %c0_1] : memref<1x256x4xf32, #tpu.memory_space<vmem>>, vector<1x256x4xf32>
    %1 = vector.shape_cast %0 : vector<1x256x4xf32> to vector<256x4xf32>
    %c0_2 = arith.constant 0 : index
    %c0_3 = arith.constant 0 : index
    %c0_4 = arith.constant 0 : index
    %2 = vector.load %arg3[%c0_2, %c0_3, %c0_4] : memref<1x256x4xf32, #tpu.memory_space<vmem>>, vector<1x256x4xf32>
    %3 = vector.shape_cast %2 : vector<1x256x4xf32> to vector<256x4xf32>
    %c0_5 = arith.constant 0 : index
    %c0_6 = arith.constant 0 : index
    %c0_7 = arith.constant 0 : index
    %4 = vector.load %arg4[%c0_5, %c0_6, %c0_7] : memref<1x256x4xf32, #tpu.memory_space<vmem>>, vector<1x256x4xf32>
    %5 = vector.shape_cast %4 : vector<1x256x4xf32> to vector<256x4xf32>
    %cst = arith.constant dense<0.000000e+00> : vector<256x256xf32>
    %6 = tpu.matmul %1, %3, %cst {dimension_numbers = #tpu.dot_dimension_numbers<[1], [1], [0], [0], [0, 0, 1, 0], [], []>} : vector<256x4xf32>, vector<256x4xf32>, vector<256x256xf32> -> vector<256x256xf32>
    %cst_8 = arith.constant 2.500000e-01 : f32
    %7 = vector.broadcast %cst_8 : f32 to vector<256x256xf32>
    %8 = arith.mulf %6, %7 : vector<256x256xf32>
    %cst_9 = arith.constant dense<0xFF800000> : vector<256xf32>
    %9 = vector.multi_reduction <maximumf>, %8, %cst_9 [1] : vector<256x256xf32> to vector<256xf32>
    %10 = vector.shape_cast %9 : vector<256xf32> to vector<256x1xf32>
    %11 = vector.broadcast %10 : vector<256x1xf32> to vector<256x256xf32>
    %12 = arith.subf %8, %11 : vector<256x256xf32>
    %13 = math.exp %12 : vector<256x256xf32>
    %cst_10 = arith.constant dense<0.000000e+00> : vector<256xf32>
    %14 = vector.multi_reduction <add>, %13, %cst_10 [1] : vector<256x256xf32> to vector<256xf32>
    %15 = vector.shape_cast %14 : vector<256xf32> to vector<256x1xf32>
    %16 = vector.broadcast %15 : vector<256x1xf32> to vector<256x256xf32>
    %17 = arith.divf %13, %16 : vector<256x256xf32>
    %cst_11 = arith.constant dense<0.000000e+00> : vector<256x4xf32>
    %18 = tpu.matmul %17, %5, %cst_11 {dimension_numbers = #tpu.dot_dimension_numbers<[1], [0], [0], [1], [0, 0, 1, 1], [], []>} : vector<256x256xf32>, vector<256x4xf32>, vector<256x4xf32> -> vector<256x4xf32>
    %c0_12 = arith.constant 0 : index
    %c0_13 = arith.constant 0 : index
    %c0_14 = arith.constant 0 : index
    %19 = vector.load %arg5[%c0_12, %c0_13, %c0_14] : memref<1x256x4xf32, #tpu.memory_space<vmem>>, vector<1x256x4xf32>
    %20 = vector.shape_cast %19 : vector<1x256x4xf32> to vector<256x4xf32>
    %21 = vector.shape_cast %18 : vector<256x4xf32> to vector<1x256x4xf32>
    tpu.vector_store %arg5[%c0_12, %c0_13, %c0_14], %21 {strides = array<i32>} : memref<1x256x4xf32, #tpu.memory_space<vmem>>, vector<1x256x4xf32>,
    return
  }
  func.func @transform_0(%arg0: i32, %arg1: i32) -> (i32, i32, i32) {
    %c0_i32 = arith.constant 0 : i32
    %c0_i32_0 = arith.constant 0 : i32
    return %arg0, %arg1, %c0_i32 : i32, i32, i32
  }
  func.func @transform_1(%arg0: i32, %arg1: i32) -> (i32, i32, i32) {
    %c0_i32 = arith.constant 0 : i32
    %c0_i32_0 = arith.constant 0 : i32
    %c0_i32_1 = arith.constant 0 : i32
    return %arg0, %c0_i32, %c0_i32_0 : i32, i32, i32
  }
  func.func @transform_2(%arg0: i32, %arg1: i32) -> (i32, i32, i32) {
    %c0_i32 = arith.constant 0 : i32
    %c0_i32_0 = arith.constant 0 : i32
    %c0_i32_1 = arith.constant 0 : i32
    return %arg0, %c0_i32, %c0_i32_0 : i32, i32, i32
  }
  func.func @transform_3(%arg0: i32, %arg1: i32) -> (i32, i32, i32) {
    %c0_i32 = arith.constant 0 : i32
    %c0_i32_0 = arith.constant 0 : i32
    return %arg0, %arg1, %c0_i32 : i32, i32, i32
  }
}

module attributes {stable_mosaic.version = 11 : i64} {
  func.func @_mm_bias_kernel(%arg0: i32, %arg1: memref<256x72xf32, #tpu.memory_space<vmem>>, %arg2: memref<72x18xf32, #tpu.memory_space<vmem>>, %arg3: memref<1x18xf32, #tpu.memory_space<vmem>>, %arg4: memref<256x18xf32, #tpu.memory_space<vmem>>) attributes {dimension_semantics = [#tpu.dimension_semantics<parallel>], iteration_bounds = array<i64: 2>, scalar_prefetch = 0 : i64, scratch_operands = 0 : i64, tpu.core_type = #tpu.core_type<tc>, window_params = [{transform_indices = @transform_0, window_bounds = array<i64: 256, 72>}, {pipeline_mode = #tpu.pipeline_mode<synchronous>, transform_indices = @transform_1, window_bounds = array<i64: 72, 18>}, {pipeline_mode = #tpu.pipeline_mode<synchronous>, transform_indices = @transform_2, window_bounds = array<i64: 1, 18>}, {transform_indices = @transform_3, window_bounds = array<i64: 256, 18>}]} {
    %c0 = arith.constant 0 : index
    %c0_0 = arith.constant 0 : index
    %0 = vector.load %arg1[%c0, %c0_0] : memref<256x72xf32, #tpu.memory_space<vmem>>, vector<256x72xf32>
    %c0_1 = arith.constant 0 : index
    %c0_2 = arith.constant 0 : index
    %1 = vector.load %arg2[%c0_1, %c0_2] : memref<72x18xf32, #tpu.memory_space<vmem>>, vector<72x18xf32>
    %cst = arith.constant dense<0.000000e+00> : vector<256x18xf32>
    %2 = tpu.matmul %0, %1, %cst {dimension_numbers = #tpu.dot_dimension_numbers<[1], [0], [0], [1], [0, 0, 1, 1], [], []>} : vector<256x72xf32>, vector<72x18xf32>, vector<256x18xf32> -> vector<256x18xf32>
    %c0_3 = arith.constant 0 : index
    %c0_4 = arith.constant 0 : index
    %3 = vector.load %arg3[%c0_3, %c0_4] : memref<1x18xf32, #tpu.memory_space<vmem>>, vector<1x18xf32>
    %4 = vector.broadcast %3 : vector<1x18xf32> to vector<256x18xf32>
    %5 = arith.addf %2, %4 : vector<256x18xf32>
    %c0_5 = arith.constant 0 : index
    %c0_6 = arith.constant 0 : index
    %6 = vector.load %arg4[%c0_5, %c0_6] : memref<256x18xf32, #tpu.memory_space<vmem>>, vector<256x18xf32>
    tpu.vector_store %arg4[%c0_5, %c0_6], %5 {strides = array<i32>} : memref<256x18xf32, #tpu.memory_space<vmem>>, vector<256x18xf32>,
    return
  }
  func.func @transform_0(%arg0: i32) -> (i32, i32) {
    %c0_i32 = arith.constant 0 : i32
    %c0_i32_0 = arith.constant 0 : i32
    return %arg0, %c0_i32 : i32, i32
  }
  func.func @transform_1(%arg0: i32) -> (i32, i32) {
    %c0_i32 = arith.constant 0 : i32
    %c0_i32_0 = arith.constant 0 : i32
    %c0_i32_1 = arith.constant 0 : i32
    return %c0_i32, %c0_i32_0 : i32, i32
  }
  func.func @transform_2(%arg0: i32) -> (i32, i32) {
    %c0_i32 = arith.constant 0 : i32
    %c0_i32_0 = arith.constant 0 : i32
    %c0_i32_1 = arith.constant 0 : i32
    return %c0_i32, %c0_i32_0 : i32, i32
  }
  func.func @transform_3(%arg0: i32) -> (i32, i32) {
    %c0_i32 = arith.constant 0 : i32
    %c0_i32_0 = arith.constant 0 : i32
    return %arg0, %c0_i32 : i32, i32
  }
}

module attributes {stable_mosaic.version = 11 : i64} {
  func.func @_mm_bias_kernel(%arg0: i32, %arg1: memref<256x72xf32, #tpu.memory_space<vmem>>, %arg2: memref<72x8xf32, #tpu.memory_space<vmem>>, %arg3: memref<1x8xf32, #tpu.memory_space<vmem>>, %arg4: memref<256x8xf32, #tpu.memory_space<vmem>>) attributes {dimension_semantics = [#tpu.dimension_semantics<parallel>], iteration_bounds = array<i64: 2>, scalar_prefetch = 0 : i64, scratch_operands = 0 : i64, tpu.core_type = #tpu.core_type<tc>, window_params = [{transform_indices = @transform_0, window_bounds = array<i64: 256, 72>}, {pipeline_mode = #tpu.pipeline_mode<synchronous>, transform_indices = @transform_1, window_bounds = array<i64: 72, 8>}, {pipeline_mode = #tpu.pipeline_mode<synchronous>, transform_indices = @transform_2, window_bounds = array<i64: 1, 8>}, {transform_indices = @transform_3, window_bounds = array<i64: 256, 8>}]} {
    %c0 = arith.constant 0 : index
    %c0_0 = arith.constant 0 : index
    %0 = vector.load %arg1[%c0, %c0_0] : memref<256x72xf32, #tpu.memory_space<vmem>>, vector<256x72xf32>
    %c0_1 = arith.constant 0 : index
    %c0_2 = arith.constant 0 : index
    %1 = vector.load %arg2[%c0_1, %c0_2] : memref<72x8xf32, #tpu.memory_space<vmem>>, vector<72x8xf32>
    %cst = arith.constant dense<0.000000e+00> : vector<256x8xf32>
    %2 = tpu.matmul %0, %1, %cst {dimension_numbers = #tpu.dot_dimension_numbers<[1], [0], [0], [1], [0, 0, 1, 1], [], []>} : vector<256x72xf32>, vector<72x8xf32>, vector<256x8xf32> -> vector<256x8xf32>
    %c0_3 = arith.constant 0 : index
    %c0_4 = arith.constant 0 : index
    %3 = vector.load %arg3[%c0_3, %c0_4] : memref<1x8xf32, #tpu.memory_space<vmem>>, vector<1x8xf32>
    %4 = vector.broadcast %3 : vector<1x8xf32> to vector<256x8xf32>
    %5 = arith.addf %2, %4 : vector<256x8xf32>
    %c0_5 = arith.constant 0 : index
    %c0_6 = arith.constant 0 : index
    %6 = vector.load %arg4[%c0_5, %c0_6] : memref<256x8xf32, #tpu.memory_space<vmem>>, vector<256x8xf32>
    tpu.vector_store %arg4[%c0_5, %c0_6], %5 {strides = array<i32>} : memref<256x8xf32, #tpu.memory_space<vmem>>, vector<256x8xf32>,
    return
  }
  func.func @transform_0(%arg0: i32) -> (i32, i32) {
    %c0_i32 = arith.constant 0 : i32
    %c0_i32_0 = arith.constant 0 : i32
    return %arg0, %c0_i32 : i32, i32
  }
  func.func @transform_1(%arg0: i32) -> (i32, i32) {
    %c0_i32 = arith.constant 0 : i32
    %c0_i32_0 = arith.constant 0 : i32
    %c0_i32_1 = arith.constant 0 : i32
    return %c0_i32, %c0_i32_0 : i32, i32
  }
  func.func @transform_2(%arg0: i32) -> (i32, i32) {
    %c0_i32 = arith.constant 0 : i32
    %c0_i32_0 = arith.constant 0 : i32
    %c0_i32_1 = arith.constant 0 : i32
    return %c0_i32, %c0_i32_0 : i32, i32
  }
  func.func @transform_3(%arg0: i32) -> (i32, i32) {
    %c0_i32 = arith.constant 0 : i32
    %c0_i32_0 = arith.constant 0 : i32
    return %arg0, %c0_i32 : i32, i32
  }
}

</mosaic_0001>

<bundles_post_ra>
// kernel: glfam_forward.6
= control target key start
LH: loop header
LB: loop body
LE: loop exit
PB: predicated region body
PF: predicated region fallthrough
CT: control target
= control target key end

     0   :  { %8 = vsyncpa [#allocation3], 0  ;;  %s958_s0 = inlined_call_operand.vmem [shape: f32[512,8], index: 0, kind: input, shape index: {}]   ;;  %s959_s1 = inlined_call_operand.hbm [shape: f32[8,16], index: 1, kind: input, shape index: {}]   ;;  %s960_s2 = inlined_call_operand.hbm [shape: f32[1,16], index: 2, kind: input, shape index: {}]   ;;  %s961_s3 = inlined_call_operand.vmem [shape: f32[512,16], index: 3, kind: output, shape index: {}]  }
   0x1   :  { %9 = vsyncpa [#allocation5], 0  ;;  %s740_s12 = smov 0  }
   0x2 LB: > { %s126_s15 = sshll.u32 %s959_s1, 4  ;;  %s562_s16 = sadd.s32 4294967295, %s716_s12   ;;  %s716_s12 = sphi %s740_s12, %s15_s12   ;;  %s127_s15 = int_to_ptr.hbm [resolvable:$true] %s126_s15 }
   0x3   : > { %p564_p0 = scmp.ge.s32.totalorder %s716_s12, 1  ;;  %p114_p1 = scmp.lt.s32.totalorder %s716_s12, 3 }
   0x4   : > { %p751_p2 = scmp.eq.s32.totalorder %s562_s16, 0  ;;  %s718_s19 = smov [#allocation2]  }
   0x5   : > { %p755_p3 = pnand %p564_p0, %p114_p1  ;;  %s128_s20 = sshll.u32 %s718_s19, 4  ;;  %s129_s20 = int_to_ptr.vmem [resolvable:$true] %s128_s20 }
   0x6   : > { %s138_s23 = sshll.u32 %s960_s2, 4  ;;  %s719_s24 = smov [#allocation4]   ;;  %s139_s23 = int_to_ptr.hbm [resolvable:$true] %s138_s23 }
   0x7   : > { %p620_p4 = pneg %p755_p3  ;;  %s140_s25 = sshll.u32 %s719_s24, 4  ;;  %s141_s25 = int_to_ptr.vmem [resolvable:$true] %s140_s25 }
   0x8   : > { %162 = sbr.rel (%p755_p3) target bundleno = 215 (0xd7), region = 32 }
   0x9   : > { %p621_p5 = pnand %p751_p2, %p620_p4 }
   0xb   : > { %623 = dma.hbm_to_vmem [thread:$0]  (!%p621_p5), %s127_s15, 128, %s129_s20, [#allocation3]  }
   0xc   : > { %626 = dma.hbm_to_vmem [thread:$0]  (!%p621_p5), %s139_s23, 16, %s141_s25, [#allocation5]  }
   0xd   : > { %707 = dma.done.wait (%p751_p2), [#allocation3], 128  }
   0xe   : > { %709 = vsyncadd (%p751_p2), [#allocation3], 4294967168 }
   0xf   : > { %711 = dma.done.wait (%p751_p2), [#allocation5], 16  }
  0x10   : > { %713 = vsyncadd (%p751_p2), [#allocation5], 4294967280  ;;  %s571_s26 = sshll.u32 %s562_s16, 5  ;;  %vm241_vm0 = vcmask 64512   ;;  %v236_v0 = vld [vmem:[#allocation2] sm:$0xff]  ;;  %vm451_vm1 = vcmask 130048  }
  0x11   : > { %p193_p6 = scmp.lt.s32.totalorder %s571_s26, 63  ;;  %610 = vmatpush.msra.mxu2 %v236_v0  ;;  %611 = vmatpush.msra.mxu3 %v236_v0  ;;  %v850_v33 = vld [vmem:[#allocation4] ss:$0 sm:$0xff] }
  0x12   : > { %353 = vmatpush.msra.mxu0 %v236_v0  ;;  %609 = vmatpush.msra.mxu1 %v236_v0 }
  0x13   : > { %s965_s26 = smov (!%p193_p6, %s571_s26), 63 }
  0x14   : > { %s572_s27 = sshll.u32 %s965_s26, 3 }
  0x15   : > { %s784_s30 = scalar_lea.vmem %s958_s0, %s572_s27  ;;  %s857_s6 = scalar_lea.vmem %s961_s3, %s572_s27 }
  0x16   : > { %v220_v1 = vld [vmem:[%s784_s30 + $0x80] sm:$0xff]  ;;  %v221_v5 = vld [vmem:[%s784_s30 + $0x88] sm:$0xff]  ;;  %v222_v9 = vld [vmem:[%s784_s30 + $0x90] sm:$0xff] }
  0x17   : > { %v228_v2 = vld [vmem:[%s784_s30 + $0xc0] sm:$0xff]  ;;  %591 = vmatmul.msk.f32.vlgmr.msra.gmra.mxu2 %vm241_vm0, %v220_v1  ;;  %v229_v6 = vld [vmem:[%s784_s30 + $0xc8] sm:$0xff]  ;;  %v230_v10 = vld [vmem:[%s784_s30 + $0xd0] sm:$0xff] }
  0x18   : > { %v204_v3 = vld [vmem:[%s784_s30] sm:$0xff]  ;;  %599 = vmatmul.msk.f32.vlgmr.msra.gmra.mxu3 %vm241_vm0, %v228_v2  ;;  %v205_v7 = vld [vmem:[%s784_s30 + $0x8] sm:$0xff]  ;;  %v206_v11 = vld [vmem:[%s784_s30 + $0x10] sm:$0xff] }
  0x19   : > { %v212_v4 = vld [vmem:[%s784_s30 + $0x40] sm:$0xff]  ;;  %575 = vmatmul.msk.f32.vlgmr.msra.gmra.mxu0 %vm241_vm0, %v204_v3  ;;  %v213_v8 = vld [vmem:[%s784_s30 + $0x48] sm:$0xff]  ;;  %v214_v12 = vld [vmem:[%s784_s30 + $0x50] sm:$0xff] }
  0x1a   : > { %583 = vmatmul.msk.f32.vlgmr.msra.gmra.mxu1 %vm241_vm0, %v212_v4  ;;  %v223_v13 = vld [vmem:[%s784_s30 + $0x98] sm:$0xff]  ;;  %v224_v17 = vld [vmem:[%s784_s30 + $0xa0] sm:$0xff]  ;;  %v225_v21 = vld [vmem:[%s784_s30 + $0xa8] sm:$0xff] }
  0x1b   : > { %v231_v14 = vld [vmem:[%s784_s30 + $0xd8] sm:$0xff]  ;;  %v232_v18 = vld [vmem:[%s784_s30 + $0xe0] sm:$0xff]  ;;  %v233_v22 = vld [vmem:[%s784_s30 + $0xe8] sm:$0xff] }
  0x1c   : > { %v207_v15 = vld [vmem:[%s784_s30 + $0x18] sm:$0xff]  ;;  %v208_v19 = vld [vmem:[%s784_s30 + $0x20] sm:$0xff]  ;;  %v209_v23 = vld [vmem:[%s784_s30 + $0x28] sm:$0xff] }
  0x1d   : > { %v215_v16 = vld [vmem:[%s784_s30 + $0x58] sm:$0xff]  ;;  %v216_v20 = vld [vmem:[%s784_s30 + $0x60] sm:$0xff]  ;;  %v217_v24 = vld [vmem:[%s784_s30 + $0x68] sm:$0xff] }
  0x1e   : > { %v226_v25 = vld [vmem:[%s784_s30 + $0xb0] sm:$0xff]  ;;  %v227_v29 = vld [vmem:[%s784_s30 + $0xb8] sm:$0xff] }
  0x1f   : > { %592 = vmatmul.msk.f32.gmra.mxu2 %vm241_vm0, %v221_v5  ;;  %v234_v26 = vld [vmem:[%s784_s30 + $0xf0] sm:$0xff]  ;;  %v235_v30 = vld [vmem:[%s784_s30 + $0xf8] sm:$0xff] }
  0x20   : > { %600 = vmatmul.msk.f32.gmra.mxu3 %vm241_vm0, %v229_v6  ;;  %v210_v27 = vld [vmem:[%s784_s30 + $0x30] sm:$0xff]  ;;  %v211_v31 = vld [vmem:[%s784_s30 + $0x38] sm:$0xff] }
  0x21   : > { %576 = vmatmul.msk.f32.gmra.mxu0 %vm241_vm0, %v205_v7  ;;  %v218_v28 = vld [vmem:[%s784_s30 + $0x70] sm:$0xff]  ;;  %v219_v32 = vld [vmem:[%s784_s30 + $0x78] sm:$0xff] }
  0x22   : > { %584 = vmatmul.msk.f32.gmra.mxu1 %vm241_vm0, %v213_v8 }
  0x27   : > { %593 = vmatmul.msk.f32.gmra.mxu2 %vm241_vm0, %v222_v9 }
  0x28   : > { %601 = vmatmul.msk.f32.gmra.mxu3 %vm241_vm0, %v230_v10 }
  0x29   : > { %577 = vmatmul.msk.f32.gmra.mxu0 %vm241_vm0, %v206_v11 }
  0x2a   : > { %585 = vmatmul.msk.f32.gmra.mxu1 %vm241_vm0, %v214_v12 }
  0x2f   : > { %594 = vmatmul.msk.f32.gmra.mxu2 %vm241_vm0, %v223_v13 }
  0x30   : > { %602 = vmatmul.msk.f32.gmra.mxu3 %vm241_vm0, %v231_v14 }
  0x31   : > { %578 = vmatmul.msk.f32.gmra.mxu0 %vm241_vm0, %v207_v15 }
  0x32   : > { %586 = vmatmul.msk.f32.gmra.mxu1 %vm241_vm0, %v215_v16 }
  0x37   : > { %595 = vmatmul.msk.f32.gmra.mxu2 %vm241_vm0, %v224_v17 }
  0x38   : > { %603 = vmatmul.msk.f32.gmra.mxu3 %vm241_vm0, %v232_v18 }
  0x39   : > { %579 = vmatmul.msk.f32.gmra.mxu0 %vm241_vm0, %v208_v19 }
  0x3a   : > { %587 = vmatmul.msk.f32.gmra.mxu1 %vm241_vm0, %v216_v20 }
  0x3f   : > { %596 = vmatmul.msk.f32.gmra.mxu2 %vm241_vm0, %v225_v21 }
  0x40   : > { %604 = vmatmul.msk.f32.gmra.mxu3 %vm241_vm0, %v233_v22 }
  0x41   : > { %580 = vmatmul.msk.f32.gmra.mxu0 %vm241_vm0, %v209_v23 }
  0x42   : > { %588 = vmatmul.msk.f32.gmra.mxu1 %vm241_vm0, %v217_v24 }
  0x47   : > { %597 = vmatmul.msk.f32.gmra.mxu2 %vm241_vm0, %v226_v25 }
  0x48   : > { %605 = vmatmul.msk.f32.gmra.mxu3 %vm241_vm0, %v234_v26 }
  0x49   : > { %581 = vmatmul.msk.f32.gmra.mxu0 %vm241_vm0, %v210_v27 }
  0x4a   : > { %589 = vmatmul.msk.f32.gmra.mxu1 %vm241_vm0, %v218_v28 }
  0x4f   : > { %598 = vmatmul.msk.f32.gmra.mxu2 %vm241_vm0, %v227_v29 }
  0x50   : > { %606 = vmatmul.msk.f32.gmra.mxu3 %vm241_vm0, %v235_v30 }
  0x51   : > { %582 = vmatmul.msk.f32.gmra.mxu0 %vm241_vm0, %v211_v31 }
  0x52   : > { %590 = vmatmul.msk.f32.gmra.mxu1 %vm241_vm0, %v219_v32 }
  0x96   : > { %v355_v34 = vpop.f32.mrf.mxu0 }
  0x97   : > { %v379_v35 = vpop.f32.mrf.mxu1  ;;  %v356_v36 = vadd.f32 %v850_v33, %v355_v34 }
  0x98   : > { %v380_v37 = vadd.f32 %v850_v33, %v379_v35 }
  0x99   : > { %452 = vst.msk [vmem:[%s857_s6] sm:$0xff] %vm451_vm1, %v356_v36 }
  0x9a   : > { %460 = vst.msk [vmem:[%s857_s6 + $0x40] sm:$0xff] %vm451_vm1, %v380_v37  ;;  %v403_v38 = vpop.f32.mrf.mxu2 }
  0x9b   : > { %v427_v39 = vpop.f32.mrf.mxu3  ;;  %v404_v40 = vadd.f32 %v850_v33, %v403_v38 }
  0x9c   : > { %v428_v41 = vadd.f32 %v850_v33, %v427_v39 }
  0x9d   : > { %468 = vst.msk [vmem:[%s857_s6 + $0x80] sm:$0xff] %vm451_vm1, %v404_v40 }
  0x9e   : > { %476 = vst.msk [vmem:[%s857_s6 + $0xc0] sm:$0xff] %vm451_vm1, %v428_v41  ;;  %v358_v42 = vpop.f32.mrf.mxu0 }
  0x9f   : > { %v382_v43 = vpop.f32.mrf.mxu1  ;;  %v359_v44 = vadd.f32 %v850_v33, %v358_v42 }
  0xa0   : > { %v383_v45 = vadd.f32 %v850_v33, %v382_v43 }
  0xa1   : > { %453 = vst.msk [vmem:[%s857_s6 + $0x8] sm:$0xff] %vm451_vm1, %v359_v44 }
  0xa2   : > { %461 = vst.msk [vmem:[%s857_s6 + $0x48] sm:$0xff] %vm451_vm1, %v383_v45  ;;  %v406_v46 = vpop.f32.mrf.mxu2 }
  0xa3   : > { %v430_v47 = vpop.f32.mrf.mxu3  ;;  %v407_v48 = vadd.f32 %v850_v33, %v406_v46 }
  0xa4   : > { %v431_v49 = vadd.f32 %v850_v33, %v430_v47 }
  0xa5   : > { %469 = vst.msk [vmem:[%s857_s6 + $0x88] sm:$0xff] %vm451_vm1, %v407_v48 }
  0xa6   : > { %477 = vst.msk [vmem:[%s857_s6 + $0xc8] sm:$0xff] %vm451_vm1, %v431_v49  ;;  %v361_v50 = vpop.f32.mrf.mxu0 }
  0xa7   : > { %v385_v51 = vpop.f32.mrf.mxu1  ;;  %v362_v52 = vadd.f32 %v850_v33, %v361_v50 }
  0xa8   : > { %v386_v53 = vadd.f32 %v850_v33, %v385_v51 }
  0xa9   : > { %454 = vst.msk [vmem:[%s857_s6 + $0x10] sm:$0xff] %vm451_vm1, %v362_v52 }
  0xaa   : > { %462 = vst.msk [vmem:[%s857_s6 + $0x50] sm:$0xff] %vm451_vm1, %v386_v53  ;;  %v409_v54 = vpop.f32.mrf.mxu2 }
  0xab   : > { %v433_v55 = vpop.f32.mrf.mxu3  ;;  %v410_v56 = vadd.f32 %v850_v33, %v409_v54 }
  0xac   : > { %v434_v57 = vadd.f32 %v850_v33, %v433_v55 }
  0xad   : > { %470 = vst.msk [vmem:[%s857_s6 + $0x90] sm:$0xff] %vm451_vm1, %v410_v56 }
  0xae   : > { %478 = vst.msk [vmem:[%s857_s6 + $0xd0] sm:$0xff] %vm451_vm1, %v434_v57  ;;  %v364_v58 = vpop.f32.mrf.mxu0 }
  0xaf   : > { %v388_v59 = vpop.f32.mrf.mxu1  ;;  %v365_v60 = vadd.f32 %v850_v33, %v364_v58 }
  0xb0   : > { %v389_v61 = vadd.f32 %v850_v33, %v388_v59 }
  0xb1   : > { %455 = vst.msk [vmem:[%s857_s6 + $0x18] sm:$0xff] %vm451_vm1, %v365_v60 }
  0xb2   : > { %463 = vst.msk [vmem:[%s857_s6 + $0x58] sm:$0xff] %vm451_vm1, %v389_v61  ;;  %v412_v62 = vpop.f32.mrf.mxu2 }
  0xb3   : > { %v436_v63 = vpop.f32.mrf.mxu3  ;;  %v413_v0 = vadd.f32 %v850_v33, %v412_v62 }
  0xb4   : > { %v437_v1 = vadd.f32 %v850_v33, %v436_v63 }
  0xb5   : > { %471 = vst.msk [vmem:[%s857_s6 + $0x98] sm:$0xff] %vm451_vm1, %v413_v0 }
  0xb6   : > { %479 = vst.msk [vmem:[%s857_s6 + $0xd8] sm:$0xff] %vm451_vm1, %v437_v1  ;;  %v367_v2 = vpop.f32.mrf.mxu0 }
  0xb7   : > { %v391_v3 = vpop.f32.mrf.mxu1  ;;  %v368_v4 = vadd.f32 %v850_v33, %v367_v2 }
  0xb8   : > { %v392_v5 = vadd.f32 %v850_v33, %v391_v3 }
  0xb9   : > { %456 = vst.msk [vmem:[%s857_s6 + $0x20] sm:$0xff] %vm451_vm1, %v368_v4 }
  0xba   : > { %464 = vst.msk [vmem:[%s857_s6 + $0x60] sm:$0xff] %vm451_vm1, %v392_v5  ;;  %v415_v6 = vpop.f32.mrf.mxu2 }
  0xbb   : > { %v439_v7 = vpop.f32.mrf.mxu3  ;;  %v416_v8 = vadd.f32 %v850_v33, %v415_v6 }
  0xbc   : > { %v440_v9 = vadd.f32 %v850_v33, %v439_v7 }
  0xbd   : > { %472 = vst.msk [vmem:[%s857_s6 + $0xa0] sm:$0xff] %vm451_vm1, %v416_v8 }
  0xbe   : > { %480 = vst.msk [vmem:[%s857_s6 + $0xe0] sm:$0xff] %vm451_vm1, %v440_v9  ;;  %v370_v10 = vpop.f32.mrf.mxu0 }
  0xbf   : > { %v394_v11 = vpop.f32.mrf.mxu1  ;;  %v371_v12 = vadd.f32 %v850_v33, %v370_v10 }
  0xc0   : > { %v395_v13 = vadd.f32 %v850_v33, %v394_v11 }
  0xc1   : > { %457 = vst.msk [vmem:[%s857_s6 + $0x28] sm:$0xff] %vm451_vm1, %v371_v12 }
  0xc2   : > { %465 = vst.msk [vmem:[%s857_s6 + $0x68] sm:$0xff] %vm451_vm1, %v395_v13  ;;  %v418_v14 = vpop.f32.mrf.mxu2 }
  0xc3   : > { %v442_v15 = vpop.f32.mrf.mxu3  ;;  %v419_v16 = vadd.f32 %v850_v33, %v418_v14 }
  0xc4   : > { %v443_v17 = vadd.f32 %v850_v33, %v442_v15 }
  0xc5   : > { %473 = vst.msk [vmem:[%s857_s6 + $0xa8] sm:$0xff] %vm451_vm1, %v419_v16 }
  0xc6   : > { %481 = vst.msk [vmem:[%s857_s6 + $0xe8] sm:$0xff] %vm451_vm1, %v443_v17  ;;  %v373_v18 = vpop.f32.mrf.mxu0 }
  0xc7   : > { %v397_v19 = vpop.f32.mrf.mxu1  ;;  %v374_v20 = vadd.f32 %v850_v33, %v373_v18 }
  0xc8   : > { %v398_v21 = vadd.f32 %v850_v33, %v397_v19 }
  0xc9   : > { %458 = vst.msk [vmem:[%s857_s6 + $0x30] sm:$0xff] %vm451_vm1, %v374_v20 }
  0xca   : > { %466 = vst.msk [vmem:[%s857_s6 + $0x70] sm:$0xff] %vm451_vm1, %v398_v21  ;;  %v421_v22 = vpop.f32.mrf.mxu2 }
  0xcb   : > { %v445_v23 = vpop.f32.mrf.mxu3  ;;  %v422_v24 = vadd.f32 %v850_v33, %v421_v22 }
  0xcc   : > { %v446_v25 = vadd.f32 %v850_v33, %v445_v23 }
  0xcd   : > { %474 = vst.msk [vmem:[%s857_s6 + $0xb0] sm:$0xff] %vm451_vm1, %v422_v24 }
  0xce   : > { %482 = vst.msk [vmem:[%s857_s6 + $0xf0] sm:$0xff] %vm451_vm1, %v446_v25  ;;  %v376_v26 = vpop.f32.mrf.mxu0 }
  0xcf   : > { %v400_v27 = vpop.f32.mrf.mxu1  ;;  %v377_v28 = vadd.f32 %v850_v33, %v376_v26 }
  0xd0   : > { %v401_v29 = vadd.f32 %v850_v33, %v400_v27 }
  0xd1   : > { %459 = vst.msk [vmem:[%s857_s6 + $0x38] sm:$0xff] %vm451_vm1, %v377_v28 }
  0xd2   : > { %467 = vst.msk [vmem:[%s857_s6 + $0x78] sm:$0xff] %vm451_vm1, %v401_v29  ;;  %v424_v30 = vpop.f32.mrf.mxu2 }
  0xd3   : > { %v448_v31 = vpop.f32.mrf.mxu3  ;;  %v425_v32 = vadd.f32 %v850_v33, %v424_v30 }
  0xd4   : > { %v449_v34 = vadd.f32 %v850_v33, %v448_v31 }
  0xd5   : > { %475 = vst.msk [vmem:[%s857_s6 + $0xb8] sm:$0xff] %vm451_vm1, %v425_v32 }
  0xd6   : > { %483 = vst.msk [vmem:[%s857_s6 + $0xf8] sm:$0xff] %vm451_vm1, %v449_v34 }
  0xd7 PF: > { %s15_s12 = sadd.s32 1, %s716_s12  }
  0xd8   : > { %p12_p7 = scmp.ge.s32.totalorder %s15_s12, 4  }
  0xda   :  { %14 = sbr.rel (!%p12_p7) target bundleno = 2 (0x2), region = 71 }
  0xdf   :  { %506 = vsyncpa [#allocation3], 1 }
  0xe0   :  { %508 = vsyncpa [#allocation3 + $0x1], 1 }
  0xe1   :  { %509 = vsyncpa [#allocation5], 1 }

// kernel: glfam_forward.7
= control target key start
LH: loop header
LB: loop body
LE: loop exit
PB: predicated region body
PF: predicated region fallthrough
CT: control target
= control target key end

     0   :  { %s2469_s12 = smov 0   ;;  %s2471_s13 = smov 0   ;;  %s3479_s0 = inlined_call_operand.vmem [shape: f32[2,256,4], index: 0, kind: input, shape index: {}]   ;;  %s3480_s1 = inlined_call_operand.vmem [shape: f32[2,256,4], index: 1, kind: input, shape index: {}]   ;;  %s3481_s2 = inlined_call_operand.vmem [shape: f32[2,256,4], index: 2, kind: input, shape index: {}]   ;;  %s3482_s3 = inlined_call_operand.vmem [shape: f32[2,256,4], index: 3, kind: output, shape index: {}]  }
   0x1   :  { %s2473_s14 = smov 0  }
   0x2 LB: > { %s25_s15 = sadd.s32 1, %s2443_s13  ;;  %p2098_p0 = scmp.ge.s32.totalorder %s2447_s14, 1  ;;  %s2447_s14 = sphi %s2473_s14, %s13_s14   ;;  %s2443_s13 = sphi %s2471_s13, %s3486_s13   ;;  %s2439_s12 = sphi %s2469_s12, %s3485_s12  }
   0x3   : > { %p27_p1 = scmp.ge.s32.totalorder %s25_s15, 2  ;;  %p178_p2 = scmp.lt.s32.totalorder %s2447_s14, 3 }
   0x5   : > { %s3488_s15 = smov (%p27_p1, %s25_s15), 0  ;;  %p179_p3 = pnand %p2098_p0, %p178_p2 }
   0x6   : > { %p221_p4 = scmp.lt.s32.totalorder (!%p179_p3), %s2439_s12, 1 }
   0x7   : > { %182 = sbr.rel (%p179_p3) target bundleno = 1080 (0x438), region = 32 }
   0xc   : > { %s3490_s12 = smov (!%p221_p4, %s2439_s12), 1  ;;  %vm346_vm0 = vcmask 31744  }
   0xd   : > { %s2487_s16 = sshll.u32 %s3490_s12, 8 }
   0xe   : > { %s2493_s19 = scalar_lea.vmem %s3480_s1, %s2487_s16  ;;  %s2561_s22 = scalar_lea.vmem %s3479_s0, %s2487_s16 }
   0xf   : > { %v297_v0 = vld [vmem:[%s2493_s19 + $0x78] sm:$0xff]  ;;  %v296_v2 = vld [vmem:[%s2493_s19 + $0x70] sm:$0xff]  ;;  %v295_v4 = vld [vmem:[%s2493_s19 + $0x68] sm:$0xff]  ;;  %s2748_s25 = scalar_lea.vmem %s3481_s2, %s2487_s16  ;;  %s3068_s28 = scalar_lea.vmem %s3482_s3, %s2487_s16 }
  0x10   : > { %v313_v1 = vld [vmem:[%s2493_s19 + $0xf8] sm:$0xff]  ;;  %2107 = vmatpush.xpose.msk.msra.mxu0 %vm346_vm0, %v297_v0  ;;  %v312_v3 = vld [vmem:[%s2493_s19 + $0xf0] sm:$0xff]  ;;  %v311_v5 = vld [vmem:[%s2493_s19 + $0xe8] sm:$0xff] }
  0x11   : > { %2155 = vmatpush.xpose.msk.msra.mxu1 %vm346_vm0, %v313_v1  ;;  %v294_v6 = vld [vmem:[%s2493_s19 + $0x60] sm:$0xff]  ;;  %v293_v8 = vld [vmem:[%s2493_s19 + $0x58] sm:$0xff]  ;;  %v292_v10 = vld [vmem:[%s2493_s19 + $0x50] sm:$0xff] }
  0x12   : > { %v310_v7 = vld [vmem:[%s2493_s19 + $0xe0] sm:$0xff]  ;;  %v309_v9 = vld [vmem:[%s2493_s19 + $0xd8] sm:$0xff]  ;;  %v308_v11 = vld [vmem:[%s2493_s19 + $0xd0] sm:$0xff] }
  0x13   : > { %v291_v12 = vld [vmem:[%s2493_s19 + $0x48] sm:$0xff]  ;;  %v290_v14 = vld [vmem:[%s2493_s19 + $0x40] sm:$0xff]  ;;  %v289_v16 = vld [vmem:[%s2493_s19 + $0x38] sm:$0xff] }
  0x14   : > { %2108 = vmatpush.xpose.msk.msra.mxu0 %vm346_vm0, %v296_v2  ;;  %v307_v13 = vld [vmem:[%s2493_s19 + $0xc8] sm:$0xff]  ;;  %v306_v15 = vld [vmem:[%s2493_s19 + $0xc0] sm:$0xff]  ;;  %v305_v17 = vld [vmem:[%s2493_s19 + $0xb8] sm:$0xff] }
  0x15   : > { %2156 = vmatpush.xpose.msk.msra.mxu1 %vm346_vm0, %v312_v3  ;;  %v288_v18 = vld [vmem:[%s2493_s19 + $0x30] sm:$0xff]  ;;  %v287_v20 = vld [vmem:[%s2493_s19 + $0x28] sm:$0xff]  ;;  %v286_v22 = vld [vmem:[%s2493_s19 + $0x20] sm:$0xff] }
  0x16   : > { %v304_v19 = vld [vmem:[%s2493_s19 + $0xb0] sm:$0xff]  ;;  %v303_v21 = vld [vmem:[%s2493_s19 + $0xa8] sm:$0xff]  ;;  %v302_v23 = vld [vmem:[%s2493_s19 + $0xa0] sm:$0xff] }
  0x17   : > { %v285_v24 = vld [vmem:[%s2493_s19 + $0x18] sm:$0xff]  ;;  %v284_v26 = vld [vmem:[%s2493_s19 + $0x10] sm:$0xff]  ;;  %v283_v28 = vld [vmem:[%s2493_s19 + $0x8] sm:$0xff] }
  0x18   : > { %2109 = vmatpush.xpose.msk.msra.mxu0 %vm346_vm0, %v295_v4  ;;  %v301_v25 = vld [vmem:[%s2493_s19 + $0x98] sm:$0xff]  ;;  %v300_v27 = vld [vmem:[%s2493_s19 + $0x90] sm:$0xff]  ;;  %v299_v29 = vld [vmem:[%s2493_s19 + $0x88] sm:$0xff] }
  0x19   : > { %2157 = vmatpush.xpose.msk.msra.mxu1 %vm346_vm0, %v311_v5  ;;  %v282_v30 = vld [vmem:[%s2493_s19] sm:$0xff]  ;;  %v251_v33 = vld [vmem:[%s2561_s22 + $0x8] sm:$0xff]  ;;  %v252_v34 = vld [vmem:[%s2561_s22 + $0x10] sm:$0xff] }
  0x1a   : > { %v298_v31 = vld [vmem:[%s2493_s19 + $0x80] sm:$0xff]  ;;  %v253_v35 = vld [vmem:[%s2561_s22 + $0x18] sm:$0xff]  ;;  %v255_v37 = vld [vmem:[%s2561_s22 + $0x28] sm:$0xff] }
  0x1b   : > { %v250_v32 = vld [vmem:[%s2561_s22] sm:$0xff]  ;;  %v256_v38 = vld [vmem:[%s2561_s22 + $0x30] sm:$0xff]  ;;  %v257_v39 = vld [vmem:[%s2561_s22 + $0x38] sm:$0xff] }
  0x1c   : > { %2110 = vmatpush.xpose.msk.msra.mxu0 %vm346_vm0, %v294_v6  ;;  %v254_v36 = vld [vmem:[%s2561_s22 + $0x20] sm:$0xff]  ;;  %v259_v41 = vld [vmem:[%s2561_s22 + $0x48] sm:$0xff]  ;;  %v260_v42 = vld [vmem:[%s2561_s22 + $0x50] sm:$0xff] }
  0x1d   : > { %2158 = vmatpush.xpose.msk.msra.mxu1 %vm346_vm0, %v310_v7  ;;  %v258_v40 = vld [vmem:[%s2561_s22 + $0x40] sm:$0xff]  ;;  %v261_v47 = vld [vmem:[%s2561_s22 + $0x58] sm:$0xff]  ;;  %v263_v59 = vld [vmem:[%s2561_s22 + $0x68] sm:$0xff] }
  0x1e   : > { %v262_v53 = vld [vmem:[%s2561_s22 + $0x60] sm:$0xff]  ;;  %v264_v1 = vld [vmem:[%s2561_s22 + $0x70] sm:$0xff]  ;;  %v265_v3 = vld [vmem:[%s2561_s22 + $0x78] sm:$0xff] }
  0x20   : > { %2111 = vmatpush.xpose.msk.msra.mxu0 %vm346_vm0, %v293_v8 }
  0x21   : > { %2159 = vmatpush.xpose.msk.msra.mxu1 %vm346_vm0, %v309_v9 }
  0x24   : > { %2112 = vmatpush.xpose.msk.msra.mxu0 %vm346_vm0, %v292_v10 }
  0x25   : > { %2160 = vmatpush.xpose.msk.msra.mxu1 %vm346_vm0, %v308_v11 }
  0x28   : > { %2113 = vmatpush.xpose.msk.msra.mxu0 %vm346_vm0, %v291_v12 }
  0x29   : > { %2161 = vmatpush.xpose.msk.msra.mxu1 %vm346_vm0, %v307_v13 }
  0x2c   : > { %2114 = vmatpush.xpose.msk.msra.mxu0 %vm346_vm0, %v290_v14 }
  0x2d   : > { %2162 = vmatpush.xpose.msk.msra.mxu1 %vm346_vm0, %v306_v15 }
  0x30   : > { %2115 = vmatpush.xpose.msk.msra.mxu0 %vm346_vm0, %v289_v16 }
  0x31   : > { %2163 = vmatpush.xpose.msk.msra.mxu1 %vm346_vm0, %v305_v17 }
  0x34   : > { %2116 = vmatpush.xpose.msk.msra.mxu0 %vm346_vm0, %v288_v18 }
  0x35   : > { %2164 = vmatpush.xpose.msk.msra.mxu1 %vm346_vm0, %v304_v19 }
  0x38   : > { %2117 = vmatpush.xpose.msk.msra.mxu0 %vm346_vm0, %v287_v20 }
  0x39   : > { %2165 = vmatpush.xpose.msk.msra.mxu1 %vm346_vm0, %v303_v21 }
  0x3c   : > { %2118 = vmatpush.xpose.msk.msra.mxu0 %vm346_vm0, %v286_v22 }
  0x3d   : > { %2166 = vmatpush.xpose.msk.msra.mxu1 %vm346_vm0, %v302_v23 }
  0x40   : > { %2119 = vmatpush.xpose.msk.msra.mxu0 %vm346_vm0, %v285_v24 }
  0x41   : > { %2167 = vmatpush.xpose.msk.msra.mxu1 %vm346_vm0, %v301_v25  ;;  %v266_v25 = vld [vmem:[%s2561_s22 + $0x80] sm:$0xff] }
  0x44   : > { %2120 = vmatpush.xpose.msk.msra.mxu0 %vm346_vm0, %v284_v26 }
  0x45   : > { %2168 = vmatpush.xpose.msk.msra.mxu1 %vm346_vm0, %v300_v27 }
  0x48   : > { %2121 = vmatpush.xpose.msk.msra.mxu0 %vm346_vm0, %v283_v28 }
  0x49   : > { %2169 = vmatpush.xpose.msk.msra.mxu1 %vm346_vm0, %v299_v29 }
  0x4c   : > { %2122 = vmatpush.xpose.msk.msra.mxu0 %vm346_vm0, %v282_v30 }
  0x4d   : > { %2170 = vmatpush.xpose.msk.msra.mxu1 %vm346_vm0, %v298_v31 }
  0x4f   : > { %2123 = vmatmul.msk.f32.vlgmr.msra.gmra.mxu0 %vm346_vm0, %v250_v32 }
  0x50   : > { %2171 = vmatmul.msk.f32.vlgmr.msra.gmra.mxu1 %vm346_vm0, %v250_v32  ;;  %v267_v32 = vld [vmem:[%s2561_s22 + $0x88] sm:$0xff] }
  0x57   : > { %2124 = vmatmul.msk.f32.gmra.mxu0 %vm346_vm0, %v251_v33 }
  0x58   : > { %2172 = vmatmul.msk.f32.gmra.mxu1 %vm346_vm0, %v251_v33 }
  0x5f   : > { %2125 = vmatmul.msk.f32.gmra.mxu0 %vm346_vm0, %v252_v34 }
  0x60   : > { %2173 = vmatmul.msk.f32.gmra.mxu1 %vm346_vm0, %v252_v34 }
  0x67   : > { %2126 = vmatmul.msk.f32.gmra.mxu0 %vm346_vm0, %v253_v35 }
  0x68   : > { %2174 = vmatmul.msk.f32.gmra.mxu1 %vm346_vm0, %v253_v35 }
  0x6f   : > { %2127 = vmatmul.msk.f32.gmra.mxu0 %vm346_vm0, %v254_v36 }
  0x70   : > { %2175 = vmatmul.msk.f32.gmra.mxu1 %vm346_vm0, %v254_v36 }
  0x77   : > { %2128 = vmatmul.msk.f32.gmra.mxu0 %vm346_vm0, %v255_v37 }
  0x78   : > { %2176 = vmatmul.msk.f32.gmra.mxu1 %vm346_vm0, %v255_v37 }
  0x7f   : > { %2129 = vmatmul.msk.f32.gmra.mxu0 %vm346_vm0, %v256_v38 }
  0x80   : > { %2177 = vmatmul.msk.f32.gmra.mxu1 %vm346_vm0, %v256_v38 }
  0x87   : > { %2130 = vmatmul.msk.f32.gmra.mxu0 %vm346_vm0, %v257_v39 }
  0x88   : > { %2178 = vmatmul.msk.f32.gmra.mxu1 %vm346_vm0, %v257_v39 }
  0x8f   : > { %2131 = vmatmul.msk.f32.gmra.mxu0 %vm346_vm0, %v258_v40 }
  0x90   : > { %2179 = vmatmul.msk.f32.gmra.mxu1 %vm346_vm0, %v258_v40 }
  0x97   : > { %2132 = vmatmul.msk.f32.gmra.mxu0 %vm346_vm0, %v259_v41 }
  0x98   : > { %2180 = vmatmul.msk.f32.gmra.mxu1 %vm346_vm0, %v259_v41 }
  0x9f   : > { %2133 = vmatmul.msk.f32.gmra.mxu0 %vm346_vm0, %v260_v42 }
  0xa0   : > { %2181 = vmatmul.msk.f32.gmra.mxu1 %vm346_vm0, %v260_v42 }
  0xa7   : > { %2134 = vmatmul.msk.f32.gmra.mxu0 %vm346_vm0, %v261_v47 }
  0xa8   : > { %2182 = vmatmul.msk.f32.gmra.mxu1 %vm346_vm0, %v261_v47 }
  0xaf   : > { %2135 = vmatmul.msk.f32.gmra.mxu0 %vm346_vm0, %v262_v53 }
  0xb0   : > { %2183 = vmatmul.msk.f32.gmra.mxu1 %vm346_vm0, %v262_v53 }
  0xb7   : > { %2136 = vmatmul.msk.f32.gmra.mxu0 %vm346_vm0, %v263_v59 }
  0xb8   : > { %2184 = vmatmul.msk.f32.gmra.mxu1 %vm346_vm0, %v263_v59  ;;  %v269_v59 = vld [vmem:[%s2561_s22 + $0x98] sm:$0xff] }
  0xbf   : > { %2137 = vmatmul.msk.f32.gmra.mxu0 %vm346_vm0, %v264_v1 }
  0xc0   : > { %2185 = vmatmul.msk.f32.gmra.mxu1 %vm346_vm0, %v264_v1 }
  0xc7   : > { %2138 = vmatmul.msk.f32.gmra.mxu0 %vm346_vm0, %v265_v3 }
  0xc8   : > { %2186 = vmatmul.msk.f32.gmra.mxu1 %vm346_vm0, %v265_v3 }
  0xcc   : > { %v556_v43 = vpop.f32.mrf.mxu0 }
  0xcd   : > { %v669_v44 = vpop.f32.mrf.mxu1  ;;  %v2598_v45 = vmul.f32 0.25, %v556_v43  ;;  %v268_v43 = vld [vmem:[%s2561_s22 + $0x90] sm:$0xff] }
  0xce   : > { %v2600_v46 = vmul.f32 0.25, %v669_v44 }
  0xcf   : > { %2139 = vmatmul.msk.f32.gmra.mxu0 %vm346_vm0, %v266_v25 }
  0xd0   : > { %v829_v48 = vmax.f32 %v2598_v45, %v2600_v46  ;;  %2187 = vmatmul.msk.f32.gmra.mxu1 %vm346_vm0, %v266_v25  ;;  %v271_v25 = vld [vmem:[%s2561_s22 + $0xa8] sm:$0xff] }
  0xd2   : > { %830 = vmax.xlane.f32.xlu0 %v829_v48 }
  0xd4   : > { %v559_v49 = vpop.f32.mrf.mxu0 }
  0xd5   : > { %v672_v50 = vpop.f32.mrf.mxu1  ;;  %v2607_v51 = vmul.f32 0.25, %v559_v49 }
  0xd6   : > { %v2609_v52 = vmul.f32 0.25, %v672_v50 }
  0xd7   : > { %2140 = vmatmul.msk.f32.gmra.mxu0 %vm346_vm0, %v267_v32 }
  0xd8   : > { %v832_v54 = vmax.f32 %v2607_v51, %v2609_v52  ;;  %2188 = vmatmul.msk.f32.gmra.mxu1 %vm346_vm0, %v267_v32 }
  0xda   : > { %833 = vmax.xlane.f32.xlu0 %v832_v54 }
  0xdc   : > { %v562_v55 = vpop.f32.mrf.mxu0 }
  0xdd   : > { %v675_v56 = vpop.f32.mrf.mxu1  ;;  %v2616_v57 = vmul.f32 0.25, %v562_v55 }
  0xde   : > { %v2618_v58 = vmul.f32 0.25, %v675_v56 }
  0xdf   : > { %2141 = vmatmul.msk.f32.gmra.mxu0 %vm346_vm0, %v268_v43 }
  0xe0   : > { %v835_v60 = vmax.f32 %v2616_v57, %v2618_v58  ;;  %2189 = vmatmul.msk.f32.gmra.mxu1 %vm346_vm0, %v268_v43  ;;  %v329_v43 = vld [vmem:[%s2748_s25 + $0x78] sm:$0xff] }
  0xe1   : > { %1725 = vmatpush.msra.mxu2 %v329_v43 }
  0xe2   : > { %836 = vmax.xlane.f32.xlu1 %v835_v60 }
  0xe4   : > { %v565_v61 = vpop.f32.mrf.mxu0 }
  0xe5   : > { %v678_v62 = vpop.f32.mrf.mxu1  ;;  %v2625_v63 = vmul.f32 0.25, %v565_v61 }
  0xe6   : > { %v2627_v0 = vmul.f32 0.25, %v678_v62 }
  0xe7   : > { %2142 = vmatmul.msk.f32.gmra.mxu0 %vm346_vm0, %v269_v59 }
  0xe8   : > { %v838_v2 = vmax.f32 %v2625_v63, %v2627_v0  ;;  %2190 = vmatmul.msk.f32.gmra.mxu1 %vm346_vm0, %v269_v59 }
  0xea   : > { %839 = vmax.xlane.f32.xlu1 %v838_v2 }
  0xec   : > { %v568_v4 = vpop.f32.mrf.mxu0 }
  0xed   : > { %v681_v5 = vpop.f32.mrf.mxu1  ;;  %v2635_v6 = vmul.f32 0.25, %v568_v4 }
  0xee   : > { %v2637_v7 = vmul.f32 0.25, %v681_v5 }
  0xf0   : > { %v841_v8 = vmax.f32 %v2635_v6, %v2637_v7 }
  0xf2   : > { %842 = vmax.xlane.f32.xlu2 %v841_v8 }
  0xf4   : > { %v571_v9 = vpop.f32.mrf.mxu0 }
  0xf5   : > { %v684_v10 = vpop.f32.mrf.mxu1  ;;  %v2643_v11 = vmul.f32 0.25, %v571_v9 }
  0xf6   : > { %v2645_v12 = vmul.f32 0.25, %v684_v10 }
  0xf8   : > { %v844_v13 = vmax.f32 %v2643_v11, %v2645_v12 }
  0xfa   : > { %845 = vmax.xlane.f32.xlu2 %v844_v13  ;;  %v270_v13 = vld [vmem:[%s2561_s22 + $0xa0] sm:$0xff] }
  0xfb   : > { %2143 = vmatmul.msk.f32.gmra.mxu0 %vm346_vm0, %v270_v13  ;;  %2191 = vmatmul.msk.f32.gmra.mxu1 %vm346_vm0, %v270_v13  ;;  %v341_v13 = vld [vmem:[%s2748_s25 + $0xd8] sm:$0xff] }
  0xfc   : > { %v574_v14 = vpop.f32.mrf.mxu0 }
  0xfd   : > { %v687_v15 = vpop.f32.mrf.mxu1  ;;  %v2649_v16 = vmul.f32 0.25, %v574_v14 }
  0xfe   : > { %v2651_v17 = vmul.f32 0.25, %v687_v15 }
 0x100   : > { %v847_v18 = vmax.f32 %v2649_v16, %v2651_v17 }
 0x102   : > { %848 = vmax.xlane.f32.xlu0 %v847_v18 }
 0x103   : > { %2144 = vmatmul.msk.f32.gmra.mxu0 %vm346_vm0, %v271_v25  ;;  %2192 = vmatmul.msk.f32.gmra.mxu1 %vm346_vm0, %v271_v25 }
 0x104   : > { %v577_v19 = vpop.f32.mrf.mxu0 }
 0x105   : > { %v690_v20 = vpop.f32.mrf.mxu1  ;;  %v2655_v21 = vmul.f32 0.25, %v577_v19 }
 0x106   : > { %v2657_v22 = vmul.f32 0.25, %v690_v20 }
 0x108   : > { %v850_v23 = vmax.f32 %v2655_v21, %v2657_v22 }
 0x10a   : > { %851 = vmax.xlane.f32.xlu2 %v850_v23 }
 0x10c   : > { %v580_v24 = vpop.f32.mrf.mxu0 }
 0x10d   : > { %v693_v26 = vpop.f32.mrf.mxu1  ;;  %v2680_v44 = vmul.f32 0.25, %v580_v24 }
 0x114   : > { %v583_v33 = vpop.f32.mrf.mxu0 }
 0x115   : > { %v696_v35 = vpop.f32.mrf.mxu1 }
 0x11c   : > { %v586_v49 = vpop.f32.mrf.mxu0 }
 0x11d   : > { %v699_v50 = vpop.f32.mrf.mxu1 }
 0x124   : > { %v589_v5 = vpop.f32.mrf.mxu0 }
 0x125   : > { %v702_v9 = vpop.f32.mrf.mxu1 }
 0x145   : > { %v831_v27 = vpop.xlane.xlu0 %830 }
 0x146   : > { %v925_v28 = vsub.f32 %v2598_v45, %v831_v27  ;;  %v926_v29 = vsub.f32 %v2600_v46, %v831_v27  ;;  %v2682_v45 = vmul.f32 0.25, %v693_v26 }
 0x148   : > { %v989_v30 = vmul.f32 1.442695, %v925_v28  ;;  %v991_v31 = vmul.f32 1.442695, %v926_v29  ;;  %v853_v54 = vmax.f32 %v2680_v44, %v2682_v45  ;;  %v592_v28 = vpop.f32.mrf.mxu0  ;;  %v2733_v29 = vmul.f32 0.25, %v702_v9 }
 0x14a   : > { %2233 = vpow2.f32 %v989_v30 }
 0x14b   : > { %2235 = vpow2.f32 %v991_v31 }
 0x14d   : > { %v834_v34 = vpop.xlane.xlu0 %833 }
 0x14e   : > { %v927_v36 = vsub.f32 %v2607_v51, %v834_v34  ;;  %v928_v37 = vsub.f32 %v2609_v52, %v834_v34 }
 0x150   : > { %v2671_v38 = vpop.eup %2233  ;;  %v993_v39 = vmul.f32 1.442695, %v927_v36  ;;  %v995_v40 = vmul.f32 1.442695, %v928_v37  ;;  %v272_v37 = vld [vmem:[%s2561_s22 + $0xb0] sm:$0xff] }
 0x151   : > { %v2673_v41 = vpop.eup %2235  ;;  %2145 = vmatmul.msk.f32.gmra.mxu0 %vm346_vm0, %v272_v37  ;;  %2193 = vmatmul.msk.f32.gmra.mxu1 %vm346_vm0, %v272_v37 }
 0x152   : > { %2237 = vpow2.f32 %v993_v39  ;;  %v1117_v42 = vadd.f32 %v2673_v41, %v2671_v38 }
 0x153   : > { %2239 = vpow2.f32 %v995_v40 }
 0x154   : > { %1118 = vadd.xlane.f32.xlu1 %v1117_v42  ;;  %v595_v42 = vpop.f32.mrf.mxu0 }
 0x155   : > { %v837_v46 = vpop.xlane.xlu1 %836 }
 0x156   : > { %v929_v47 = vsub.f32 %v2616_v57, %v837_v46  ;;  %v930_v48 = vsub.f32 %v2618_v58, %v837_v46  ;;  %v2697_v57 = vmul.f32 0.25, %v583_v33  ;;  %v2699_v58 = vmul.f32 0.25, %v696_v35  ;;  %v345_v46 = vld [vmem:[%s2748_s25 + $0xf8] sm:$0xff] }
 0x157   : > { %1838 = vmatpush.msra.mxu3 %v345_v46 }
 0x158   : > { %v2686_v51 = vpop.eup %2237  ;;  %v997_v52 = vmul.f32 1.442695, %v929_v47  ;;  %v999_v53 = vmul.f32 1.442695, %v930_v48  ;;  %v856_v4 = vmax.f32 %v2697_v57, %v2699_v58 }
 0x159   : > { %v2690_v55 = vpop.eup %2239 }
 0x15a   : > { %2241 = vpow2.f32 %v997_v52  ;;  %v1120_v56 = vadd.f32 %v2690_v55, %v2686_v51 }
 0x15b   : > { %2243 = vpow2.f32 %v999_v53 }
 0x15c   : > { %1121 = vadd.xlane.f32.xlu0 %v1120_v56  ;;  %854 = vmax.xlane.f32.xlu1 %v853_v54  ;;  %v327_v54 = vld [vmem:[%s2748_s25 + $0x68] sm:$0xff] }
 0x15d   : > { %v840_v60 = vpop.xlane.xlu1 %839  ;;  %v343_v56 = vld [vmem:[%s2748_s25 + $0xe8] sm:$0xff] }
 0x15e   : > { %v931_v61 = vsub.f32 %v2625_v63, %v840_v60  ;;  %v932_v62 = vsub.f32 %v2627_v0, %v840_v60  ;;  %v2714_v63 = vmul.f32 0.25, %v586_v49  ;;  %v2716_v0 = vmul.f32 0.25, %v699_v50  ;;  %v328_v49 = vld [vmem:[%s2748_s25 + $0x70] sm:$0xff] }
 0x15f   : > { %v344_v50 = vld [vmem:[%s2748_s25 + $0xf0] sm:$0xff]  ;;  %1726 = vmatpush.msra.mxu2 %v328_v49  ;;  %v339_v49 = vld [vmem:[%s2748_s25 + $0xc8] sm:$0xff] }
 0x160   : > { %v2703_v1 = vpop.eup %2241  ;;  %v1001_v2 = vmul.f32 1.442695, %v931_v61  ;;  %v1003_v3 = vmul.f32 1.442695, %v932_v62  ;;  %v859_v24 = vmax.f32 %v2714_v63, %v2716_v0  ;;  %1839 = vmatpush.msra.mxu3 %v344_v50  ;;  %v322_v50 = vld [vmem:[%s2748_s25 + $0x40] sm:$0xff] }
 0x161   : > { %v2707_v8 = vpop.eup %2243  ;;  %1727 = vmatpush.msra.mxu2 %v327_v54  ;;  %v337_v54 = vld [vmem:[%s2748_s25 + $0xb8] sm:$0xff] }
 0x162   : > { %2245 = vpow2.f32 %v1001_v2  ;;  %v1123_v10 = vadd.f32 %v2707_v8, %v2703_v1  ;;  %v273_v2 = vld [vmem:[%s2561_s22 + $0xb8] sm:$0xff]  ;;  %1840 = vmatpush.msra.mxu3 %v343_v56  ;;  %v320_v56 = vld [vmem:[%s2748_s25 + $0x30] sm:$0xff] }
 0x163   : > { %2247 = vpow2.f32 %v1003_v3  ;;  %2146 = vmatmul.msk.f32.gmra.mxu0 %vm346_vm0, %v273_v2  ;;  %2194 = vmatmul.msk.f32.gmra.mxu1 %vm346_vm0, %v273_v2  ;;  %v318_v2 = vld [vmem:[%s2748_s25 + $0x20] sm:$0xff] }
 0x164   : > { %1124 = vadd.xlane.f32.xlu2 %v1123_v10  ;;  %857 = vmax.xlane.f32.xlu0 %v856_v4  ;;  %v342_v4 = vld [vmem:[%s2748_s25 + $0xe0] sm:$0xff]  ;;  %v325_v10 = vld [vmem:[%s2748_s25 + $0x58] sm:$0xff] }
 0x165   : > { %v843_v14 = vpop.xlane.xlu2 %842  ;;  %1841 = vmatpush.msra.mxu3 %v342_v4  ;;  %v333_v4 = vld [vmem:[%s2748_s25 + $0x98] sm:$0xff] }
 0x166   : > { %v933_v15 = vsub.f32 %v2635_v6, %v843_v14  ;;  %v934_v18 = vsub.f32 %v2637_v7, %v843_v14  ;;  %v705_v6 = vpop.f32.mrf.mxu1  ;;  %v2731_v7 = vmul.f32 0.25, %v589_v5  ;;  %v2779_v5 = vmul.f32 0.25, %v595_v42 }
 0x167   : > { %v2756_v40 = vmul.f32 0.25, %v705_v6  ;;  %1842 = vmatpush.msra.mxu3 %v341_v13  ;;  %v332_v13 = vld [vmem:[%s2748_s25 + $0x90] sm:$0xff] }
 0x168   : > { %v2720_v19 = vpop.eup %2245  ;;  %v1005_v20 = vmul.f32 1.442695, %v933_v15  ;;  %v1007_v23 = vmul.f32 1.442695, %v934_v18  ;;  %v862_v36 = vmax.f32 %v2731_v7, %v2733_v29 }
 0x169   : > { %v2725_v26 = vpop.eup %2247 }
 0x16a   : > { %2249 = vpow2.f32 %v1005_v20  ;;  %v1126_v27 = vadd.f32 %v2725_v26, %v2720_v19  ;;  %v324_v20 = vld [vmem:[%s2748_s25 + $0x50] sm:$0xff] }
 0x16b   : > { %2251 = vpow2.f32 %v1007_v23  ;;  %v340_v23 = vld [vmem:[%s2748_s25 + $0xd0] sm:$0xff] }
 0x16c   : > { %1127 = vadd.xlane.f32.xlu1 %v1126_v27  ;;  %860 = vmax.xlane.f32.xlu2 %v859_v24  ;;  %v598_v24 = vpop.f32.mrf.mxu0 }
 0x16d   : > { %v846_v30 = vpop.xlane.xlu2 %845  ;;  %1843 = vmatpush.msra.mxu3 %v340_v23 }
 0x16e   : > { %v935_v31 = vsub.f32 %v2643_v11, %v846_v30  ;;  %v936_v32 = vsub.f32 %v2645_v12, %v846_v30  ;;  %v2754_v12 = vmul.f32 0.25, %v592_v28  ;;  %v708_v48 = vpop.f32.mrf.mxu1 }
 0x16f   : > { %v2781_v9 = vmul.f32 0.25, %v708_v48  ;;  %v323_v48 = vld [vmem:[%s2748_s25 + $0x48] sm:$0xff]  ;;  %1844 = vmatpush.msra.mxu3 %v339_v49 }
 0x170   : > { %v2737_v33 = vpop.eup %2249  ;;  %v1009_v34 = vmul.f32 1.442695, %v935_v31  ;;  %v1011_v35 = vmul.f32 1.442695, %v936_v32  ;;  %v865_v62 = vmax.f32 %v2754_v12, %v2756_v40 }
 0x171   : > { %v2742_v39 = vpop.eup %2251  ;;  %v868_v30 = vmax.f32 %v2779_v5, %v2781_v9 }
 0x172   : > { %2253 = vpow2.f32 %v1009_v34  ;;  %v1129_v11 = vadd.f32 %v2742_v39, %v2737_v33 }
 0x173   : > { %2255 = vpow2.f32 %v1011_v35 }
 0x174   : > { %1130 = vadd.xlane.f32.xlu0 %v1129_v11  ;;  %863 = vmax.xlane.f32.xlu1 %v862_v36  ;;  %v601_v37 = vpop.f32.mrf.mxu0 }
 0x175   : > { %v849_v47 = vpop.xlane.xlu0 %848  ;;  %v2809_v43 = vmul.f32 0.25, %v601_v37 }
 0x176   : > { %v937_v52 = vsub.f32 %v2649_v16, %v849_v47  ;;  %v938_v53 = vsub.f32 %v2651_v17, %v849_v47  ;;  %v326_v17 = vld [vmem:[%s2748_s25 + $0x60] sm:$0xff]  ;;  %v711_v25 = vpop.f32.mrf.mxu1 }
 0x177   : > { %1728 = vmatpush.msra.mxu2 %v326_v17  ;;  %v2799_v32 = vmul.f32 0.25, %v711_v25  ;;  %v317_v17 = vld [vmem:[%s2748_s25 + $0x18] sm:$0xff] }
 0x178   : > { %v2766_v59 = vpop.eup %2253  ;;  %v1013_v60 = vmul.f32 1.442695, %v937_v52  ;;  %v1015_v61 = vmul.f32 1.442695, %v938_v53  ;;  %v338_v52 = vld [vmem:[%s2748_s25 + $0xc0] sm:$0xff]  ;;  %v321_v53 = vld [vmem:[%s2748_s25 + $0x38] sm:$0xff] }
 0x179   : > { %v2771_v3 = vpop.eup %2255  ;;  %1729 = vmatpush.msra.mxu2 %v325_v10  ;;  %1845 = vmatpush.msra.mxu3 %v338_v52  ;;  %v316_v10 = vld [vmem:[%s2748_s25 + $0x10] sm:$0xff] }
 0x17a   : > { %2257 = vpow2.f32 %v1013_v60  ;;  %v1132_v16 = vadd.f32 %v2771_v3, %v2766_v59  ;;  %v336_v60 = vld [vmem:[%s2748_s25 + $0xb0] sm:$0xff] }
 0x17b   : > { %2259 = vpow2.f32 %v1015_v61  ;;  %1730 = vmatpush.msra.mxu2 %v324_v20  ;;  %1846 = vmatpush.msra.mxu3 %v337_v54  ;;  %v319_v61 = vld [vmem:[%s2748_s25 + $0x28] sm:$0xff]  ;;  %v330_v20 = vld [vmem:[%s2748_s25 + $0x80] sm:$0xff] }
 0x17c   : > { %1133 = vadd.xlane.f32.xlu2 %v1132_v16  ;;  %866 = vmax.xlane.f32.xlu0 %v865_v62  ;;  %v335_v62 = vld [vmem:[%s2748_s25 + $0xa8] sm:$0xff]  ;;  %v334_v16 = vld [vmem:[%s2748_s25 + $0xa0] sm:$0xff] }
 0x17d   : > { %v852_v14 = vpop.xlane.xlu2 %851  ;;  %1731 = vmatpush.msra.mxu2 %v323_v48  ;;  %1847 = vmatpush.msra.mxu3 %v336_v60 }
 0x17e   : > { %v939_v15 = vsub.f32 %v2655_v21, %v852_v14  ;;  %v940_v18 = vsub.f32 %v2657_v22, %v852_v14  ;;  %v2797_v22 = vmul.f32 0.25, %v598_v24  ;;  %v714_v11 = vpop.f32.mrf.mxu1  ;;  %v315_v14 = vld [vmem:[%s2748_s25 + $0x8] sm:$0xff]  ;;  %v604_v24 = vpop.f32.mrf.mxu0 }
 0x17f   : > { %v2811_v46 = vmul.f32 0.25, %v714_v11  ;;  %1732 = vmatpush.msra.mxu2 %v322_v50  ;;  %1848 = vmatpush.msra.mxu3 %v335_v62 }
 0x180   : > { %v2789_v27 = vpop.eup %2257  ;;  %v1017_v28 = vmul.f32 1.442695, %v939_v15  ;;  %v1019_v6 = vmul.f32 1.442695, %v940_v18  ;;  %v871_v35 = vmax.f32 %v2797_v22, %v2799_v32  ;;  %v331_v15 = vld [vmem:[%s2748_s25 + $0x88] sm:$0xff]  ;;  %v314_v18 = vld [vmem:[%s2748_s25] sm:$0xff] }
 0x181   : > { %v2793_v31 = vpop.eup %2259  ;;  %v874_v47 = vmax.f32 %v2809_v43, %v2811_v46  ;;  %1733 = vmatpush.msra.mxu2 %v321_v53  ;;  %1849 = vmatpush.msra.mxu3 %v334_v16 }
 0x182   : > { %2261 = vpow2.f32 %v1017_v28  ;;  %v1135_v21 = vadd.f32 %v2793_v31, %v2789_v27 }
 0x183   : > { %2263 = vpow2.f32 %v1019_v6  ;;  %1734 = vmatpush.msra.mxu2 %v320_v56  ;;  %1850 = vmatpush.msra.mxu3 %v333_v4  ;;  %v274_v6 = vld [vmem:[%s2561_s22 + $0xc0] sm:$0xff] }
 0x184   : > { %1136 = vadd.xlane.f32.xlu1 %v1135_v21  ;;  %869 = vmax.xlane.f32.xlu2 %v868_v30 }
 0x185   : > { %1735 = vmatpush.msra.mxu2 %v319_v61  ;;  %1851 = vmatpush.msra.mxu3 %v332_v13  ;;  %v275_v61 = vld [vmem:[%s2561_s22 + $0xc8] sm:$0xff] }
 0x186   : > { %v717_v25 = vpop.f32.mrf.mxu1  ;;  %2147 = vmatmul.msk.f32.gmra.mxu0 %vm346_vm0, %v274_v6  ;;  %2195 = vmatmul.msk.f32.gmra.mxu1 %vm346_vm0, %v274_v6  ;;  %v2847_v60 = vpop.f32.mrf.mxu0 }
 0x187   : > { %1736 = vmatpush.msra.mxu2 %v318_v2  ;;  %1852 = vmatpush.msra.mxu3 %v331_v15 }
 0x188   : > { %v2801_v34 = vpop.eup %2261 }
 0x189   : > { %v2805_v36 = vpop.eup %2263  ;;  %1737 = vmatpush.msra.mxu2 %v317_v17  ;;  %1853 = vmatpush.msra.mxu3 %v330_v20 }
 0x18a   : > { %v1138_v42 = vadd.f32 %v2805_v36, %v2801_v34 }
 0x18b   : > { %1738 = vmatpush.msra.mxu2 %v316_v10 }
 0x18c   : > { %1139 = vadd.xlane.f32.xlu0 %v1138_v42  ;;  %872 = vmax.xlane.f32.xlu1 %v871_v35 }
 0x18d   : > { %1739 = vmatpush.msra.mxu2 %v315_v14 }
 0x18e   : > { %2148 = vmatmul.msk.f32.gmra.mxu0 %vm346_vm0, %v275_v61  ;;  %2196 = vmatmul.msk.f32.gmra.mxu1 %vm346_vm0, %v275_v61 }
 0x18f   : > { %1740 = vmatpush.msra.mxu2 %v314_v18 }
 0x194   : > { %875 = vmax.xlane.f32.xlu0 %v874_v47 }
 0x1c7   : > { %v1119_v23 = vpop.xlane.xlu1 %1118 }
 0x1c8   : > { %2265 = vrcp.f32 %v1119_v23  ;;  %v1224_v49 = vand.u32 2147483648, %v1119_v23  ;;  %v1222_v52 = vand.u32 2147483647, %v1119_v23  ;;  %vm1218_vm2 = vweird.f32 %v1119_v23 }
 0x1ca   : > { %vm1223_vm4 = vcmp.eq.f32.partialorder %v1222_v52, 8.507059e+37 }
 0x1ce   : > { %v2266_v28 = vpop.eup %2265 }
 0x1cf   : > { %v1214_v30 = vmul.f32 %v2266_v28, %v1119_v23  ;;  %v2836_v21 = vpop.xlane.xlu0 %1121  ;;  %v855_v35 = vpop.xlane.xlu1 %854  ;;  %vm1219_vm1 = vweird.f32 %v2266_v28 }
 0x1d0   : > { %2267 = vrcp.f32 %v2836_v21  ;;  %v941_v37 = vsub.f32 %v2680_v44, %v855_v35  ;;  %v942_v11 = vsub.f32 %v2682_v45, %v855_v35  ;;  %vm2843_vm3 = vmor %vm1218_vm2, %vm1219_vm1  ;;  %v1225_v44 = vor.u32 1.1754944e-38, %v1224_v49  ;;  %v2849_v45 = vpop.f32.mrf.mxu1 }
 0x1d1   : > { %v1215_v42 = vsub.f32 1.0, %v1214_v30  ;;  %v1240_v6 = vand.u32 2147483648, %v2836_v21  ;;  %vm1234_vm6 = vweird.f32 %v2836_v21 }
 0x1d2   : > { %v1021_v47 = vmul.f32 1.442695, %v941_v37  ;;  %v1023_v48 = vmul.f32 1.442695, %v942_v11  ;;  %v2873_v37 = vmul.f32 0.25, %v604_v24  ;;  %v2875_v11 = vmul.f32 0.25, %v717_v25 }
 0x1d3   : > { %v1216_v50 = vmul.f32 %v2266_v28, %v1215_v42  ;;  %v1241_v42 = vor.u32 1.1754944e-38, %v1240_v6 }
 0x1d4   : > { %2269 = vpow2.f32 %v1021_v47  ;;  %v276_v47 = vld [vmem:[%s2561_s22 + $0xd0] sm:$0xff] }
 0x1d5   : > { %2271 = vpow2.f32 %v1023_v48  ;;  %v1217_v53 = vadd.f32 %v2266_v28, %v1216_v50  ;;  %2149 = vmatmul.msk.f32.gmra.mxu0 %vm346_vm0, %v276_v47  ;;  %2197 = vmatmul.msk.f32.gmra.mxu1 %vm346_vm0, %v276_v47 }
 0x1d6   : > { %v2268_v54 = vpop.eup %2267 }
 0x1d7   : > { %v1230_v62 = vmul.f32 %v2268_v54, %v2836_v21  ;;  %v2853_v2 = vpop.xlane.xlu2 %1124  ;;  %v858_v16 = vpop.xlane.xlu0 %857  ;;  %v1221_v17 = vsel %vm2843_vm3, %v2266_v28, %v1217_v53  ;;  %vm1235_vm5 = vweird.f32 %v2268_v54 }
 0x1d8   : > { %2273 = vrcp.f32 %v2853_v2  ;;  %v943_v4 = vsub.f32 %v2697_v57, %v858_v16  ;;  %v944_v10 = vsub.f32 %v2699_v58, %v858_v16  ;;  %v1226_v13 = vsel %vm1223_vm4, %v1225_v44, %v1221_v17  ;;  %vm1236_vm7 = vmor %vm1234_vm6, %vm1235_vm5  ;;  %v2886_v53 = vpop.f32.mrf.mxu0  ;;  %v2888_v56 = vpop.f32.mrf.mxu1 }
 0x1d9   : > { %v1231_v14 = vsub.f32 1.0, %v1230_v62  ;;  %v1227_v15 = vmul.f32 %v2671_v38, %v1226_v13  ;;  %v1228_v18 = vmul.f32 %v2673_v41, %v1226_v13  ;;  %v1238_v57 = vand.u32 2147483647, %v2836_v21 }
 0x1da   : > { %v2864_v20 = vpop.eup %2269  ;;  %v1025_v23 = vmul.f32 1.442695, %v943_v4  ;;  %v1027_v28 = vmul.f32 1.442695, %v944_v10  ;;  %v877_v4 = vmax.f32 %v2873_v37, %v2875_v11  ;;  %vm1250_vm10 = vweird.f32 %v2853_v2 }
 0x1db   : > { %v2867_v30 = vpop.eup %2271  ;;  %v1232_v35 = vmul.f32 %v2268_v54, %v1231_v14  ;;  %1741 = vmatmul.f32.vlgmr.msra.gmra.mxu2 %v1227_v15  ;;  %1854 = vmatmul.f32.vlgmr.msra.gmra.mxu3 %v1228_v18  ;;  %vm1239_vm8 = vcmp.eq.f32.partialorder %v1238_v57, 8.507059e+37  ;;  %v2904_v15 = vmul.f32 0.25, %v2847_v60  ;;  %v2907_v18 = vmul.f32 0.25, %v2849_v45 }
 0x1dc   : > { %2275 = vpow2.f32 %v1025_v23  ;;  %v1141_v38 = vadd.f32 %v2867_v30, %v2864_v20 }
 0x1dd   : > { %2277 = vpow2.f32 %v1027_v28  ;;  %v1233_v41 = vadd.f32 %v2268_v54, %v1232_v35  ;;  %v277_v28 = vld [vmem:[%s2561_s22 + $0xd8] sm:$0xff] }
 0x1de   : > { %v2274_v58 = vpop.eup %2273  ;;  %1142 = vadd.xlane.f32.xlu2 %v1141_v38  ;;  %2150 = vmatmul.msk.f32.gmra.mxu0 %vm346_vm0, %v277_v28 }
 0x1df   : > { %v1246_v48 = vmul.f32 %v2274_v58, %v2853_v2  ;;  %v2879_v49 = vpop.xlane.xlu1 %1127  ;;  %v861_v50 = vpop.xlane.xlu2 %860  ;;  %v1237_v52 = vsel %vm1236_vm7, %v2268_v54, %v1233_v41  ;;  %vm1251_vm9 = vweird.f32 %v2274_v58  ;;  %2198 = vmatmul.msk.f32.gmra.mxu1 %vm346_vm0, %v277_v28 }
 0x1e0   : > { %2279 = vrcp.f32 %v2879_v49  ;;  %v945_v24 = vsub.f32 %v2714_v63, %v861_v50  ;;  %v946_v25 = vsub.f32 %v2716_v0, %v861_v50  ;;  %v1242_v21 = vsel %vm1239_vm8, %v1241_v42, %v1237_v52  ;;  %vm1252_vm11 = vmor %vm1250_vm10, %vm1251_vm9 }
 0x1e1   : > { %v1247_v44 = vsub.f32 1.0, %v1246_v48  ;;  %v1243_v61 = vmul.f32 %v2686_v51, %v1242_v21  ;;  %v1244_v54 = vmul.f32 %v2690_v55, %v1242_v21  ;;  %v1256_v63 = vand.u32 2147483648, %v2853_v2 }
 0x1e2   : > { %v2892_v62 = vpop.eup %2275  ;;  %v1029_v16 = vmul.f32 1.442695, %v945_v24  ;;  %v1031_v17 = vmul.f32 1.442695, %v946_v25  ;;  %v1254_v51 = vand.u32 2147483647, %v2853_v2  ;;  %v880_v52 = vmax.f32 %v2904_v15, %v2907_v18  ;;  %v613_v25 = vpop.f32.mrf.mxu0 }
 0x1e3   : > { %v2897_v0 = vpop.eup %2277  ;;  %v1248_v10 = vmul.f32 %v2274_v58, %v1247_v44  ;;  %1744 = vmatmul.f32.gmra.mxu2 %v1243_v61  ;;  %1857 = vmatmul.f32.gmra.mxu3 %v1244_v54  ;;  %v1257_v23 = vor.u32 1.1754944e-38, %v1256_v63  ;;  %v1272_v24 = vand.u32 2147483648, %v2879_v49  ;;  %vm1266_vm14 = vweird.f32 %v2879_v49  ;;  %v278_v61 = vld [vmem:[%s2561_s22 + $0xe0] sm:$0xff] }
 0x1e4   : > { %2281 = vpow2.f32 %v1029_v16  ;;  %v1144_v55 = vadd.f32 %v2897_v0, %v2892_v62  ;;  %vm1255_vm12 = vcmp.eq.f32.partialorder %v1254_v51, 8.507059e+37  ;;  %v2933_v16 = vmul.f32 0.25, %v2886_v53 }
 0x1e5   : > { %2283 = vpow2.f32 %v1031_v17  ;;  %v1249_v13 = vadd.f32 %v2274_v58, %v1248_v10  ;;  %v2936_v17 = vmul.f32 0.25, %v2888_v56 }
 0x1e6   : > { %v2280_v14 = vpop.eup %2279  ;;  %1145 = vadd.xlane.f32.xlu1 %v1144_v55  ;;  %878 = vmax.xlane.f32.xlu2 %v877_v4  ;;  %v1273_v4 = vor.u32 1.1754944e-38, %v1272_v24 }
 0x1e7   : > { %v1262_v6 = vmul.f32 %v2280_v14, %v2879_v49  ;;  %v2911_v35 = vpop.xlane.xlu0 %1130  ;;  %v864_v57 = vpop.xlane.xlu1 %863  ;;  %v1253_v38 = vsel %vm1252_vm11, %v2274_v58, %v1249_v13  ;;  %vm1267_vm13 = vweird.f32 %v2280_v14  ;;  %2151 = vmatmul.msk.f32.gmra.mxu0 %vm346_vm0, %v278_v61  ;;  %2199 = vmatmul.msk.f32.gmra.mxu1 %vm346_vm0, %v278_v61 }
 0x1e8   : > { %2285 = vrcp.f32 %v2911_v35  ;;  %v947_v60 = vsub.f32 %v2731_v7, %v864_v57  ;;  %v948_v45 = vsub.f32 %v2733_v29, %v864_v57  ;;  %v1258_v2 = vsel %vm1255_vm12, %v1257_v23, %v1253_v38  ;;  %v726_v7 = vpop.f32.mrf.mxu1  ;;  %vm1268_vm15 = vmor %vm1266_vm14, %vm1267_vm13 }
 0x1e9   : > { %v1263_v41 = vsub.f32 1.0, %v1262_v6  ;;  %v1259_v42 = vmul.f32 %v2703_v1, %v1258_v2  ;;  %v1260_v47 = vmul.f32 %v2707_v8, %v1258_v2  ;;  %v1270_v1 = vand.u32 2147483647, %v2879_v49 }
 0x1ea   : > { %v2920_v48 = vpop.eup %2281  ;;  %v1033_v58 = vmul.f32 1.442695, %v947_v60  ;;  %v1035_v50 = vmul.f32 1.442695, %v948_v45  ;;  %v883_v38 = vmax.f32 %v2933_v16, %v2936_v17  ;;  %v1288_v60 = vand.u32 2147483648, %v2911_v35 }
 0x1eb   : > { %v2925_v21 = vpop.eup %2283  ;;  %v1264_v29 = vmul.f32 %v2280_v14, %v1263_v41  ;;  %1747 = vmatmul.f32.gmra.mxu2 %v1259_v42  ;;  %1860 = vmatmul.f32.gmra.mxu3 %v1260_v47  ;;  %vm1271_vm1 = vcmp.eq.f32.partialorder %v1270_v1, 8.507059e+37  ;;  %v279_v41 = vld [vmem:[%s2561_s22 + $0xe8] sm:$0xff]  ;;  %vm1282_vm3 = vweird.f32 %v2911_v35 }
 0x1ec   : > { %2287 = vpow2.f32 %v1033_v58  ;;  %v1147_v8 = vadd.f32 %v2925_v21, %v2920_v48  ;;  %v2960_v58 = vmul.f32 0.25, %v613_v25 }
 0x1ed   : > { %2289 = vpow2.f32 %v1035_v50  ;;  %v1265_v44 = vadd.f32 %v2280_v14, %v1264_v29  ;;  %v2962_v50 = vmul.f32 0.25, %v726_v7 }
 0x1ee   : > { %v2286_v54 = vpop.eup %2285  ;;  %1148 = vadd.xlane.f32.xlu0 %v1147_v8  ;;  %881 = vmax.xlane.f32.xlu1 %v880_v52  ;;  %v1289_v52 = vor.u32 1.1754944e-38, %v1288_v60 }
 0x1ef   : > { %v1278_v63 = vmul.f32 %v2286_v54, %v2911_v35  ;;  %v2939_v10 = vpop.xlane.xlu2 %1133  ;;  %v867_v51 = vpop.xlane.xlu0 %866  ;;  %v1269_v55 = vsel %vm1268_vm15, %v2280_v14, %v1265_v44  ;;  %vm1283_vm2 = vweird.f32 %v2286_v54  ;;  %2152 = vmatmul.msk.f32.gmra.mxu0 %vm346_vm0, %v279_v41  ;;  %2200 = vmatmul.msk.f32.gmra.mxu1 %vm346_vm0, %v279_v41 }
 0x1f0   : > { %2291 = vrcp.f32 %v2939_v10  ;;  %v949_v49 = vsub.f32 %v2754_v12, %v867_v51  ;;  %v950_v53 = vsub.f32 %v2756_v40, %v867_v51  ;;  %v1274_v56 = vsel %vm1271_vm1, %v1273_v4, %v1269_v55  ;;  %v616_v40 = vpop.f32.mrf.mxu0  ;;  %v729_v2 = vpop.f32.mrf.mxu1  ;;  %vm1284_vm4 = vmor %vm1282_vm3, %vm1283_vm2 }
 0x1f1   : > { %v1279_v13 = vsub.f32 1.0, %v1278_v63  ;;  %v1275_v23 = vmul.f32 %v2720_v19, %v1274_v56  ;;  %v1276_v28 = vmul.f32 %v2725_v26, %v1274_v56  ;;  %v1286_v19 = vand.u32 2147483647, %v2911_v35 }
 0x1f2   : > { %v2948_v6 = vpop.eup %2287  ;;  %v1037_v14 = vmul.f32 1.442695, %v949_v49  ;;  %v1039_v57 = vmul.f32 1.442695, %v950_v53  ;;  %v886_v55 = vmax.f32 %v2960_v58, %v2962_v50  ;;  %v1304_v49 = vand.u32 2147483648, %v2939_v10 }
 0x1f3   : > { %v2953_v45 = vpop.eup %2289  ;;  %v1280_v12 = vmul.f32 %v2286_v54, %v1279_v13  ;;  %1750 = vmatmul.f32.gmra.mxu2 %v1275_v23  ;;  %1863 = vmatmul.f32.gmra.mxu3 %v1276_v28  ;;  %vm1287_vm5 = vcmp.eq.f32.partialorder %v1286_v19, 8.507059e+37  ;;  %vm1298_vm7 = vweird.f32 %v2939_v10  ;;  %v2987_v23 = vmul.f32 0.25, %v616_v40 }
 0x1f4   : > { %2293 = vpow2.f32 %v1037_v14  ;;  %v1150_v26 = vadd.f32 %v2953_v45, %v2948_v6  ;;  %v2989_v28 = vmul.f32 0.25, %v729_v2  ;;  %v1305_v14 = vor.u32 1.1754944e-38, %v1304_v49 }
 0x1f5   : > { %2295 = vpow2.f32 %v1039_v57  ;;  %v1281_v42 = vadd.f32 %v2286_v54, %v1280_v12 }
 0x1f6   : > { %v2292_v47 = vpop.eup %2291  ;;  %1151 = vadd.xlane.f32.xlu2 %v1150_v26  ;;  %884 = vmax.xlane.f32.xlu0 %v883_v38 }
 0x1f7   : > { %v1294_v24 = vmul.f32 %v2292_v47, %v2939_v10  ;;  %v2966_v29 = vpop.xlane.xlu1 %1136  ;;  %v870_v1 = vpop.xlane.xlu2 %869  ;;  %v1285_v8 = vsel %vm1284_vm4, %v2286_v54, %v1281_v42  ;;  %vm1299_vm6 = vweird.f32 %v2292_v47 }
 0x1f8   : > { %2297 = vrcp.f32 %v2966_v29  ;;  %v951_v35 = vsub.f32 %v2779_v5, %v870_v1  ;;  %v952_v25 = vsub.f32 %v2781_v9, %v870_v1  ;;  %v1290_v7 = vsel %vm1287_vm5, %v1289_v52, %v1285_v8  ;;  %vm1300_vm8 = vmor %vm1298_vm7, %vm1299_vm6  ;;  %v619_v57 = vpop.f32.mrf.mxu0  ;;  %v732_v38 = vpop.f32.mrf.mxu1 }
 0x1f9   : > { %v1295_v44 = vsub.f32 1.0, %v1294_v24  ;;  %v1291_v61 = vmul.f32 %v2737_v33, %v1290_v7  ;;  %v1292_v4 = vmul.f32 %v2742_v39, %v1290_v7  ;;  %v1302_v9 = vand.u32 2147483647, %v2939_v10  ;;  %v280_v39 = vld [vmem:[%s2561_s22 + $0xf0] sm:$0xff] }
 0x1fa   : > { %v2975_v63 = vpop.eup %2293  ;;  %v1041_v54 = vmul.f32 1.442695, %v951_v35  ;;  %v1043_v51 = vmul.f32 1.442695, %v952_v25  ;;  %2153 = vmatmul.msk.f32.gmra.mxu0 %vm346_vm0, %v280_v39  ;;  %2201 = vmatmul.msk.f32.gmra.mxu1 %vm346_vm0, %v280_v39  ;;  %v889_v8 = vmax.f32 %v2987_v23, %v2989_v28  ;;  %v1320_v35 = vand.u32 2147483648, %v2966_v29 }
 0x1fb   : > { %v2980_v53 = vpop.eup %2295  ;;  %v1296_v5 = vmul.f32 %v2292_v47, %v1295_v44  ;;  %1753 = vmatmul.f32.gmra.mxu2 %v1291_v61  ;;  %1866 = vmatmul.f32.gmra.mxu3 %v1292_v4  ;;  %vm1303_vm9 = vcmp.eq.f32.partialorder %v1302_v9, 8.507059e+37  ;;  %vm1314_vm11 = vweird.f32 %v2966_v29  ;;  %v3013_v61 = vmul.f32 0.25, %v619_v57 }
 0x1fc   : > { %2299 = vpow2.f32 %v1041_v54  ;;  %v1153_v33 = vadd.f32 %v2980_v53, %v2975_v63  ;;  %v3015_v4 = vmul.f32 0.25, %v732_v38  ;;  %v1321_v54 = vor.u32 1.1754944e-38, %v1320_v35 }
 0x1fd   : > { %2301 = vpow2.f32 %v1043_v51  ;;  %v1297_v56 = vadd.f32 %v2292_v47, %v1296_v5 }
 0x1fe   : > { %v2298_v13 = vpop.eup %2297  ;;  %1154 = vadd.xlane.f32.xlu1 %v1153_v33  ;;  %887 = vmax.xlane.f32.xlu2 %v886_v55 }
 0x1ff   : > { %v1310_v60 = vmul.f32 %v2298_v13, %v2966_v29  ;;  %v2992_v12 = vpop.xlane.xlu0 %1139  ;;  %v873_v19 = vpop.xlane.xlu1 %872  ;;  %v1301_v26 = vsel %vm1300_vm8, %v2292_v47, %v1297_v56  ;;  %vm1315_vm10 = vweird.f32 %v2298_v13 }
 0x200   : > { %2303 = vrcp.f32 %v2992_v12  ;;  %v953_v10 = vsub.f32 %v2797_v22, %v873_v19  ;;  %v954_v40 = vsub.f32 %v2799_v32, %v873_v19  ;;  %v1306_v2 = vsel %vm1303_vm9, %v1305_v14, %v1301_v26  ;;  %vm1316_vm12 = vmor %vm1314_vm11, %vm1315_vm10  ;;  %v622_v14 = vpop.f32.mrf.mxu0  ;;  %v735_v57 = vpop.f32.mrf.mxu1 }
 0x201   : > { %v1311_v41 = vsub.f32 1.0, %v1310_v60  ;;  %v1307_v42 = vmul.f32 %v2766_v59, %v1306_v2  ;;  %v1308_v52 = vmul.f32 %v2771_v3, %v1306_v2  ;;  %v1318_v32 = vand.u32 2147483647, %v2966_v29  ;;  %v281_v3 = vld [vmem:[%s2561_s22 + $0xf8] sm:$0xff] }
 0x202   : > { %v3001_v24 = vpop.eup %2299  ;;  %v1045_v47 = vmul.f32 1.442695, %v953_v10  ;;  %v1047_v1 = vmul.f32 1.442695, %v954_v40  ;;  %2154 = vmatmul.msk.f32.gmra.mxu0 %vm346_vm0, %v281_v3  ;;  %2202 = vmatmul.msk.f32.gmra.mxu1 %vm346_vm0, %v281_v3  ;;  %v892_v19 = vmax.f32 %v3013_v61, %v3015_v4  ;;  %v1336_v26 = vand.u32 2147483648, %v2992_v12 }
 0x203   : > { %v3006_v25 = vpop.eup %2301  ;;  %v1312_v22 = vmul.f32 %v2298_v13, %v1311_v41  ;;  %1756 = vmatmul.f32.gmra.mxu2 %v1307_v42  ;;  %1869 = vmatmul.f32.gmra.mxu3 %v1308_v52  ;;  %vm1319_vm13 = vcmp.eq.f32.partialorder %v1318_v32, 8.507059e+37  ;;  %vm1330_vm15 = vweird.f32 %v2992_v12  ;;  %v3035_v40 = vmul.f32 0.25, %v622_v14 }
 0x204   : > { %2305 = vpow2.f32 %v1045_v47  ;;  %v1156_v59 = vadd.f32 %v3006_v25, %v3001_v24  ;;  %v3037_v2 = vmul.f32 0.25, %v735_v57  ;;  %v1337_v41 = vor.u32 1.1754944e-38, %v1336_v26 }
 0x205   : > { %2307 = vpow2.f32 %v1047_v1  ;;  %v1313_v7 = vadd.f32 %v2298_v13, %v1312_v22 }
 0x206   : > { %v2304_v44 = vpop.eup %2303  ;;  %1157 = vadd.xlane.f32.xlu0 %v1156_v59  ;;  %890 = vmax.xlane.f32.xlu1 %v889_v8 }
 0x207   : > { %v1326_v51 = vmul.f32 %v2304_v44, %v2992_v12  ;;  %v876_v55 = vpop.xlane.xlu0 %875  ;;  %v1317_v49 = vsel %vm1316_vm12, %v2298_v13, %v1313_v7  ;;  %vm1331_vm14 = vweird.f32 %v2304_v44 }
 0x208   : > { %v955_v29 = vsub.f32 %v2809_v43, %v876_v55  ;;  %v956_v5 = vsub.f32 %v2811_v46, %v876_v55  ;;  %v1322_v9 = vsel %vm1319_vm13, %v1321_v54, %v1317_v49  ;;  %vm1332_vm1 = vmor %vm1330_vm15, %vm1331_vm14  ;;  %v625_v22 = vpop.f32.mrf.mxu0  ;;  %v738_v32 = vpop.f32.mrf.mxu1 }
 0x209   : > { %v1327_v33 = vsub.f32 1.0, %v1326_v51  ;;  %v1323_v39 = vmul.f32 %v2789_v27, %v1322_v9  ;;  %v1324_v56 = vmul.f32 %v2793_v31, %v1322_v9  ;;  %v1334_v27 = vand.u32 2147483647, %v2992_v12 }
 0x20a   : > { %v3024_v38 = vpop.eup %2305  ;;  %v1049_v13 = vmul.f32 1.442695, %v955_v29  ;;  %v1051_v60 = vmul.f32 1.442695, %v956_v5  ;;  %v895_v12 = vmax.f32 %v3035_v40, %v3037_v2  ;;  %v3049_v3 = vmul.f32 0.25, %v625_v22 }
 0x20b   : > { %v3029_v43 = vpop.eup %2307  ;;  %v1328_v46 = vmul.f32 %v2304_v44, %v1327_v33  ;;  %1759 = vmatmul.f32.gmra.mxu2 %v1323_v39  ;;  %1872 = vmatmul.f32.gmra.mxu3 %v1324_v56  ;;  %vm1335_vm2 = vcmp.eq.f32.partialorder %v1334_v27, 8.507059e+37 }
 0x20c   : > { %2309 = vpow2.f32 %v1049_v13  ;;  %v1159_v31 = vadd.f32 %v3029_v43, %v3024_v38 }
 0x20d   : > { %2311 = vpow2.f32 %v1051_v60  ;;  %v1329_v10 = vadd.f32 %v2304_v44, %v1328_v46 }
 0x20e   : > { %1160 = vadd.xlane.f32.xlu2 %v1159_v31  ;;  %893 = vmax.xlane.f32.xlu0 %v892_v19 }
 0x20f   : > { %v1333_v42 = vsel %vm1332_vm1, %v2304_v44, %v1329_v10 }
 0x210   : > { %v1338_v52 = vsel %vm1335_vm2, %v1337_v41, %v1333_v42  ;;  %v628_v44 = vpop.f32.mrf.mxu0  ;;  %v741_v54 = vpop.f32.mrf.mxu1 }
 0x211   : > { %v1339_v47 = vmul.f32 %v2801_v34, %v1338_v52  ;;  %v1340_v1 = vmul.f32 %v2805_v36, %v1338_v52  ;;  %v3051_v34 = vmul.f32 0.25, %v738_v32 }
 0x212   : > { %v3041_v8 = vpop.eup %2309 }
 0x213   : > { %v3045_v35 = vpop.eup %2311  ;;  %1762 = vmatmul.f32.gmra.mxu2 %v1339_v47  ;;  %1875 = vmatmul.f32.gmra.mxu3 %v1340_v1  ;;  %v898_v36 = vmax.f32 %v3049_v3, %v3051_v34 }
 0x214   : > { %v1162_v59 = vadd.f32 %v3045_v35, %v3041_v8 }
 0x216   : > { %1163 = vadd.xlane.f32.xlu1 %v1162_v59  ;;  %896 = vmax.xlane.f32.xlu2 %v895_v12 }
 0x218   : > { %v3060_v60 = vpop.f32.mrf.mxu0  ;;  %v3062_v19 = vpop.f32.mrf.mxu1 }
 0x21e   : > { %899 = vmax.xlane.f32.xlu1 %v898_v36 }
 0x251   : > { %v1143_v7 = vpop.xlane.xlu2 %1142 }
 0x252   : > { %2313 = vrcp.f32 %v1143_v7  ;;  %v1352_v14 = vand.u32 2147483648, %v1143_v7  ;;  %v1350_v13 = vand.u32 2147483647, %v1143_v7  ;;  %vm1346_vm4 = vweird.f32 %v1143_v7 }
 0x254   : > { %v1353_v31 = vor.u32 1.1754944e-38, %v1352_v14  ;;  %vm1351_vm6 = vcmp.eq.f32.partialorder %v1350_v13, 8.507059e+37  ;;  %v3091_v14 = vmul.f32 0.25, %v741_v54  ;;  %v3093_v13 = vpop.f32.mrf.mxu0 }
 0x258   : > { %v2314_v51 = vpop.eup %2313 }
 0x259   : > { %v1342_v55 = vmul.f32 %v2314_v51, %v1143_v7  ;;  %v3055_v49 = vpop.xlane.xlu1 %1145  ;;  %v879_v29 = vpop.xlane.xlu2 %878  ;;  %vm1347_vm3 = vweird.f32 %v2314_v51 }
 0x25a   : > { %2315 = vrcp.f32 %v3055_v49  ;;  %v957_v5 = vsub.f32 %v2873_v37, %v879_v29  ;;  %v958_v9 = vsub.f32 %v2875_v11, %v879_v29  ;;  %vm1348_vm5 = vmor %vm1346_vm4, %vm1347_vm3  ;;  %v1368_v29 = vand.u32 2147483648, %v3055_v49 }
 0x25b   : > { %v1343_v33 = vsub.f32 1.0, %v1342_v55  ;;  %vm1362_vm8 = vweird.f32 %v3055_v49 }
 0x25c   : > { %v1053_v39 = vmul.f32 1.442695, %v957_v5  ;;  %v1055_v56 = vmul.f32 1.442695, %v958_v9 }
 0x25d   : > { %v1344_v57 = vmul.f32 %v2314_v51, %v1343_v33 }
 0x25e   : > { %2317 = vpow2.f32 %v1053_v39  ;;  %v1742_v26 = vpop.f32.mrf.mxu2  ;;  %v1855_v37 = vpop.f32.mrf.mxu3 }
 0x25f   : > { %2319 = vpow2.f32 %v1055_v56  ;;  %v1856_v11 = vadd.f32 %v1855_v37, %v1742_v26  ;;  %v1345_v46 = vadd.f32 %v2314_v51, %v1344_v57  ;;  %v3089_v56 = vmul.f32 0.25, %v628_v44  ;;  %v3095_v26 = vpop.f32.mrf.mxu1 }
 0x260   : > { %v2316_v27 = vpop.eup %2315  ;;  %v1369_v57 = vor.u32 1.1754944e-38, %v1368_v29 }
 0x261   : > { %v1358_v10 = vmul.f32 %v2316_v27, %v3055_v49  ;;  %1951 = vst.msk [vmem:[%s3068_s28] sm:$0xff] %vm346_vm0, %v1856_v11  ;;  %v3073_v41 = vpop.xlane.xlu0 %1148  ;;  %v882_v42 = vpop.xlane.xlu1 %881  ;;  %v1349_v52 = vsel %vm1348_vm5, %v2314_v51, %v1345_v46  ;;  %vm1363_vm7 = vweird.f32 %v2316_v27 }
 0x262   : > { %2321 = vrcp.f32 %v3073_v41  ;;  %v959_v47 = vsub.f32 %v2904_v15, %v882_v42  ;;  %v960_v1 = vsub.f32 %v2907_v18, %v882_v42  ;;  %v1354_v12 = vsel %vm1351_vm6, %v1353_v31, %v1349_v52  ;;  %vm1364_vm9 = vmor %vm1362_vm8, %vm1363_vm7 }
 0x263   : > { %v1359_v22 = vsub.f32 1.0, %v1358_v10  ;;  %v1355_v32 = vmul.f32 %v2864_v20, %v1354_v12  ;;  %v1356_v59 = vmul.f32 %v2867_v30, %v1354_v12  ;;  %v1366_v15 = vand.u32 2147483647, %v3055_v49 }
 0x264   : > { %v3080_v36 = vpop.eup %2317  ;;  %v1057_v7 = vmul.f32 1.442695, %v959_v47  ;;  %v1059_v55 = vmul.f32 1.442695, %v960_v1  ;;  %vm1378_vm12 = vweird.f32 %v3073_v41 }
 0x265   : > { %v3083_v51 = vpop.eup %2319  ;;  %v1360_v5 = vmul.f32 %v2316_v27, %v1359_v22  ;;  %1765 = vmatmul.f32.gmra.mxu2 %v1355_v32  ;;  %1878 = vmatmul.f32.gmra.mxu3 %v1356_v59  ;;  %vm1367_vm10 = vcmp.eq.f32.partialorder %v1366_v15, 8.507059e+37  ;;  %v1384_v22 = vand.u32 2147483648, %v3073_v41  ;;  %v3122_v15 = vmul.f32 0.25, %v3062_v19 }
 0x266   : > { %2323 = vpow2.f32 %v1057_v7  ;;  %v1745_v18 = vpop.f32.mrf.mxu2  ;;  %v1858_v20 = vpop.f32.mrf.mxu3  ;;  %v1165_v30 = vadd.f32 %v3083_v51, %v3080_v36 }
 0x267   : > { %2325 = vpow2.f32 %v1059_v55  ;;  %v1859_v9 = vadd.f32 %v1858_v20, %v1745_v18  ;;  %v1361_v33 = vadd.f32 %v2316_v27, %v1360_v5  ;;  %v3119_v5 = vmul.f32 0.25, %v3060_v60 }
 0x268   : > { %v2322_v39 = vpop.eup %2321  ;;  %1166 = vadd.xlane.f32.xlu0 %v1165_v30  ;;  %v1385_v18 = vor.u32 1.1754944e-38, %v1384_v22 }
 0x269   : > { %v1374_v37 = vmul.f32 %v2322_v39, %v3073_v41  ;;  %1952 = vst.msk [vmem:[%s3068_s28 + $0x8] sm:$0xff] %vm346_vm0, %v1859_v9  ;;  %v3100_v11 = vpop.xlane.xlu2 %1151  ;;  %v885_v46 = vpop.xlane.xlu0 %884  ;;  %v1365_v49 = vsel %vm1364_vm9, %v2316_v27, %v1361_v33  ;;  %v901_v27 = vmax.f32 %v3089_v56, %v3091_v14  ;;  %vm1379_vm11 = vweird.f32 %v2322_v39 }
 0x26a   : > { %2327 = vrcp.f32 %v3100_v11  ;;  %v961_v44 = vsub.f32 %v2933_v16, %v885_v46  ;;  %v962_v54 = vsub.f32 %v2936_v17, %v885_v46  ;;  %v1370_v31 = vsel %vm1367_vm10, %v1369_v57, %v1365_v49  ;;  %vm1380_vm13 = vmor %vm1378_vm12, %vm1379_vm11  ;;  %v3135_v49 = vpop.f32.mrf.mxu0 }
 0x26b   : > { %v1375_v10 = vsub.f32 1.0, %v1374_v37  ;;  %v1371_v42 = vmul.f32 %v2892_v62, %v1370_v31  ;;  %v1372_v52 = vmul.f32 %v2897_v0, %v1370_v31  ;;  %v1382_v17 = vand.u32 2147483647, %v3073_v41 }
 0x26c   : > { %v3107_v47 = vpop.eup %2323  ;;  %v1061_v1 = vmul.f32 1.442695, %v961_v44  ;;  %v1063_v12 = vmul.f32 1.442695, %v962_v54  ;;  %v3137_v44 = vpop.f32.mrf.mxu1  ;;  %vm1394_vm1 = vweird.f32 %v3100_v11 }
 0x26d   : > { %v3112_v32 = vpop.eup %2325  ;;  %v1376_v16 = vmul.f32 %v2322_v39, %v1375_v10  ;;  %1768 = vmatmul.f32.gmra.mxu2 %v1371_v42  ;;  %1881 = vmatmul.f32.gmra.mxu3 %v1372_v52  ;;  %vm1383_vm14 = vcmp.eq.f32.partialorder %v1382_v17, 8.507059e+37  ;;  %v904_v10 = vmax.f32 %v3119_v5, %v3122_v15  ;;  %v3154_v17 = vmul.f32 0.25, %v3095_v26 }
 0x26e   : > { %2329 = vpow2.f32 %v1061_v1  ;;  %v1748_v62 = vpop.f32.mrf.mxu2  ;;  %v1861_v0 = vpop.f32.mrf.mxu3  ;;  %v1168_v59 = vadd.f32 %v3112_v32, %v3107_v47 }
 0x26f   : > { %2331 = vpow2.f32 %v1063_v12  ;;  %v1862_v7 = vadd.f32 %v1861_v0, %v1748_v62  ;;  %v1377_v55 = vadd.f32 %v2322_v39, %v1376_v16  ;;  %v3151_v16 = vmul.f32 0.25, %v3093_v13 }
 0x270   : > { %v2328_v29 = vpop.eup %2327  ;;  %1169 = vadd.xlane.f32.xlu2 %v1168_v59  ;;  %902 = vmax.xlane.f32.xlu0 %v901_v27 }
 0x271   : > { %v1390_v20 = vmul.f32 %v2328_v29, %v3100_v11  ;;  %1953 = vst.msk [vmem:[%s3068_s28 + $0x10] sm:$0xff] %vm346_vm0, %v1862_v7  ;;  %v3128_v30 = vpop.xlane.xlu1 %1154  ;;  %v888_v9 = vpop.xlane.xlu2 %887  ;;  %v1381_v41 = vsel %vm1380_vm13, %v2322_v39, %v1377_v55  ;;  %vm1395_vm15 = vweird.f32 %v2328_v29 }
 0x272   : > { %2333 = vrcp.f32 %v3128_v30  ;;  %v963_v60 = vsub.f32 %v2960_v58, %v888_v9  ;;  %v964_v33 = vsub.f32 %v2962_v50, %v888_v9  ;;  %v1386_v19 = vsel %vm1383_vm14, %v1385_v18, %v1381_v41  ;;  %vm1396_vm2 = vmor %vm1394_vm1, %vm1395_vm15 }
 0x273   : > { %v1391_v57 = vsub.f32 1.0, %v1390_v20  ;;  %v1387_v37 = vmul.f32 %v2920_v48, %v1386_v19  ;;  %v1388_v46 = vmul.f32 %v2925_v21, %v1386_v19  ;;  %v1400_v58 = vand.u32 2147483648, %v3100_v11 }
 0x274   : > { %v3139_v54 = vpop.eup %2329  ;;  %v1065_v39 = vmul.f32 1.442695, %v963_v60  ;;  %v1067_v31 = vmul.f32 1.442695, %v964_v33  ;;  %v1398_v48 = vand.u32 2147483647, %v3100_v11  ;;  %vm1410_vm5 = vweird.f32 %v3128_v30 }
 0x275   : > { %v3144_v50 = vpop.eup %2331  ;;  %v1392_v42 = vmul.f32 %v2328_v29, %v1391_v57  ;;  %1771 = vmatmul.f32.gmra.mxu2 %v1387_v37  ;;  %1884 = vmatmul.f32.gmra.mxu3 %v1388_v46  ;;  %v1401_v62 = vor.u32 1.1754944e-38, %v1400_v58  ;;  %v1416_v19 = vand.u32 2147483648, %v3128_v30  ;;  %v753_v37 = vpop.f32.mrf.mxu1 }
 0x276   : > { %2335 = vpow2.f32 %v1065_v39  ;;  %v1751_v21 = vpop.f32.mrf.mxu2  ;;  %v1864_v52 = vpop.f32.mrf.mxu3  ;;  %v1171_v1 = vadd.f32 %v3144_v50, %v3139_v54  ;;  %vm1399_vm3 = vcmp.eq.f32.partialorder %v1398_v48, 8.507059e+37  ;;  %v3182_v48 = vmul.f32 0.25, %v3137_v44 }
 0x277   : > { %2337 = vpow2.f32 %v1067_v31  ;;  %v1865_v12 = vadd.f32 %v1864_v52, %v1751_v21  ;;  %v1393_v27 = vadd.f32 %v2328_v29, %v1392_v42  ;;  %v3179_v42 = vmul.f32 0.25, %v3135_v49 }
 0x278   : > { %v2334_v22 = vpop.eup %2333  ;;  %1172 = vadd.xlane.f32.xlu1 %v1171_v1  ;;  %905 = vmax.xlane.f32.xlu2 %v904_v10  ;;  %v1417_v21 = vor.u32 1.1754944e-38, %v1416_v19  ;;  %v3208_v19 = vmul.f32 0.25, %v753_v37 }
 0x279   : > { %v1406_v0 = vmul.f32 %v2334_v22, %v3128_v30  ;;  %1954 = vst.msk [vmem:[%s3068_s28 + $0x18] sm:$0xff] %vm346_vm0, %v1865_v12  ;;  %v3160_v59 = vpop.xlane.xlu0 %1157  ;;  %v891_v7 = vpop.xlane.xlu1 %890  ;;  %v1397_v11 = vsel %vm1396_vm2, %v2328_v29, %v1393_v27  ;;  %v907_v29 = vmax.f32 %v3151_v16, %v3154_v17  ;;  %vm1411_vm4 = vweird.f32 %v2334_v22 }
 0x27a   : > { %2339 = vrcp.f32 %v3160_v59  ;;  %v965_v13 = vsub.f32 %v2987_v23, %v891_v7  ;;  %v966_v55 = vsub.f32 %v2989_v28, %v891_v7  ;;  %v1402_v26 = vsel %vm1399_vm3, %v1401_v62, %v1397_v11  ;;  %vm1412_vm6 = vmor %vm1410_vm5, %vm1411_vm4 }
 0x27b   : > { %v1407_v18 = vsub.f32 1.0, %v1406_v0  ;;  %v1403_v20 = vmul.f32 %v2948_v6, %v1402_v26  ;;  %v1404_v9 = vmul.f32 %v2953_v45, %v1402_v26  ;;  %v1414_v28 = vand.u32 2147483647, %v3128_v30  ;;  %v640_v6 = vpop.f32.mrf.mxu0 }
 0x27c   : > { %v3167_v41 = vpop.eup %2335  ;;  %v1069_v60 = vmul.f32 1.442695, %v965_v13  ;;  %v1071_v33 = vmul.f32 1.442695, %v966_v55  ;;  %v1432_v26 = vand.u32 2147483648, %v3160_v59  ;;  %vm1426_vm9 = vweird.f32 %v3160_v59 }
 0x27d   : > { %v3172_v57 = vpop.eup %2337  ;;  %v1408_v23 = vmul.f32 %v2334_v22, %v1407_v18  ;;  %1774 = vmatmul.f32.gmra.mxu2 %v1403_v20  ;;  %1887 = vmatmul.f32.gmra.mxu3 %v1404_v9  ;;  %vm1415_vm7 = vcmp.eq.f32.partialorder %v1414_v28, 8.507059e+37 }
 0x27e   : > { %2341 = vpow2.f32 %v1069_v60  ;;  %v1754_v45 = vpop.f32.mrf.mxu2  ;;  %v1867_v46 = vpop.f32.mrf.mxu3  ;;  %v1174_v39 = vadd.f32 %v3172_v57, %v3167_v41 }
 0x27f   : > { %2343 = vpow2.f32 %v1071_v33  ;;  %v1868_v31 = vadd.f32 %v1867_v46, %v1754_v45  ;;  %v1409_v10 = vadd.f32 %v2334_v22, %v1408_v23  ;;  %v1433_v23 = vor.u32 1.1754944e-38, %v1432_v26  ;;  %v756_v45 = vpop.f32.mrf.mxu1 }
 0x280   : > { %v2340_v58 = vpop.eup %2339  ;;  %1175 = vadd.xlane.f32.xlu0 %v1174_v39  ;;  %908 = vmax.xlane.f32.xlu1 %v907_v29  ;;  %v3206_v29 = vmul.f32 0.25, %v640_v6  ;;  %v3234_v26 = vmul.f32 0.25, %v756_v45 }
 0x281   : > { %v1422_v52 = vmul.f32 %v2340_v58, %v3160_v59  ;;  %1955 = vst.msk [vmem:[%s3068_s28 + $0x20] sm:$0xff] %vm346_vm0, %v1868_v31  ;;  %v3188_v1 = vpop.xlane.xlu2 %1160  ;;  %v894_v12 = vpop.xlane.xlu0 %893  ;;  %v1413_v30 = vsel %vm1412_vm6, %v2334_v22, %v1409_v10  ;;  %v910_v22 = vmax.f32 %v3179_v42, %v3182_v48  ;;  %vm1427_vm8 = vweird.f32 %v2340_v58 }
 0x282   : > { %2345 = vrcp.f32 %v3188_v1  ;;  %v967_v49 = vsub.f32 %v3013_v61, %v894_v12  ;;  %v968_v27 = vsub.f32 %v3015_v4, %v894_v12  ;;  %v1418_v44 = vsel %vm1415_vm7, %v1417_v21, %v1413_v30  ;;  %vm1428_vm10 = vmor %vm1426_vm9, %vm1427_vm8 }
 0x283   : > { %v1423_v62 = vsub.f32 1.0, %v1422_v52  ;;  %v1419_v0 = vmul.f32 %v2975_v63, %v1418_v44  ;;  %v1420_v7 = vmul.f32 %v2980_v53, %v1418_v44  ;;  %v1430_v4 = vand.u32 2147483647, %v3160_v59  ;;  %v643_v28 = vpop.f32.mrf.mxu0 }
 0x284   : > { %v3195_v11 = vpop.eup %2341  ;;  %v1073_v13 = vmul.f32 1.442695, %v967_v49  ;;  %v1075_v55 = vmul.f32 1.442695, %v968_v27  ;;  %v1448_v44 = vand.u32 2147483648, %v3188_v1  ;;  %vm1442_vm13 = vweird.f32 %v3188_v1 }
 0x285   : > { %v3200_v18 = vpop.eup %2343  ;;  %v1424_v61 = vmul.f32 %v2340_v58, %v1423_v62  ;;  %1777 = vmatmul.f32.gmra.mxu2 %v1419_v0  ;;  %1890 = vmatmul.f32.gmra.mxu3 %v1420_v7  ;;  %vm1431_vm11 = vcmp.eq.f32.partialorder %v1430_v4, 8.507059e+37 }
 0x286   : > { %2347 = vpow2.f32 %v1073_v13  ;;  %v1757_v63 = vpop.f32.mrf.mxu2  ;;  %v1870_v53 = vpop.f32.mrf.mxu3  ;;  %v1177_v20 = vadd.f32 %v3200_v18, %v3195_v11 }
 0x287   : > { %2349 = vpow2.f32 %v1075_v55  ;;  %v1871_v9 = vadd.f32 %v1870_v53, %v1757_v63  ;;  %v1425_v60 = vadd.f32 %v2340_v58, %v1424_v61  ;;  %v1449_v61 = vor.u32 1.1754944e-38, %v1448_v44 }
 0x288   : > { %v2346_v33 = vpop.eup %2345  ;;  %1178 = vadd.xlane.f32.xlu2 %v1177_v20  ;;  %911 = vmax.xlane.f32.xlu0 %v910_v22  ;;  %v3232_v22 = vmul.f32 0.25, %v643_v28 }
 0x289   : > { %v1438_v46 = vmul.f32 %v2346_v33, %v3188_v1  ;;  %1956 = vst.msk [vmem:[%s3068_s28 + $0x28] sm:$0xff] %vm346_vm0, %v1871_v9  ;;  %v3214_v39 = vpop.xlane.xlu1 %1163  ;;  %v897_v31 = vpop.xlane.xlu2 %896  ;;  %v1429_v59 = vsel %vm1428_vm10, %v2340_v58, %v1425_v60  ;;  %v913_v58 = vmax.f32 %v3206_v29, %v3208_v19  ;;  %vm1443_vm12 = vweird.f32 %v2346_v33 }
 0x28a   : > { %2351 = vrcp.f32 %v3214_v39  ;;  %v969_v6 = vsub.f32 %v3035_v40, %v897_v31  ;;  %v970_v37 = vsub.f32 %v3037_v2, %v897_v31  ;;  %v1434_v10 = vsel %vm1431_vm11, %v1433_v23, %v1429_v59  ;;  %vm1444_vm14 = vmor %vm1442_vm13, %vm1443_vm12 }
 0x28b   : > { %v1439_v21 = vsub.f32 1.0, %v1438_v46  ;;  %v1435_v52 = vmul.f32 %v3001_v24, %v1434_v10  ;;  %v1436_v12 = vmul.f32 %v3006_v25, %v1434_v10  ;;  %v1446_v2 = vand.u32 2147483647, %v3188_v1  ;;  %v646_v45 = vpop.f32.mrf.mxu0  ;;  %v759_v46 = vpop.f32.mrf.mxu1 }
 0x28c   : > { %v3221_v30 = vpop.eup %2347  ;;  %v1077_v49 = vmul.f32 1.442695, %v969_v6  ;;  %v1079_v27 = vmul.f32 1.442695, %v970_v37  ;;  %v1464_v37 = vand.u32 2147483648, %v3214_v39  ;;  %vm1458_vm2 = vweird.f32 %v3214_v39 }
 0x28d   : > { %v3226_v62 = vpop.eup %2349  ;;  %v1440_v40 = vmul.f32 %v2346_v33, %v1439_v21  ;;  %1780 = vmatmul.f32.gmra.mxu2 %v1435_v52  ;;  %1893 = vmatmul.f32.gmra.mxu3 %v1436_v12  ;;  %vm1447_vm15 = vcmp.eq.f32.partialorder %v1446_v2, 8.507059e+37 }
 0x28e   : > { %2353 = vpow2.f32 %v1077_v49  ;;  %v1760_v24 = vpop.f32.mrf.mxu2  ;;  %v1873_v25 = vpop.f32.mrf.mxu3  ;;  %v1180_v0 = vadd.f32 %v3226_v62, %v3221_v30  ;;  %v3255_v49 = vmul.f32 0.25, %v646_v45 }
 0x28f   : > { %2355 = vpow2.f32 %v1079_v27  ;;  %v1874_v7 = vadd.f32 %v1873_v25, %v1760_v24  ;;  %v1441_v13 = vadd.f32 %v2346_v33, %v1440_v40  ;;  %v3257_v27 = vmul.f32 0.25, %v759_v46 }
 0x290   : > { %v2352_v55 = vpop.eup %2351  ;;  %1181 = vadd.xlane.f32.xlu1 %v1180_v0  ;;  %914 = vmax.xlane.f32.xlu2 %v913_v58  ;;  %v1465_v58 = vor.u32 1.1754944e-38, %v1464_v37 }
 0x291   : > { %v1454_v4 = vmul.f32 %v2352_v55, %v3214_v39  ;;  %1957 = vst.msk [vmem:[%s3068_s28 + $0x30] sm:$0xff] %vm346_vm0, %v1874_v7  ;;  %v900_v63 = vpop.xlane.xlu1 %899  ;;  %v1445_v53 = vsel %vm1444_vm14, %v2346_v33, %v1441_v13  ;;  %v916_v33 = vmax.f32 %v3232_v22, %v3234_v26  ;;  %vm1459_vm1 = vweird.f32 %v2352_v55 }
 0x292   : > { %v971_v20 = vsub.f32 %v3049_v3, %v900_v63  ;;  %v972_v1 = vsub.f32 %v3051_v34, %v900_v63  ;;  %v1450_v9 = vsel %vm1447_vm15, %v1449_v61, %v1445_v53  ;;  %vm1460_vm3 = vmor %vm1458_vm2, %vm1459_vm1 }
 0x293   : > { %v1455_v60 = vsub.f32 1.0, %v1454_v4  ;;  %v1451_v23 = vmul.f32 %v3024_v38, %v1450_v9  ;;  %v1452_v28 = vmul.f32 %v3029_v43, %v1450_v9  ;;  %v1462_v38 = vand.u32 2147483647, %v3214_v39  ;;  %v649_v7 = vpop.f32.mrf.mxu0  ;;  %v762_v13 = vpop.f32.mrf.mxu1 }
 0x294   : > { %v3244_v31 = vpop.eup %2353  ;;  %v1081_v59 = vmul.f32 1.442695, %v971_v20  ;;  %v1083_v6 = vmul.f32 1.442695, %v972_v1  ;;  %v919_v39 = vmax.f32 %v3255_v49, %v3257_v27  ;;  %v3271_v61 = vmul.f32 0.25, %v649_v7 }
 0x295   : > { %v3249_v3 = vpop.eup %2355  ;;  %v1456_v34 = vmul.f32 %v2352_v55, %v1455_v60  ;;  %1783 = vmatmul.f32.gmra.mxu2 %v1451_v23  ;;  %1896 = vmatmul.f32.gmra.mxu3 %v1452_v28  ;;  %vm1463_vm4 = vcmp.eq.f32.partialorder %v1462_v38, 8.507059e+37 }
 0x296   : > { %2357 = vpow2.f32 %v1081_v59  ;;  %v1763_v43 = vpop.f32.mrf.mxu2  ;;  %v1876_v10 = vpop.f32.mrf.mxu3  ;;  %v1183_v21 = vadd.f32 %v3249_v3, %v3244_v31 }
 0x297   : > { %2359 = vpow2.f32 %v1083_v6  ;;  %v1877_v52 = vadd.f32 %v1876_v10, %v1763_v43  ;;  %v1457_v12 = vadd.f32 %v2352_v55, %v1456_v34 }
 0x298   : > { %1184 = vadd.xlane.f32.xlu0 %v1183_v21  ;;  %917 = vmax.xlane.f32.xlu1 %v916_v33 }
 0x299   : > { %1958 = vst.msk [vmem:[%s3068_s28 + $0x38] sm:$0xff] %vm346_vm0, %v1877_v52  ;;  %v1461_v44 = vsel %vm1460_vm3, %v2352_v55, %v1457_v12 }
 0x29a   : > { %v1466_v40 = vsel %vm1463_vm4, %v1465_v58, %v1461_v44 }
 0x29b   : > { %v1467_v2 = vmul.f32 %v3041_v8, %v1466_v40  ;;  %v1468_v24 = vmul.f32 %v3045_v35, %v1466_v40  ;;  %v3273_v8 = vmul.f32 0.25, %v762_v13 }
 0x29c   : > { %v3263_v25 = vpop.eup %2357 }
 0x29d   : > { %v3267_v0 = vpop.eup %2359  ;;  %1786 = vmatmul.f32.gmra.mxu2 %v1467_v2  ;;  %1899 = vmatmul.f32.gmra.mxu3 %v1468_v24  ;;  %v922_v35 = vmax.f32 %v3271_v61, %v3273_v8 }
 0x29e   : > { %v1186_v55 = vadd.f32 %v3267_v0, %v3263_v25 }
 0x2a0   : > { %1187 = vadd.xlane.f32.xlu2 %v1186_v55  ;;  %920 = vmax.xlane.f32.xlu0 %v919_v39 }
 0x2a8   : > { %923 = vmax.xlane.f32.xlu2 %v922_v35 }
 0x2db   : > { %v1167_v4 = vpop.xlane.xlu0 %1166 }
 0x2dc   : > { %2361 = vrcp.f32 %v1167_v4  ;;  %v1480_v46 = vand.u32 2147483648, %v1167_v4  ;;  %v1478_v6 = vand.u32 2147483647, %v1167_v4  ;;  %vm1474_vm6 = vweird.f32 %v1167_v4 }
 0x2de   : > { %vm1479_vm8 = vcmp.eq.f32.partialorder %v1478_v6, 8.507059e+37 }
 0x2e2   : > { %v2362_v63 = vpop.eup %2361 }
 0x2e3   : > { %v1470_v53 = vmul.f32 %v2362_v63, %v1167_v4  ;;  %v3277_v20 = vpop.xlane.xlu2 %1169  ;;  %v903_v1 = vpop.xlane.xlu0 %902  ;;  %vm1475_vm5 = vweird.f32 %v2362_v63 }
 0x2e4   : > { %2363 = vrcp.f32 %v3277_v20  ;;  %v973_v9 = vsub.f32 %v3089_v56, %v903_v1  ;;  %v974_v60 = vsub.f32 %v3091_v14, %v903_v1  ;;  %vm1476_vm7 = vmor %vm1474_vm6, %vm1475_vm5  ;;  %v1481_v56 = vor.u32 1.1754944e-38, %v1480_v46 }
 0x2e5   : > { %v1471_v23 = vsub.f32 1.0, %v1470_v53  ;;  %v1496_v55 = vand.u32 2147483648, %v3277_v20  ;;  %vm1490_vm10 = vweird.f32 %v3277_v20 }
 0x2e6   : > { %v1085_v28 = vmul.f32 1.442695, %v973_v9  ;;  %v1087_v45 = vmul.f32 1.442695, %v974_v60 }
 0x2e7   : > { %v1472_v59 = vmul.f32 %v2362_v63, %v1471_v23  ;;  %v1497_v9 = vor.u32 1.1754944e-38, %v1496_v55 }
 0x2e8   : > { %2365 = vpow2.f32 %v1085_v28  ;;  %v1766_v33 = vpop.f32.mrf.mxu2  ;;  %v1879_v37 = vpop.f32.mrf.mxu3 }
 0x2e9   : > { %2367 = vpow2.f32 %v1087_v45  ;;  %v1880_v34 = vadd.f32 %v1879_v37, %v1766_v33  ;;  %v1473_v38 = vadd.f32 %v2362_v63, %v1472_v59 }
 0x2ea   : > { %v2364_v43 = vpop.eup %2363 }
 0x2eb   : > { %v1486_v14 = vmul.f32 %v2364_v43, %v3277_v20  ;;  %1959 = vst.msk [vmem:[%s3068_s28 + $0x40] sm:$0xff] %vm346_vm0, %v1880_v34  ;;  %v3285_v10 = vpop.xlane.xlu1 %1172  ;;  %v906_v21 = vpop.xlane.xlu2 %905  ;;  %v1477_v52 = vsel %vm1476_vm7, %v2362_v63, %v1473_v38  ;;  %vm1491_vm9 = vweird.f32 %v2364_v43 }
 0x2ec   : > { %2369 = vrcp.f32 %v3285_v10  ;;  %v975_v12 = vsub.f32 %v3119_v5, %v906_v21  ;;  %v976_v58 = vsub.f32 %v3122_v15, %v906_v21  ;;  %v1482_v44 = vsel %vm1479_vm8, %v1481_v56, %v1477_v52  ;;  %vm1492_vm11 = vmor %vm1490_vm10, %vm1491_vm9 }
 0x2ed   : > { %v1487_v40 = vsub.f32 1.0, %v1486_v14  ;;  %v1483_v2 = vmul.f32 %v3080_v36, %v1482_v44  ;;  %v1484_v24 = vmul.f32 %v3083_v51, %v1482_v44  ;;  %v1494_v5 = vand.u32 2147483647, %v3277_v20 }
 0x2ee   : > { %v3292_v39 = vpop.eup %2365  ;;  %v1089_v7 = vmul.f32 1.442695, %v975_v12  ;;  %v1091_v13 = vmul.f32 1.442695, %v976_v58  ;;  %v1512_v14 = vand.u32 2147483648, %v3285_v10  ;;  %vm1506_vm14 = vweird.f32 %v3285_v10 }
 0x2ef   : > { %v3295_v35 = vpop.eup %2367  ;;  %v1488_v4 = vmul.f32 %v2364_v43, %v1487_v40  ;;  %1789 = vmatmul.f32.gmra.mxu2 %v1483_v2  ;;  %1902 = vmatmul.f32.gmra.mxu3 %v1484_v24  ;;  %vm1495_vm12 = vcmp.eq.f32.partialorder %v1494_v5, 8.507059e+37 }
 0x2f0   : > { %2371 = vpow2.f32 %v1089_v7  ;;  %v1769_v15 = vpop.f32.mrf.mxu2  ;;  %v1882_v36 = vpop.f32.mrf.mxu3  ;;  %v1189_v51 = vadd.f32 %v3295_v35, %v3292_v39  ;;  %v1513_v44 = vor.u32 1.1754944e-38, %v1512_v14 }
 0x2f1   : > { %2373 = vpow2.f32 %v1091_v13  ;;  %v1883_v63 = vadd.f32 %v1882_v36, %v1769_v15  ;;  %v1489_v53 = vadd.f32 %v2364_v43, %v1488_v4 }
 0x2f2   : > { %v2370_v1 = vpop.eup %2369  ;;  %1190 = vadd.xlane.f32.xlu1 %v1189_v51 }
 0x2f3   : > { %v1502_v60 = vmul.f32 %v2370_v1, %v3285_v10  ;;  %1960 = vst.msk [vmem:[%s3068_s28 + $0x48] sm:$0xff] %vm346_vm0, %v1883_v63  ;;  %v3304_v23 = vpop.xlane.xlu0 %1175  ;;  %v909_v28 = vpop.xlane.xlu1 %908  ;;  %v1493_v45 = vsel %vm1492_vm11, %v2364_v43, %v1489_v53  ;;  %vm1507_vm13 = vweird.f32 %v2370_v1 }
 0x2f4   : > { %2375 = vrcp.f32 %v3304_v23  ;;  %v977_v46 = vsub.f32 %v3151_v16, %v909_v28  ;;  %v978_v59 = vsub.f32 %v3154_v17, %v909_v28  ;;  %v1498_v20 = vsel %vm1495_vm12, %v1497_v9, %v1493_v45  ;;  %vm1508_vm15 = vmor %vm1506_vm14, %vm1507_vm13 }
 0x2f5   : > { %v1503_v6 = vsub.f32 1.0, %v1502_v60  ;;  %v1499_v33 = vmul.f32 %v3107_v47, %v1498_v20  ;;  %v1500_v37 = vmul.f32 %v3112_v32, %v1498_v20  ;;  %v1510_v16 = vand.u32 2147483647, %v3285_v10 }
 0x2f6   : > { %v3311_v34 = vpop.eup %2371  ;;  %v1093_v38 = vmul.f32 1.442695, %v977_v46  ;;  %v1095_v56 = vmul.f32 1.442695, %v978_v59  ;;  %v1528_v53 = vand.u32 2147483648, %v3304_v23  ;;  %vm1522_vm3 = vweird.f32 %v3304_v23 }
 0x2f7   : > { %v3314_v43 = vpop.eup %2373  ;;  %v1504_v21 = vmul.f32 %v2370_v1, %v1503_v6  ;;  %1792 = vmatmul.f32.gmra.mxu2 %v1499_v33  ;;  %1905 = vmatmul.f32.gmra.mxu3 %v1500_v37  ;;  %vm1511_vm1 = vcmp.eq.f32.partialorder %v1510_v16, 8.507059e+37 }
 0x2f8   : > { %2377 = vpow2.f32 %v1093_v38  ;;  %v1772_v17 = vpop.f32.mrf.mxu2  ;;  %v1885_v47 = vpop.f32.mrf.mxu3  ;;  %v1192_v32 = vadd.f32 %v3314_v43, %v3311_v34  ;;  %v1529_v46 = vor.u32 1.1754944e-38, %v1528_v53 }
 0x2f9   : > { %2379 = vpow2.f32 %v1095_v56  ;;  %v1886_v52 = vadd.f32 %v1885_v47, %v1772_v17  ;;  %v1505_v12 = vadd.f32 %v2370_v1, %v1504_v21 }
 0x2fa   : > { %v2376_v58 = vpop.eup %2375  ;;  %1193 = vadd.xlane.f32.xlu0 %v1192_v32 }
 0x2fb   : > { %v1518_v40 = vmul.f32 %v2376_v58, %v3304_v23  ;;  %1961 = vst.msk [vmem:[%s3068_s28 + $0x50] sm:$0xff] %vm346_vm0, %v1886_v52  ;;  %v3323_v2 = vpop.xlane.xlu2 %1178  ;;  %v912_v24 = vpop.xlane.xlu0 %911  ;;  %v1509_v7 = vsel %vm1508_vm15, %v2370_v1, %v1505_v12  ;;  %vm1523_vm2 = vweird.f32 %v2376_v58 }
 0x2fc   : > { %2381 = vrcp.f32 %v3323_v2  ;;  %v979_v13 = vsub.f32 %v3179_v42, %v912_v24  ;;  %v980_v55 = vsub.f32 %v3182_v48, %v912_v24  ;;  %v1514_v10 = vsel %vm1511_vm1, %v1513_v44, %v1509_v7  ;;  %vm1524_vm4 = vmor %vm1522_vm3, %vm1523_vm2 }
 0x2fd   : > { %v1519_v4 = vsub.f32 1.0, %v1518_v40  ;;  %v1515_v5 = vmul.f32 %v3139_v54, %v1514_v10  ;;  %v1516_v15 = vmul.f32 %v3144_v50, %v1514_v10  ;;  %v1526_v42 = vand.u32 2147483647, %v3304_v23 }
 0x2fe   : > { %v3330_v36 = vpop.eup %2377  ;;  %v1097_v51 = vmul.f32 1.442695, %v979_v13  ;;  %v1099_v63 = vmul.f32 1.442695, %v980_v55  ;;  %v1544_v32 = vand.u32 2147483648, %v3323_v2  ;;  %vm1538_vm7 = vweird.f32 %v3323_v2 }
 0x2ff   : > { %v3333_v1 = vpop.eup %2379  ;;  %v1520_v9 = vmul.f32 %v2376_v58, %v1519_v4  ;;  %1795 = vmatmul.f32.gmra.mxu2 %v1515_v5  ;;  %1908 = vmatmul.f32.gmra.mxu3 %v1516_v15  ;;  %vm1527_vm5 = vcmp.eq.f32.partialorder %v1526_v42, 8.507059e+37 }
 0x300   : > { %2383 = vpow2.f32 %v1097_v51  ;;  %v1775_v48 = vpop.f32.mrf.mxu2  ;;  %v1888_v54 = vpop.f32.mrf.mxu3  ;;  %v1195_v50 = vadd.f32 %v3333_v1, %v3330_v36  ;;  %v1545_v24 = vor.u32 1.1754944e-38, %v1544_v32 }
 0x301   : > { %2385 = vpow2.f32 %v1099_v63  ;;  %v1889_v60 = vadd.f32 %v1888_v54, %v1775_v48  ;;  %v1521_v28 = vadd.f32 %v2376_v58, %v1520_v9 }
 0x302   : > { %v2382_v45 = vpop.eup %2381  ;;  %1196 = vadd.xlane.f32.xlu1 %v1195_v50 }
 0x303   : > { %v1534_v59 = vmul.f32 %v2382_v45, %v3323_v2  ;;  %1962 = vst.msk [vmem:[%s3068_s28 + $0x58] sm:$0xff] %vm346_vm0, %v1889_v60  ;;  %v3342_v20 = vpop.xlane.xlu1 %1181  ;;  %v915_v6 = vpop.xlane.xlu2 %914  ;;  %v1525_v33 = vsel %vm1524_vm4, %v2376_v58, %v1521_v28  ;;  %vm1539_vm6 = vweird.f32 %v2382_v45 }
 0x304   : > { %2387 = vrcp.f32 %v3342_v20  ;;  %v981_v37 = vsub.f32 %v3206_v29, %v915_v6  ;;  %v982_v38 = vsub.f32 %v3208_v19, %v915_v6  ;;  %v1530_v23 = vsel %vm1527_vm5, %v1529_v46, %v1525_v33  ;;  %vm1540_vm8 = vmor %vm1538_vm7, %vm1539_vm6 }
 0x305   : > { %v1535_v56 = vsub.f32 1.0, %v1534_v59  ;;  %v1531_v14 = vmul.f32 %v3167_v41, %v1530_v23  ;;  %v1532_v21 = vmul.f32 %v3172_v57, %v1530_v23  ;;  %v1542_v29 = vand.u32 2147483647, %v3323_v2 }
 0x306   : > { %v3349_v16 = vpop.eup %2383  ;;  %v1101_v17 = vmul.f32 1.442695, %v981_v37  ;;  %v1103_v47 = vmul.f32 1.442695, %v982_v38  ;;  %v1560_v48 = vand.u32 2147483648, %v3342_v20  ;;  %vm1554_vm11 = vweird.f32 %v3342_v20 }
 0x307   : > { %v3352_v52 = vpop.eup %2385  ;;  %v1536_v12 = vmul.f32 %v2382_v45, %v1535_v56  ;;  %1798 = vmatmul.f32.gmra.mxu2 %v1531_v14  ;;  %1911 = vmatmul.f32.gmra.mxu3 %v1532_v21  ;;  %vm1543_vm9 = vcmp.eq.f32.partialorder %v1542_v29, 8.507059e+37 }
 0x308   : > { %2389 = vpow2.f32 %v1101_v17  ;;  %v1778_v19 = vpop.f32.mrf.mxu2  ;;  %v1891_v41 = vpop.f32.mrf.mxu3  ;;  %v1198_v57 = vadd.f32 %v3352_v52, %v3349_v16  ;;  %v1561_v46 = vor.u32 1.1754944e-38, %v1560_v48 }
 0x309   : > { %2391 = vpow2.f32 %v1103_v47  ;;  %v1892_v58 = vadd.f32 %v1891_v41, %v1778_v19  ;;  %v1537_v44 = vadd.f32 %v2382_v45, %v1536_v12 }
 0x30a   : > { %v2388_v40 = vpop.eup %2387  ;;  %1199 = vadd.xlane.f32.xlu2 %v1198_v57 }
 0x30b   : > { %v1550_v7 = vmul.f32 %v2388_v40, %v3342_v20  ;;  %1963 = vst.msk [vmem:[%s3068_s28 + $0x60] sm:$0xff] %vm346_vm0, %v1892_v58  ;;  %v3361_v13 = vpop.xlane.xlu0 %1184  ;;  %v918_v55 = vpop.xlane.xlu1 %917  ;;  %v1541_v10 = vsel %vm1540_vm8, %v2382_v45, %v1537_v44  ;;  %vm1555_vm10 = vweird.f32 %v2388_v40 }
 0x30c   : > { %2393 = vrcp.f32 %v3361_v13  ;;  %v983_v4 = vsub.f32 %v3232_v22, %v918_v55  ;;  %v984_v5 = vsub.f32 %v3234_v26, %v918_v55  ;;  %v1546_v2 = vsel %vm1543_vm9, %v1545_v24, %v1541_v10  ;;  %vm1556_vm12 = vmor %vm1554_vm11, %vm1555_vm10 }
 0x30d   : > { %v1551_v15 = vsub.f32 1.0, %v1550_v7  ;;  %v1547_v51 = vmul.f32 %v3195_v11, %v1546_v2  ;;  %v1548_v63 = vmul.f32 %v3200_v18, %v1546_v2  ;;  %v1558_v22 = vand.u32 2147483647, %v3342_v20 }
 0x30e   : > { %v3368_v53 = vpop.eup %2389  ;;  %v1105_v9 = vmul.f32 1.442695, %v983_v4  ;;  %v1107_v42 = vmul.f32 1.442695, %v984_v5  ;;  %v1576_v12 = vand.u32 2147483648, %v3361_v13  ;;  %vm1570_vm15 = vweird.f32 %v3361_v13 }
 0x30f   : > { %v3371_v54 = vpop.eup %2391  ;;  %v1552_v50 = vmul.f32 %v2388_v40, %v1551_v15  ;;  %1801 = vmatmul.f32.gmra.mxu2 %v1547_v51  ;;  %1914 = vmatmul.f32.gmra.mxu3 %v1548_v63  ;;  %vm1559_vm13 = vcmp.eq.f32.partialorder %v1558_v22, 8.507059e+37 }
 0x310   : > { %2395 = vpow2.f32 %v1105_v9  ;;  %v1781_v26 = vpop.f32.mrf.mxu2  ;;  %v1894_v11 = vpop.f32.mrf.mxu3  ;;  %v1201_v18 = vadd.f32 %v3371_v54, %v3368_v53  ;;  %v1577_v44 = vor.u32 1.1754944e-38, %v1576_v12 }
 0x311   : > { %2397 = vpow2.f32 %v1107_v42  ;;  %v1895_v60 = vadd.f32 %v1894_v11, %v1781_v26  ;;  %v1553_v28 = vadd.f32 %v2388_v40, %v1552_v50 }
 0x312   : > { %v2394_v45 = vpop.eup %2393  ;;  %1202 = vadd.xlane.f32.xlu0 %v1201_v18 }
 0x313   : > { %v1566_v59 = vmul.f32 %v2394_v45, %v3361_v13  ;;  %1964 = vst.msk [vmem:[%s3068_s28 + $0x68] sm:$0xff] %vm346_vm0, %v1895_v60  ;;  %v3380_v6 = vpop.xlane.xlu2 %1187  ;;  %v921_v33 = vpop.xlane.xlu0 %920  ;;  %v1557_v37 = vsel %vm1556_vm12, %v2388_v40, %v1553_v28  ;;  %vm1571_vm14 = vweird.f32 %v2394_v45 }
 0x314   : > { %2399 = vrcp.f32 %v3380_v6  ;;  %v985_v38 = vsub.f32 %v3255_v49, %v921_v33  ;;  %v986_v23 = vsub.f32 %v3257_v27, %v921_v33  ;;  %v1562_v20 = vsel %vm1559_vm13, %v1561_v46, %v1557_v37  ;;  %vm1572_vm1 = vmor %vm1570_vm15, %vm1571_vm14 }
 0x315   : > { %v1567_v56 = vsub.f32 1.0, %v1566_v59  ;;  %v1563_v14 = vmul.f32 %v3221_v30, %v1562_v20  ;;  %v1564_v21 = vmul.f32 %v3226_v62, %v1562_v20  ;;  %v1574_v49 = vand.u32 2147483647, %v3361_v13 }
 0x316   : > { %v3387_v17 = vpop.eup %2395  ;;  %v1109_v47 = vmul.f32 1.442695, %v985_v38  ;;  %v1111_v32 = vmul.f32 1.442695, %v986_v23  ;;  %v1592_v9 = vand.u32 2147483648, %v3380_v6  ;;  %vm1586_vm4 = vweird.f32 %v3380_v6 }
 0x317   : > { %v3390_v29 = vpop.eup %2397  ;;  %v1568_v19 = vmul.f32 %v2394_v45, %v1567_v56  ;;  %1804 = vmatmul.f32.gmra.mxu2 %v1563_v14  ;;  %1917 = vmatmul.f32.gmra.mxu3 %v1564_v21  ;;  %vm1575_vm2 = vcmp.eq.f32.partialorder %v1574_v49, 8.507059e+37 }
 0x318   : > { %2401 = vpow2.f32 %v1109_v47  ;;  %v1784_v27 = vpop.f32.mrf.mxu2  ;;  %v1897_v30 = vpop.f32.mrf.mxu3  ;;  %v1204_v62 = vadd.f32 %v3390_v29, %v3387_v17  ;;  %v1593_v26 = vor.u32 1.1754944e-38, %v1592_v9 }
 0x319   : > { %2403 = vpow2.f32 %v1111_v32  ;;  %v1898_v41 = vadd.f32 %v1897_v30, %v1784_v27  ;;  %v1569_v57 = vadd.f32 %v2394_v45, %v1568_v19 }
 0x31a   : > { %v2400_v58 = vpop.eup %2399  ;;  %1205 = vadd.xlane.f32.xlu1 %v1204_v62 }
 0x31b   : > { %v1582_v40 = vmul.f32 %v2400_v58, %v3380_v6  ;;  %1965 = vst.msk [vmem:[%s3068_s28 + $0x70] sm:$0xff] %vm346_vm0, %v1898_v41  ;;  %v924_v24 = vpop.xlane.xlu2 %923  ;;  %v1573_v7 = vsel %vm1572_vm1, %v2394_v45, %v1569_v57  ;;  %vm1587_vm3 = vweird.f32 %v2400_v58 }
 0x31c   : > { %v987_v55 = vsub.f32 %v3271_v61, %v924_v24  ;;  %v988_v10 = vsub.f32 %v3273_v8, %v924_v24  ;;  %v1578_v4 = vsel %vm1575_vm2, %v1577_v44, %v1573_v7  ;;  %v1590_v61 = vand.u32 2147483647, %v3380_v6  ;;  %vm1588_vm5 = vmor %vm1586_vm4, %vm1587_vm3 }
 0x31d   : > { %v1583_v5 = vsub.f32 1.0, %v1582_v40  ;;  %v1579_v2 = vmul.f32 %v3244_v31, %v1578_v4  ;;  %v1580_v13 = vmul.f32 %v3249_v3, %v1578_v4 }
 0x31e   : > { %v3403_v15 = vpop.eup %2401  ;;  %v1113_v51 = vmul.f32 1.442695, %v987_v55  ;;  %v1115_v63 = vmul.f32 1.442695, %v988_v10  ;;  %vm1591_vm6 = vcmp.eq.f32.partialorder %v1590_v61, 8.507059e+37 }
 0x31f   : > { %v3406_v42 = vpop.eup %2403  ;;  %v1584_v48 = vmul.f32 %v2400_v58, %v1583_v5  ;;  %1807 = vmatmul.f32.gmra.mxu2 %v1579_v2  ;;  %1920 = vmatmul.f32.gmra.mxu3 %v1580_v13 }
 0x320   : > { %2405 = vpow2.f32 %v1113_v51  ;;  %v1787_v8 = vpop.f32.mrf.mxu2  ;;  %v1900_v31 = vpop.f32.mrf.mxu3  ;;  %v1207_v3 = vadd.f32 %v3406_v42, %v3403_v15 }
 0x321   : > { %2407 = vpow2.f32 %v1115_v63  ;;  %v1901_v50 = vadd.f32 %v1900_v31, %v1787_v8  ;;  %v1585_v22 = vadd.f32 %v2400_v58, %v1584_v48 }
 0x322   : > { %1208 = vadd.xlane.f32.xlu2 %v1207_v3 }
 0x323   : > { %1966 = vst.msk [vmem:[%s3068_s28 + $0x78] sm:$0xff] %vm346_vm0, %v1901_v50  ;;  %v1589_v11 = vsel %vm1588_vm5, %v2400_v58, %v1585_v22 }
 0x324   : > { %v1594_v18 = vsel %vm1591_vm6, %v1593_v26, %v1589_v11 }
 0x325   : > { %v1595_v60 = vmul.f32 %v3263_v25, %v1594_v18  ;;  %v1596_v28 = vmul.f32 %v3267_v0, %v1594_v18 }
 0x326   : > { %v3416_v45 = vpop.eup %2405 }
 0x327   : > { %v3418_v46 = vpop.eup %2407  ;;  %1810 = vmatmul.f32.gmra.mxu2 %v1595_v60  ;;  %1923 = vmatmul.f32.gmra.mxu3 %v1596_v28 }
 0x328   : > { %v1210_v59 = vadd.f32 %v3418_v46, %v3416_v45 }
 0x32a   : > { %1211 = vadd.xlane.f32.xlu0 %v1210_v59 }
 0x365   : > { %v1191_v6 = vpop.xlane.xlu1 %1190 }
 0x366   : > { %2409 = vrcp.f32 %v1191_v6  ;;  %v1608_v23 = vand.u32 2147483648, %v1191_v6  ;;  %v1606_v20 = vand.u32 2147483647, %v1191_v6  ;;  %vm1602_vm8 = vweird.f32 %v1191_v6 }
 0x368   : > { %v1609_v12 = vor.u32 1.1754944e-38, %v1608_v23  ;;  %vm1607_vm10 = vcmp.eq.f32.partialorder %v1606_v20, 8.507059e+37 }
 0x36c   : > { %v2410_v33 = vpop.eup %2409 }
 0x36d   : > { %v1598_v37 = vmul.f32 %v2410_v33, %v1191_v6  ;;  %v1194_v38 = vpop.xlane.xlu0 %1193  ;;  %vm1603_vm7 = vweird.f32 %v2410_v33 }
 0x36e   : > { %2411 = vrcp.f32 %v1194_v38  ;;  %vm1604_vm9 = vmor %vm1602_vm8, %vm1603_vm7  ;;  %v1624_v58 = vand.u32 2147483648, %v1194_v38  ;;  %v1622_v40 = vand.u32 2147483647, %v1194_v38  ;;  %vm1618_vm12 = vweird.f32 %v1194_v38 }
 0x36f   : > { %v1599_v25 = vsub.f32 1.0, %v1598_v37 }
 0x370   : > { %v1625_v5 = vor.u32 1.1754944e-38, %v1624_v58  ;;  %vm1623_vm14 = vcmp.eq.f32.partialorder %v1622_v40, 8.507059e+37 }
 0x371   : > { %v1600_v0 = vmul.f32 %v2410_v33, %v1599_v25 }
 0x372   : > { %v1790_v56 = vpop.f32.mrf.mxu2  ;;  %v1903_v14 = vpop.f32.mrf.mxu3 }
 0x373   : > { %v1904_v21 = vadd.f32 %v1903_v14, %v1790_v56  ;;  %v1601_v47 = vadd.f32 %v2410_v33, %v1600_v0 }
 0x374   : > { %v2412_v32 = vpop.eup %2411 }
 0x375   : > { %v1614_v19 = vmul.f32 %v2412_v32, %v1194_v38  ;;  %1967 = vst.msk [vmem:[%s3068_s28 + $0x80] sm:$0xff] %vm346_vm0, %v1904_v21  ;;  %v1197_v49 = vpop.xlane.xlu1 %1196  ;;  %v1605_v27 = vsel %vm1604_vm9, %v2410_v33, %v1601_v47  ;;  %vm1619_vm11 = vweird.f32 %v2412_v32 }
 0x376   : > { %2413 = vrcp.f32 %v1197_v49  ;;  %v1610_v30 = vsel %vm1607_vm10, %v1609_v12, %v1605_v27  ;;  %vm1620_vm13 = vmor %vm1618_vm12, %vm1619_vm11  ;;  %v1640_v48 = vand.u32 2147483648, %v1197_v49  ;;  %v1638_v8 = vand.u32 2147483647, %v1197_v49 }
 0x377   : > { %v1615_v62 = vsub.f32 1.0, %v1614_v19  ;;  %v1611_v41 = vmul.f32 %v3292_v39, %v1610_v30  ;;  %v1612_v57 = vmul.f32 %v3295_v35, %v1610_v30  ;;  %vm1634_vm1 = vweird.f32 %v1197_v49 }
 0x378   : > { %v1641_v11 = vor.u32 1.1754944e-38, %v1640_v48  ;;  %vm1639_vm3 = vcmp.eq.f32.partialorder %v1638_v8, 8.507059e+37 }
 0x379   : > { %v1616_v44 = vmul.f32 %v2412_v32, %v1615_v62  ;;  %1813 = vmatmul.f32.gmra.mxu2 %v1611_v41  ;;  %1926 = vmatmul.f32.gmra.mxu3 %v1612_v57 }
 0x37a   : > { %v1793_v24 = vpop.f32.mrf.mxu2  ;;  %v1906_v7 = vpop.f32.mrf.mxu3 }
 0x37b   : > { %v1907_v55 = vadd.f32 %v1906_v7, %v1793_v24  ;;  %v1617_v10 = vadd.f32 %v2412_v32, %v1616_v44 }
 0x37c   : > { %v2414_v4 = vpop.eup %2413 }
 0x37d   : > { %v1630_v2 = vmul.f32 %v2414_v4, %v1197_v49  ;;  %1968 = vst.msk [vmem:[%s3068_s28 + $0x88] sm:$0xff] %vm346_vm0, %v1907_v55  ;;  %v1200_v39 = vpop.xlane.xlu2 %1199  ;;  %v1621_v35 = vsel %vm1620_vm13, %v2412_v32, %v1617_v10  ;;  %vm1635_vm15 = vweird.f32 %v2414_v4 }
 0x37e   : > { %2415 = vrcp.f32 %v1200_v39  ;;  %v1626_v13 = vsel %vm1623_vm14, %v1625_v5, %v1621_v35  ;;  %vm1636_vm2 = vmor %vm1634_vm1, %vm1635_vm15  ;;  %v1656_v37 = vand.u32 2147483648, %v1200_v39  ;;  %v1654_v23 = vand.u32 2147483647, %v1200_v39 }
 0x37f   : > { %v1631_v51 = vsub.f32 1.0, %v1630_v2  ;;  %v1627_v63 = vmul.f32 %v3311_v34, %v1626_v13  ;;  %v1628_v9 = vmul.f32 %v3314_v43, %v1626_v13  ;;  %vm1650_vm5 = vweird.f32 %v1200_v39 }
 0x380   : > { %v1657_v14 = vor.u32 1.1754944e-38, %v1656_v37  ;;  %vm1655_vm7 = vcmp.eq.f32.partialorder %v1654_v23, 8.507059e+37 }
 0x381   : > { %v1632_v61 = vmul.f32 %v2414_v4, %v1631_v51  ;;  %1816 = vmatmul.f32.gmra.mxu2 %v1627_v63  ;;  %1929 = vmatmul.f32.gmra.mxu3 %v1628_v9 }
 0x382   : > { %v1796_v31 = vpop.f32.mrf.mxu2  ;;  %v1909_v3 = vpop.f32.mrf.mxu3 }
 0x383   : > { %v1910_v50 = vadd.f32 %v1909_v3, %v1796_v31  ;;  %v1633_v22 = vadd.f32 %v2414_v4, %v1632_v61 }
 0x384   : > { %v2416_v26 = vpop.eup %2415 }
 0x385   : > { %v1646_v18 = vmul.f32 %v2416_v26, %v1200_v39  ;;  %1969 = vst.msk [vmem:[%s3068_s28 + $0x90] sm:$0xff] %vm346_vm0, %v1910_v50  ;;  %v1203_v34 = vpop.xlane.xlu0 %1202  ;;  %v1637_v43 = vsel %vm1636_vm2, %v2414_v4, %v1633_v22  ;;  %vm1651_vm4 = vweird.f32 %v2416_v26 }
 0x386   : > { %2417 = vrcp.f32 %v1203_v34  ;;  %v1642_v60 = vsel %vm1639_vm3, %v1641_v11, %v1637_v43  ;;  %vm1652_vm6 = vmor %vm1650_vm5, %vm1651_vm4  ;;  %v1672_v27 = vand.u32 2147483648, %v1203_v34  ;;  %v1670_v41 = vand.u32 2147483647, %v1203_v34 }
 0x387   : > { %v1647_v28 = vsub.f32 1.0, %v1646_v18  ;;  %v1643_v59 = vmul.f32 %v3330_v36, %v1642_v60  ;;  %v1644_v6 = vmul.f32 %v3333_v1, %v1642_v60  ;;  %vm1666_vm9 = vweird.f32 %v1203_v34 }
 0x388   : > { %v1673_v40 = vor.u32 1.1754944e-38, %v1672_v27  ;;  %vm1671_vm11 = vcmp.eq.f32.partialorder %v1670_v41, 8.507059e+37 }
 0x389   : > { %v1648_v33 = vmul.f32 %v2416_v26, %v1647_v28  ;;  %1819 = vmatmul.f32.gmra.mxu2 %v1643_v59  ;;  %1932 = vmatmul.f32.gmra.mxu3 %v1644_v6 }
 0x38a   : > { %v1799_v38 = vpop.f32.mrf.mxu2  ;;  %v1912_v25 = vpop.f32.mrf.mxu3 }
 0x38b   : > { %v1913_v0 = vadd.f32 %v1912_v25, %v1799_v38  ;;  %v1649_v20 = vadd.f32 %v2416_v26, %v1648_v33 }
 0x38c   : > { %v2418_v56 = vpop.eup %2417 }
 0x38d   : > { %v1662_v21 = vmul.f32 %v2418_v56, %v1203_v34  ;;  %1970 = vst.msk [vmem:[%s3068_s28 + $0x98] sm:$0xff] %vm346_vm0, %v1913_v0  ;;  %v1206_v36 = vpop.xlane.xlu1 %1205  ;;  %v1653_v1 = vsel %vm1652_vm6, %v2416_v26, %v1649_v20  ;;  %vm1667_vm8 = vweird.f32 %v2418_v56 }
 0x38e   : > { %2419 = vrcp.f32 %v1206_v36  ;;  %v1658_v32 = vsel %vm1655_vm7, %v1657_v14, %v1653_v1  ;;  %vm1668_vm10 = vmor %vm1666_vm9, %vm1667_vm8  ;;  %v1688_v2 = vand.u32 2147483648, %v1206_v36  ;;  %v1686_v39 = vand.u32 2147483647, %v1206_v36 }
 0x38f   : > { %v1663_v47 = vsub.f32 1.0, %v1662_v21  ;;  %v1659_v12 = vmul.f32 %v3349_v16, %v1658_v32  ;;  %v1660_v19 = vmul.f32 %v3352_v52, %v1658_v32  ;;  %vm1682_vm13 = vweird.f32 %v1206_v36 }
 0x390   : > { %v1689_v48 = vor.u32 1.1754944e-38, %v1688_v2  ;;  %vm1687_vm15 = vcmp.eq.f32.partialorder %v1686_v39, 8.507059e+37 }
 0x391   : > { %v1664_v49 = vmul.f32 %v2418_v56, %v1663_v47  ;;  %1822 = vmatmul.f32.gmra.mxu2 %v1659_v12  ;;  %1935 = vmatmul.f32.gmra.mxu3 %v1660_v19 }
 0x392   : > { %v1802_v30 = vpop.f32.mrf.mxu2  ;;  %v1915_v62 = vpop.f32.mrf.mxu3 }
 0x393   : > { %v1916_v57 = vadd.f32 %v1915_v62, %v1802_v30  ;;  %v1665_v58 = vadd.f32 %v2418_v56, %v1664_v49 }
 0x394   : > { %v2420_v44 = vpop.eup %2419 }
 0x395   : > { %v1678_v24 = vmul.f32 %v2420_v44, %v1206_v36  ;;  %1971 = vst.msk [vmem:[%s3068_s28 + $0xa0] sm:$0xff] %vm346_vm0, %v1916_v57  ;;  %v1209_v16 = vpop.xlane.xlu2 %1208  ;;  %v1669_v52 = vsel %vm1668_vm10, %v2418_v56, %v1665_v58  ;;  %vm1683_vm12 = vweird.f32 %v2420_v44 }
 0x396   : > { %2421 = vrcp.f32 %v1209_v16  ;;  %v1674_v55 = vsel %vm1671_vm11, %v1673_v40, %v1669_v52  ;;  %vm1684_vm14 = vmor %vm1682_vm13, %vm1683_vm12  ;;  %v1704_v3 = vand.u32 2147483648, %v1209_v16  ;;  %v1702_v11 = vand.u32 2147483647, %v1209_v16 }
 0x397   : > { %v1679_v7 = vsub.f32 1.0, %v1678_v24  ;;  %v1675_v10 = vmul.f32 %v3368_v53, %v1674_v55  ;;  %v1676_v4 = vmul.f32 %v3371_v54, %v1674_v55  ;;  %vm1698_vm2 = vweird.f32 %v1209_v16 }
 0x398   : > { %v1705_v59 = vor.u32 1.1754944e-38, %v1704_v3  ;;  %vm1703_vm4 = vcmp.eq.f32.partialorder %v1702_v11, 8.507059e+37 }
 0x399   : > { %v1680_v5 = vmul.f32 %v2420_v44, %v1679_v7  ;;  %1825 = vmatmul.f32.gmra.mxu2 %v1675_v10  ;;  %1938 = vmatmul.f32.gmra.mxu3 %v1676_v4 }
 0x39a   : > { %v1805_v35 = vpop.f32.mrf.mxu2  ;;  %v1918_v13 = vpop.f32.mrf.mxu3 }
 0x39b   : > { %v1681_v51 = vadd.f32 %v2420_v44, %v1680_v5  ;;  %v1919_v63 = vadd.f32 %v1918_v13, %v1805_v35 }
 0x39c   : > { %v2422_v9 = vpop.eup %2421 }
 0x39d   : > { %v1694_v61 = vmul.f32 %v2422_v9, %v1209_v16  ;;  %1972 = vst.msk [vmem:[%s3068_s28 + $0xa8] sm:$0xff] %vm346_vm0, %v1919_v63  ;;  %v1212_v53 = vpop.xlane.xlu0 %1211  ;;  %v1685_v54 = vsel %vm1684_vm14, %v2420_v44, %v1681_v51  ;;  %vm1699_vm1 = vweird.f32 %v2422_v9 }
 0x39e   : > { %2423 = vrcp.f32 %v1212_v53  ;;  %v1690_v31 = vsel %vm1687_vm15, %v1689_v48, %v1685_v54  ;;  %vm1700_vm3 = vmor %vm1698_vm2, %vm1699_vm1  ;;  %v1720_v25 = vand.u32 2147483648, %v1212_v53  ;;  %v1718_v0 = vand.u32 2147483647, %v1212_v53 }
 0x39f   : > { %v1695_v8 = vsub.f32 1.0, %v1694_v61  ;;  %v1691_v50 = vmul.f32 %v3387_v17, %v1690_v31  ;;  %v1692_v22 = vmul.f32 %v3390_v29, %v1690_v31  ;;  %vm1714_vm6 = vweird.f32 %v1212_v53 }
 0x3a0   : > { %v1721_v36 = vor.u32 1.1754944e-38, %v1720_v25  ;;  %vm1719_vm8 = vcmp.eq.f32.partialorder %v1718_v0, 8.507059e+37 }
 0x3a1   : > { %v1696_v26 = vmul.f32 %v2422_v9, %v1695_v8  ;;  %1828 = vmatmul.f32.gmra.mxu2 %v1691_v50  ;;  %1941 = vmatmul.f32.gmra.mxu3 %v1692_v22 }
 0x3a2   : > { %v1808_v18 = vpop.f32.mrf.mxu2  ;;  %v1921_v34 = vpop.f32.mrf.mxu3 }
 0x3a3   : > { %v1697_v43 = vadd.f32 %v2422_v9, %v1696_v26  ;;  %v1922_v60 = vadd.f32 %v1921_v34, %v1808_v18 }
 0x3a4   : > { %v2424_v28 = vpop.eup %2423 }
 0x3a5   : > { %v1710_v6 = vmul.f32 %v2424_v28, %v1212_v53  ;;  %1973 = vst.msk [vmem:[%s3068_s28 + $0xb0] sm:$0xff] %vm346_vm0, %v1922_v60  ;;  %v1701_v17 = vsel %vm1700_vm3, %v2422_v9, %v1697_v43  ;;  %vm1715_vm5 = vweird.f32 %v2424_v28 }
 0x3a6   : > { %v1706_v29 = vsel %vm1703_vm4, %v1705_v59, %v1701_v17  ;;  %vm1716_vm7 = vmor %vm1714_vm6, %vm1715_vm5 }
 0x3a7   : > { %v1711_v33 = vsub.f32 1.0, %v1710_v6  ;;  %v1707_v37 = vmul.f32 %v3403_v15, %v1706_v29  ;;  %v1708_v38 = vmul.f32 %v3406_v42, %v1706_v29 }
 0x3a9   : > { %v1712_v23 = vmul.f32 %v2424_v28, %v1711_v33  ;;  %1831 = vmatmul.f32.gmra.mxu2 %v1707_v37  ;;  %1944 = vmatmul.f32.gmra.mxu3 %v1708_v38 }
 0x3aa   : > { %v1811_v20 = vpop.f32.mrf.mxu2  ;;  %v1924_v56 = vpop.f32.mrf.mxu3 }
 0x3ab   : > { %v1713_v14 = vadd.f32 %v2424_v28, %v1712_v23  ;;  %v1925_v21 = vadd.f32 %v1924_v56, %v1811_v20 }
 0x3ad   : > { %1974 = vst.msk [vmem:[%s3068_s28 + $0xb8] sm:$0xff] %vm346_vm0, %v1925_v21  ;;  %v1717_v15 = vsel %vm1716_vm7, %v2424_v28, %v1713_v14 }
 0x3ae   : > { %v1722_v42 = vsel %vm1719_vm8, %v1721_v36, %v1717_v15 }
 0x3af   : > { %v1723_v1 = vmul.f32 %v3416_v45, %v1722_v42  ;;  %v1724_v47 = vmul.f32 %v3418_v46, %v1722_v42 }
 0x3b1   : > { %1834 = vmatmul.f32.gmra.mxu2 %v1723_v1  ;;  %1947 = vmatmul.f32.gmra.mxu3 %v1724_v47 }
 0x3fc   : > { %v1814_v32 = vpop.f32.mrf.mxu2  ;;  %v1927_v12 = vpop.f32.mrf.mxu3 }
 0x3fd   : > { %v1928_v19 = vadd.f32 %v1927_v12, %v1814_v32 }
 0x3ff   : > { %1975 = vst.msk [vmem:[%s3068_s28 + $0xc0] sm:$0xff] %vm346_vm0, %v1928_v19 }
 0x404   : > { %v1817_v49 = vpop.f32.mrf.mxu2  ;;  %v1930_v27 = vpop.f32.mrf.mxu3 }
 0x405   : > { %v1931_v30 = vadd.f32 %v1930_v27, %v1817_v49 }
 0x407   : > { %1976 = vst.msk [vmem:[%s3068_s28 + $0xc8] sm:$0xff] %vm346_vm0, %v1931_v30 }
 0x40c   : > { %v1820_v62 = vpop.f32.mrf.mxu2  ;;  %v1933_v41 = vpop.f32.mrf.mxu3 }
 0x40d   : > { %v1934_v45 = vadd.f32 %v1933_v41, %v1820_v62 }
 0x40f   : > { %1977 = vst.msk [vmem:[%s3068_s28 + $0xd0] sm:$0xff] %vm346_vm0, %v1934_v45 }
 0x414   : > { %v1823_v46 = vpop.f32.mrf.mxu2  ;;  %v1936_v57 = vpop.f32.mrf.mxu3 }
 0x415   : > { %v1937_v58 = vadd.f32 %v1936_v57, %v1823_v46 }
 0x417   : > { %1978 = vst.msk [vmem:[%s3068_s28 + $0xd8] sm:$0xff] %vm346_vm0, %v1937_v58 }
 0x41c   : > { %v1826_v44 = vpop.f32.mrf.mxu2  ;;  %v1939_v40 = vpop.f32.mrf.mxu3 }
 0x41d   : > { %v1940_v24 = vadd.f32 %v1939_v40, %v1826_v44 }
 0x41f   : > { %1979 = vst.msk [vmem:[%s3068_s28 + $0xe0] sm:$0xff] %vm346_vm0, %v1940_v24 }
 0x424   : > { %v1829_v16 = vpop.f32.mrf.mxu2  ;;  %v1942_v52 = vpop.f32.mrf.mxu3 }
 0x425   : > { %v1943_v7 = vadd.f32 %v1942_v52, %v1829_v16 }
 0x427   : > { %1980 = vst.msk [vmem:[%s3068_s28 + $0xe8] sm:$0xff] %vm346_vm0, %v1943_v7 }
 0x42c   : > { %v1832_v55 = vpop.f32.mrf.mxu2  ;;  %v1945_v10 = vpop.f32.mrf.mxu3 }
 0x42d   : > { %v1946_v4 = vadd.f32 %v1945_v10, %v1832_v55 }
 0x42f   : > { %1981 = vst.msk [vmem:[%s3068_s28 + $0xf0] sm:$0xff] %vm346_vm0, %v1946_v4 }
 0x434   : > { %v1835_v5 = vpop.f32.mrf.mxu2  ;;  %v1948_v2 = vpop.f32.mrf.mxu3 }
 0x435   : > { %v1949_v39 = vadd.f32 %v1948_v2, %v1835_v5 }
 0x437   : > { %1982 = vst.msk [vmem:[%s3068_s28 + $0xf8] sm:$0xff] %vm346_vm0, %v1949_v39 }
 0x438 PF: > { %s13_s14 = sadd.s32 1, %s2447_s14   ;;  %s3485_s12 = smov %s2443_s13 }
 0x439   : > { %p10_p5 = scmp.ge.s32.totalorder %s13_s14, 4   ;;  %s3486_s13 = smov %s3488_s15 }
 0x43b   :  { %12 = sbr.rel (!%p10_p5) target bundleno = 2 (0x2), region = 68 }

// kernel: glfam_forward.4
= control target key start
LH: loop header
LB: loop body
LE: loop exit
PB: predicated region body
PF: predicated region fallthrough
CT: control target
= control target key end

     0   :  { %s625_s12 = smov 0   ;;  %s845_s0 = inlined_call_operand.vmem [shape: f32[512,72], index: 0, kind: input, shape index: {}]   ;;  %s846_s1 = inlined_call_operand.vmem [shape: f32[72,18], index: 1, kind: input, shape index: {}]   ;;  %s847_s2 = inlined_call_operand.vmem [shape: f32[1,18], index: 2, kind: input, shape index: {}]   ;;  %s848_s3 = inlined_call_operand.vmem [shape: f32[512,18], index: 3, kind: output, shape index: {}]  }
   0x1 LB: > { %s518_s13 = sadd.s32 4294967295, %s603_s12   ;;  %p522_p0 = scmp.ge.s32.totalorder %s603_s12, 1  ;;  %s603_s12 = sphi %s625_s12, %s13_s12  }
   0x2   : > { %p138_p1 = scmp.lt.s32.totalorder %s603_s12, 3 }
   0x4   : > { %p139_p2 = pnand %p522_p0, %p138_p1 }
   0x5   : > { %s523_s18 = sshll.u32 (!%p139_p2), %s518_s13, 5 }
   0x6   : > { %142 = sbr.rel (%p139_p2) target bundleno = 221 (0xdd), region = 32  ;;  %p163_p3 = scmp.lt.s32.totalorder (!%p139_p2), %s523_s18, 63 }
   0xb   : > { %v214_v0 = vld [vmem:[%s846_s1 + $0x40] sm:$0xff]  ;;  %v213_v1 = vld [vmem:[%s846_s1 + $0x38] sm:$0xff]  ;;  %v212_v2 = vld [vmem:[%s846_s1 + $0x30] sm:$0xff]  ;;  %s850_s18 = smov (!%p163_p3, %s523_s18), 63  ;;  %vm219_vm0 = vcmask 588800   ;;  %vm429_vm1 = vcmask 146432  }
   0xc   : > { %562 = vmatpush.msra.mxu2 %v214_v0  ;;  %563 = vmatpush.msra.mxu3 %v214_v0  ;;  %v211_v3 = vld [vmem:[%s846_s1 + $0x28] sm:$0xff]  ;;  %v210_v4 = vld [vmem:[%s846_s1 + $0x20] sm:$0xff]  ;;  %v209_v5 = vld [vmem:[%s846_s1 + $0x18] sm:$0xff]  ;;  %s524_s27 = sshll.u32 %s850_s18, 3 }
   0xd   : > { %323 = vmatpush.msra.mxu0 %v214_v0  ;;  %561 = vmatpush.msra.mxu1 %v214_v0  ;;  %v208_v6 = vld [vmem:[%s846_s1 + $0x10] sm:$0xff]  ;;  %v207_v7 = vld [vmem:[%s846_s1 + $0x8] sm:$0xff]  ;;  %s665_s7 = scalar_lea.vmem %s845_s0, %s524_s27  ;;  %v206_v8 = vld [vmem:[%s846_s1] sm:$0xff]  ;;  %s744_s15 = scalar_lea.vmem %s848_s3, %s524_s27 }
   0xe   : > { %565 = vmatpush.msra.mxu2 %v213_v1  ;;  %566 = vmatpush.msra.mxu3 %v213_v1  ;;  %v190_v9 = vld [vmem:[%s665_s7 + $0x80] sm:$0xff]  ;;  %v191_v13 = vld [vmem:[%s665_s7 + $0x88] sm:$0xff]  ;;  %v192_v17 = vld [vmem:[%s665_s7 + $0x90] sm:$0xff] }
   0xf   : > { %324 = vmatpush.msra.mxu0 %v213_v1  ;;  %564 = vmatpush.msra.mxu1 %v213_v1  ;;  %v198_v10 = vld [vmem:[%s665_s7 + $0xc0] sm:$0xff]  ;;  %v199_v14 = vld [vmem:[%s665_s7 + $0xc8] sm:$0xff]  ;;  %v200_v18 = vld [vmem:[%s665_s7 + $0xd0] sm:$0xff] }
  0x10   : > { %568 = vmatpush.msra.mxu2 %v212_v2  ;;  %569 = vmatpush.msra.mxu3 %v212_v2  ;;  %v174_v11 = vld [vmem:[%s665_s7] sm:$0xff]  ;;  %v175_v15 = vld [vmem:[%s665_s7 + $0x8] sm:$0xff]  ;;  %v176_v19 = vld [vmem:[%s665_s7 + $0x10] sm:$0xff] }
  0x11   : > { %325 = vmatpush.msra.mxu0 %v212_v2  ;;  %567 = vmatpush.msra.mxu1 %v212_v2  ;;  %v182_v12 = vld [vmem:[%s665_s7 + $0x40] sm:$0xff]  ;;  %v183_v16 = vld [vmem:[%s665_s7 + $0x48] sm:$0xff]  ;;  %v184_v20 = vld [vmem:[%s665_s7 + $0x50] sm:$0xff] }
  0x12   : > { %571 = vmatpush.msra.mxu2 %v211_v3  ;;  %572 = vmatpush.msra.mxu3 %v211_v3  ;;  %v193_v21 = vld [vmem:[%s665_s7 + $0x98] sm:$0xff]  ;;  %v194_v25 = vld [vmem:[%s665_s7 + $0xa0] sm:$0xff]  ;;  %v195_v29 = vld [vmem:[%s665_s7 + $0xa8] sm:$0xff] }
  0x13   : > { %326 = vmatpush.msra.mxu0 %v211_v3  ;;  %570 = vmatpush.msra.mxu1 %v211_v3  ;;  %v201_v22 = vld [vmem:[%s665_s7 + $0xd8] sm:$0xff]  ;;  %v202_v26 = vld [vmem:[%s665_s7 + $0xe0] sm:$0xff]  ;;  %v203_v30 = vld [vmem:[%s665_s7 + $0xe8] sm:$0xff] }
  0x14   : > { %574 = vmatpush.msra.mxu2 %v210_v4  ;;  %575 = vmatpush.msra.mxu3 %v210_v4  ;;  %v177_v23 = vld [vmem:[%s665_s7 + $0x18] sm:$0xff]  ;;  %v178_v27 = vld [vmem:[%s665_s7 + $0x20] sm:$0xff]  ;;  %v179_v31 = vld [vmem:[%s665_s7 + $0x28] sm:$0xff] }
  0x15   : > { %327 = vmatpush.msra.mxu0 %v210_v4  ;;  %573 = vmatpush.msra.mxu1 %v210_v4  ;;  %v185_v24 = vld [vmem:[%s665_s7 + $0x58] sm:$0xff]  ;;  %v186_v28 = vld [vmem:[%s665_s7 + $0x60] sm:$0xff]  ;;  %v187_v32 = vld [vmem:[%s665_s7 + $0x68] sm:$0xff] }
  0x16   : > { %577 = vmatpush.msra.mxu2 %v209_v5  ;;  %578 = vmatpush.msra.mxu3 %v209_v5  ;;  %v196_v33 = vld [vmem:[%s665_s7 + $0xb0] sm:$0xff]  ;;  %v197_v37 = vld [vmem:[%s665_s7 + $0xb8] sm:$0xff]  ;;  %v737_v41 = vld [vmem:[%s847_s2] ss:$0 sm:$0xff] }
  0x17   : > { %328 = vmatpush.msra.mxu0 %v209_v5  ;;  %576 = vmatpush.msra.mxu1 %v209_v5  ;;  %v204_v34 = vld [vmem:[%s665_s7 + $0xf0] sm:$0xff]  ;;  %v205_v38 = vld [vmem:[%s665_s7 + $0xf8] sm:$0xff] }
  0x18   : > { %580 = vmatpush.msra.mxu2 %v208_v6  ;;  %581 = vmatpush.msra.mxu3 %v208_v6  ;;  %v180_v35 = vld [vmem:[%s665_s7 + $0x30] sm:$0xff]  ;;  %v181_v39 = vld [vmem:[%s665_s7 + $0x38] sm:$0xff] }
  0x19   : > { %329 = vmatpush.msra.mxu0 %v208_v6  ;;  %579 = vmatpush.msra.mxu1 %v208_v6  ;;  %v188_v36 = vld [vmem:[%s665_s7 + $0x70] sm:$0xff]  ;;  %v189_v40 = vld [vmem:[%s665_s7 + $0x78] sm:$0xff] }
  0x1a   : > { %583 = vmatpush.msra.mxu2 %v207_v7  ;;  %584 = vmatpush.msra.mxu3 %v207_v7 }
  0x1b   : > { %330 = vmatpush.msra.mxu0 %v207_v7  ;;  %582 = vmatpush.msra.mxu1 %v207_v7 }
  0x1c   : > { %586 = vmatpush.msra.mxu2 %v206_v8  ;;  %587 = vmatpush.msra.mxu3 %v206_v8 }
  0x1d   : > { %543 = vmatmul.msk.f32.vlgmr.msra.gmra.mxu2 %vm219_vm0, %v190_v9  ;;  %551 = vmatmul.msk.f32.vlgmr.msra.gmra.mxu3 %vm219_vm0, %v198_v10 }
  0x1e   : > { %331 = vmatpush.msra.mxu0 %v206_v8  ;;  %585 = vmatpush.msra.mxu1 %v206_v8 }
  0x1f   : > { %527 = vmatmul.msk.f32.vlgmr.msra.gmra.mxu0 %vm219_vm0, %v174_v11  ;;  %535 = vmatmul.msk.f32.vlgmr.msra.gmra.mxu1 %vm219_vm0, %v182_v12 }
  0x25   : > { %544 = vmatmul.msk.f32.gmra.mxu2 %vm219_vm0, %v191_v13  ;;  %552 = vmatmul.msk.f32.gmra.mxu3 %vm219_vm0, %v199_v14 }
  0x27   : > { %528 = vmatmul.msk.f32.gmra.mxu0 %vm219_vm0, %v175_v15  ;;  %536 = vmatmul.msk.f32.gmra.mxu1 %vm219_vm0, %v183_v16 }
  0x2d   : > { %545 = vmatmul.msk.f32.gmra.mxu2 %vm219_vm0, %v192_v17  ;;  %553 = vmatmul.msk.f32.gmra.mxu3 %vm219_vm0, %v200_v18 }
  0x2f   : > { %529 = vmatmul.msk.f32.gmra.mxu0 %vm219_vm0, %v176_v19  ;;  %537 = vmatmul.msk.f32.gmra.mxu1 %vm219_vm0, %v184_v20 }
  0x35   : > { %546 = vmatmul.msk.f32.gmra.mxu2 %vm219_vm0, %v193_v21  ;;  %554 = vmatmul.msk.f32.gmra.mxu3 %vm219_vm0, %v201_v22 }
  0x37   : > { %530 = vmatmul.msk.f32.gmra.mxu0 %vm219_vm0, %v177_v23  ;;  %538 = vmatmul.msk.f32.gmra.mxu1 %vm219_vm0, %v185_v24 }
  0x3d   : > { %547 = vmatmul.msk.f32.gmra.mxu2 %vm219_vm0, %v194_v25  ;;  %555 = vmatmul.msk.f32.gmra.mxu3 %vm219_vm0, %v202_v26 }
  0x3f   : > { %531 = vmatmul.msk.f32.gmra.mxu0 %vm219_vm0, %v178_v27  ;;  %539 = vmatmul.msk.f32.gmra.mxu1 %vm219_vm0, %v186_v28 }
  0x45   : > { %548 = vmatmul.msk.f32.gmra.mxu2 %vm219_vm0, %v195_v29  ;;  %556 = vmatmul.msk.f32.gmra.mxu3 %vm219_vm0, %v203_v30 }
  0x47   : > { %532 = vmatmul.msk.f32.gmra.mxu0 %vm219_vm0, %v179_v31  ;;  %540 = vmatmul.msk.f32.gmra.mxu1 %vm219_vm0, %v187_v32 }
  0x4d   : > { %549 = vmatmul.msk.f32.gmra.mxu2 %vm219_vm0, %v196_v33  ;;  %557 = vmatmul.msk.f32.gmra.mxu3 %vm219_vm0, %v204_v34 }
  0x4f   : > { %533 = vmatmul.msk.f32.gmra.mxu0 %vm219_vm0, %v180_v35  ;;  %541 = vmatmul.msk.f32.gmra.mxu1 %vm219_vm0, %v188_v36 }
  0x55   : > { %550 = vmatmul.msk.f32.gmra.mxu2 %vm219_vm0, %v197_v37  ;;  %558 = vmatmul.msk.f32.gmra.mxu3 %vm219_vm0, %v205_v38 }
  0x57   : > { %534 = vmatmul.msk.f32.gmra.mxu0 %vm219_vm0, %v181_v39  ;;  %542 = vmatmul.msk.f32.gmra.mxu1 %vm219_vm0, %v189_v40 }
  0x9c   : > { %v333_v42 = vpop.f32.mrf.mxu0  ;;  %v357_v43 = vpop.f32.mrf.mxu1 }
  0x9d   : > { %v334_v44 = vadd.f32 %v737_v41, %v333_v42  ;;  %v358_v45 = vadd.f32 %v737_v41, %v357_v43 }
  0x9f   : > { %430 = vst.msk [vmem:[%s744_s15] sm:$0xff] %vm429_vm1, %v334_v44 }
  0xa0   : > { %438 = vst.msk [vmem:[%s744_s15 + $0x40] sm:$0xff] %vm429_vm1, %v358_v45  ;;  %v381_v46 = vpop.f32.mrf.mxu2  ;;  %v405_v47 = vpop.f32.mrf.mxu3 }
  0xa1   : > { %v382_v48 = vadd.f32 %v737_v41, %v381_v46  ;;  %v406_v49 = vadd.f32 %v737_v41, %v405_v47 }
  0xa3   : > { %446 = vst.msk [vmem:[%s744_s15 + $0x80] sm:$0xff] %vm429_vm1, %v382_v48 }
  0xa4   : > { %454 = vst.msk [vmem:[%s744_s15 + $0xc0] sm:$0xff] %vm429_vm1, %v406_v49  ;;  %v336_v50 = vpop.f32.mrf.mxu0  ;;  %v360_v51 = vpop.f32.mrf.mxu1 }
  0xa5   : > { %v337_v52 = vadd.f32 %v737_v41, %v336_v50  ;;  %v361_v53 = vadd.f32 %v737_v41, %v360_v51 }
  0xa7   : > { %431 = vst.msk [vmem:[%s744_s15 + $0x8] sm:$0xff] %vm429_vm1, %v337_v52 }
  0xa8   : > { %439 = vst.msk [vmem:[%s744_s15 + $0x48] sm:$0xff] %vm429_vm1, %v361_v53  ;;  %v384_v54 = vpop.f32.mrf.mxu2  ;;  %v408_v55 = vpop.f32.mrf.mxu3 }
  0xa9   : > { %v385_v56 = vadd.f32 %v737_v41, %v384_v54  ;;  %v409_v57 = vadd.f32 %v737_v41, %v408_v55 }
  0xab   : > { %447 = vst.msk [vmem:[%s744_s15 + $0x88] sm:$0xff] %vm429_vm1, %v385_v56 }
  0xac   : > { %455 = vst.msk [vmem:[%s744_s15 + $0xc8] sm:$0xff] %vm429_vm1, %v409_v57  ;;  %v339_v58 = vpop.f32.mrf.mxu0  ;;  %v363_v59 = vpop.f32.mrf.mxu1 }
  0xad   : > { %v340_v60 = vadd.f32 %v737_v41, %v339_v58  ;;  %v364_v61 = vadd.f32 %v737_v41, %v363_v59 }
  0xaf   : > { %432 = vst.msk [vmem:[%s744_s15 + $0x10] sm:$0xff] %vm429_vm1, %v340_v60 }
  0xb0   : > { %440 = vst.msk [vmem:[%s744_s15 + $0x50] sm:$0xff] %vm429_vm1, %v364_v61  ;;  %v387_v62 = vpop.f32.mrf.mxu2  ;;  %v411_v63 = vpop.f32.mrf.mxu3 }
  0xb1   : > { %v388_v0 = vadd.f32 %v737_v41, %v387_v62  ;;  %v412_v1 = vadd.f32 %v737_v41, %v411_v63 }
  0xb3   : > { %448 = vst.msk [vmem:[%s744_s15 + $0x90] sm:$0xff] %vm429_vm1, %v388_v0 }
  0xb4   : > { %456 = vst.msk [vmem:[%s744_s15 + $0xd0] sm:$0xff] %vm429_vm1, %v412_v1  ;;  %v342_v2 = vpop.f32.mrf.mxu0  ;;  %v366_v3 = vpop.f32.mrf.mxu1 }
  0xb5   : > { %v343_v4 = vadd.f32 %v737_v41, %v342_v2  ;;  %v367_v5 = vadd.f32 %v737_v41, %v366_v3 }
  0xb7   : > { %433 = vst.msk [vmem:[%s744_s15 + $0x18] sm:$0xff] %vm429_vm1, %v343_v4 }
  0xb8   : > { %441 = vst.msk [vmem:[%s744_s15 + $0x58] sm:$0xff] %vm429_vm1, %v367_v5  ;;  %v390_v6 = vpop.f32.mrf.mxu2  ;;  %v414_v7 = vpop.f32.mrf.mxu3 }
  0xb9   : > { %v391_v8 = vadd.f32 %v737_v41, %v390_v6  ;;  %v415_v9 = vadd.f32 %v737_v41, %v414_v7 }
  0xbb   : > { %449 = vst.msk [vmem:[%s744_s15 + $0x98] sm:$0xff] %vm429_vm1, %v391_v8 }
  0xbc   : > { %457 = vst.msk [vmem:[%s744_s15 + $0xd8] sm:$0xff] %vm429_vm1, %v415_v9  ;;  %v345_v10 = vpop.f32.mrf.mxu0  ;;  %v369_v11 = vpop.f32.mrf.mxu1 }
  0xbd   : > { %v346_v12 = vadd.f32 %v737_v41, %v345_v10  ;;  %v370_v13 = vadd.f32 %v737_v41, %v369_v11 }
  0xbf   : > { %434 = vst.msk [vmem:[%s744_s15 + $0x20] sm:$0xff] %vm429_vm1, %v346_v12 }
  0xc0   : > { %442 = vst.msk [vmem:[%s744_s15 + $0x60] sm:$0xff] %vm429_vm1, %v370_v13  ;;  %v393_v14 = vpop.f32.mrf.mxu2  ;;  %v417_v15 = vpop.f32.mrf.mxu3 }
  0xc1   : > { %v394_v16 = vadd.f32 %v737_v41, %v393_v14  ;;  %v418_v17 = vadd.f32 %v737_v41, %v417_v15 }
  0xc3   : > { %450 = vst.msk [vmem:[%s744_s15 + $0xa0] sm:$0xff] %vm429_vm1, %v394_v16 }
  0xc4   : > { %458 = vst.msk [vmem:[%s744_s15 + $0xe0] sm:$0xff] %vm429_vm1, %v418_v17  ;;  %v348_v18 = vpop.f32.mrf.mxu0  ;;  %v372_v19 = vpop.f32.mrf.mxu1 }
  0xc5   : > { %v349_v20 = vadd.f32 %v737_v41, %v348_v18  ;;  %v373_v21 = vadd.f32 %v737_v41, %v372_v19 }
  0xc7   : > { %435 = vst.msk [vmem:[%s744_s15 + $0x28] sm:$0xff] %vm429_vm1, %v349_v20 }
  0xc8   : > { %443 = vst.msk [vmem:[%s744_s15 + $0x68] sm:$0xff] %vm429_vm1, %v373_v21  ;;  %v396_v22 = vpop.f32.mrf.mxu2  ;;  %v420_v23 = vpop.f32.mrf.mxu3 }
  0xc9   : > { %v397_v24 = vadd.f32 %v737_v41, %v396_v22  ;;  %v421_v25 = vadd.f32 %v737_v41, %v420_v23 }
  0xcb   : > { %451 = vst.msk [vmem:[%s744_s15 + $0xa8] sm:$0xff] %vm429_vm1, %v397_v24 }
  0xcc   : > { %459 = vst.msk [vmem:[%s744_s15 + $0xe8] sm:$0xff] %vm429_vm1, %v421_v25  ;;  %v351_v26 = vpop.f32.mrf.mxu0  ;;  %v375_v27 = vpop.f32.mrf.mxu1 }
  0xcd   : > { %v352_v28 = vadd.f32 %v737_v41, %v351_v26  ;;  %v376_v29 = vadd.f32 %v737_v41, %v375_v27 }
  0xcf   : > { %436 = vst.msk [vmem:[%s744_s15 + $0x30] sm:$0xff] %vm429_vm1, %v352_v28 }
  0xd0   : > { %444 = vst.msk [vmem:[%s744_s15 + $0x70] sm:$0xff] %vm429_vm1, %v376_v29  ;;  %v399_v30 = vpop.f32.mrf.mxu2  ;;  %v423_v31 = vpop.f32.mrf.mxu3 }
  0xd1   : > { %v400_v32 = vadd.f32 %v737_v41, %v399_v30  ;;  %v424_v33 = vadd.f32 %v737_v41, %v423_v31 }
  0xd3   : > { %452 = vst.msk [vmem:[%s744_s15 + $0xb0] sm:$0xff] %vm429_vm1, %v400_v32 }
  0xd4   : > { %460 = vst.msk [vmem:[%s744_s15 + $0xf0] sm:$0xff] %vm429_vm1, %v424_v33  ;;  %v354_v34 = vpop.f32.mrf.mxu0  ;;  %v378_v35 = vpop.f32.mrf.mxu1 }
  0xd5   : > { %v355_v36 = vadd.f32 %v737_v41, %v354_v34  ;;  %v379_v37 = vadd.f32 %v737_v41, %v378_v35 }
  0xd7   : > { %437 = vst.msk [vmem:[%s744_s15 + $0x38] sm:$0xff] %vm429_vm1, %v355_v36 }
  0xd8   : > { %445 = vst.msk [vmem:[%s744_s15 + $0x78] sm:$0xff] %vm429_vm1, %v379_v37  ;;  %v402_v38 = vpop.f32.mrf.mxu2  ;;  %v426_v39 = vpop.f32.mrf.mxu3 }
  0xd9   : > { %v403_v40 = vadd.f32 %v737_v41, %v402_v38  ;;  %v427_v42 = vadd.f32 %v737_v41, %v426_v39 }
  0xdb   : > { %453 = vst.msk [vmem:[%s744_s15 + $0xb8] sm:$0xff] %vm429_vm1, %v403_v40 }
  0xdc   : > { %461 = vst.msk [vmem:[%s744_s15 + $0xf8] sm:$0xff] %vm429_vm1, %v427_v42 }
  0xdd PF: > { %s13_s12 = sadd.s32 1, %s603_s12  }
  0xde   : > { %p10_p4 = scmp.ge.s32.totalorder %s13_s12, 4  }
  0xe0   :  { %12 = sbr.rel (!%p10_p4) target bundleno = 1 (0x1), region = 62 }

// kernel: glfam_forward.5
= control target key start
LH: loop header
LB: loop body
LE: loop exit
PB: predicated region body
PF: predicated region fallthrough
CT: control target
= control target key end

     0   :  { %s625_s12 = smov 0   ;;  %s845_s0 = inlined_call_operand.vmem [shape: f32[512,72], index: 0, kind: input, shape index: {}]   ;;  %s846_s1 = inlined_call_operand.vmem [shape: f32[72,8], index: 1, kind: input, shape index: {}]   ;;  %s847_s2 = inlined_call_operand.vmem [shape: f32[1,8], index: 2, kind: input, shape index: {}]   ;;  %s848_s3 = inlined_call_operand.vmem [shape: f32[512,8], index: 3, kind: output, shape index: {}]  }
   0x1 LB: > { %s518_s13 = sadd.s32 4294967295, %s603_s12   ;;  %p522_p0 = scmp.ge.s32.totalorder %s603_s12, 1  ;;  %s603_s12 = sphi %s625_s12, %s13_s12  }
   0x2   : > { %p138_p1 = scmp.lt.s32.totalorder %s603_s12, 3 }
   0x4   : > { %p139_p2 = pnand %p522_p0, %p138_p1 }
   0x5   : > { %s523_s18 = sshll.u32 (!%p139_p2), %s518_s13, 5 }
   0x6   : > { %142 = sbr.rel (%p139_p2) target bundleno = 221 (0xdd), region = 32  ;;  %p163_p3 = scmp.lt.s32.totalorder (!%p139_p2), %s523_s18, 63 }
   0xb   : > { %v214_v0 = vld [vmem:[%s846_s1 + $0x40] sm:$0xff]  ;;  %v213_v1 = vld [vmem:[%s846_s1 + $0x38] sm:$0xff]  ;;  %v212_v2 = vld [vmem:[%s846_s1 + $0x30] sm:$0xff]  ;;  %s850_s18 = smov (!%p163_p3, %s523_s18), 63  ;;  %vm219_vm0 = vcmask 588800   ;;  %vm429_vm1 = vcmask 64512  }
   0xc   : > { %562 = vmatpush.msra.mxu2 %v214_v0  ;;  %563 = vmatpush.msra.mxu3 %v214_v0  ;;  %v211_v3 = vld [vmem:[%s846_s1 + $0x28] sm:$0xff]  ;;  %v210_v4 = vld [vmem:[%s846_s1 + $0x20] sm:$0xff]  ;;  %v209_v5 = vld [vmem:[%s846_s1 + $0x18] sm:$0xff]  ;;  %s524_s27 = sshll.u32 %s850_s18, 3 }
   0xd   : > { %323 = vmatpush.msra.mxu0 %v214_v0  ;;  %561 = vmatpush.msra.mxu1 %v214_v0  ;;  %v208_v6 = vld [vmem:[%s846_s1 + $0x10] sm:$0xff]  ;;  %v207_v7 = vld [vmem:[%s846_s1 + $0x8] sm:$0xff]  ;;  %s665_s7 = scalar_lea.vmem %s845_s0, %s524_s27  ;;  %v206_v8 = vld [vmem:[%s846_s1] sm:$0xff]  ;;  %s744_s15 = scalar_lea.vmem %s848_s3, %s524_s27 }
   0xe   : > { %565 = vmatpush.msra.mxu2 %v213_v1  ;;  %566 = vmatpush.msra.mxu3 %v213_v1  ;;  %v190_v9 = vld [vmem:[%s665_s7 + $0x80] sm:$0xff]  ;;  %v191_v13 = vld [vmem:[%s665_s7 + $0x88] sm:$0xff]  ;;  %v192_v17 = vld [vmem:[%s665_s7 + $0x90] sm:$0xff] }
   0xf   : > { %324 = vmatpush.msra.mxu0 %v213_v1  ;;  %564 = vmatpush.msra.mxu1 %v213_v1  ;;  %v198_v10 = vld [vmem:[%s665_s7 + $0xc0] sm:$0xff]  ;;  %v199_v14 = vld [vmem:[%s665_s7 + $0xc8] sm:$0xff]  ;;  %v200_v18 = vld [vmem:[%s665_s7 + $0xd0] sm:$0xff] }
  0x10   : > { %568 = vmatpush.msra.mxu2 %v212_v2  ;;  %569 = vmatpush.msra.mxu3 %v212_v2  ;;  %v174_v11 = vld [vmem:[%s665_s7] sm:$0xff]  ;;  %v175_v15 = vld [vmem:[%s665_s7 + $0x8] sm:$0xff]  ;;  %v176_v19 = vld [vmem:[%s665_s7 + $0x10] sm:$0xff] }
  0x11   : > { %325 = vmatpush.msra.mxu0 %v212_v2  ;;  %567 = vmatpush.msra.mxu1 %v212_v2  ;;  %v182_v12 = vld [vmem:[%s665_s7 + $0x40] sm:$0xff]  ;;  %v183_v16 = vld [vmem:[%s665_s7 + $0x48] sm:$0xff]  ;;  %v184_v20 = vld [vmem:[%s665_s7 + $0x50] sm:$0xff] }
  0x12   : > { %571 = vmatpush.msra.mxu2 %v211_v3  ;;  %572 = vmatpush.msra.mxu3 %v211_v3  ;;  %v193_v21 = vld [vmem:[%s665_s7 + $0x98] sm:$0xff]  ;;  %v194_v25 = vld [vmem:[%s665_s7 + $0xa0] sm:$0xff]  ;;  %v195_v29 = vld [vmem:[%s665_s7 + $0xa8] sm:$0xff] }
  0x13   : > { %326 = vmatpush.msra.mxu0 %v211_v3  ;;  %570 = vmatpush.msra.mxu1 %v211_v3  ;;  %v201_v22 = vld [vmem:[%s665_s7 + $0xd8] sm:$0xff]  ;;  %v202_v26 = vld [vmem:[%s665_s7 + $0xe0] sm:$0xff]  ;;  %v203_v30 = vld [vmem:[%s665_s7 + $0xe8] sm:$0xff] }
  0x14   : > { %574 = vmatpush.msra.mxu2 %v210_v4  ;;  %575 = vmatpush.msra.mxu3 %v210_v4  ;;  %v177_v23 = vld [vmem:[%s665_s7 + $0x18] sm:$0xff]  ;;  %v178_v27 = vld [vmem:[%s665_s7 + $0x20] sm:$0xff]  ;;  %v179_v31 = vld [vmem:[%s665_s7 + $0x28] sm:$0xff] }
  0x15   : > { %327 = vmatpush.msra.mxu0 %v210_v4  ;;  %573 = vmatpush.msra.mxu1 %v210_v4  ;;  %v185_v24 = vld [vmem:[%s665_s7 + $0x58] sm:$0xff]  ;;  %v186_v28 = vld [vmem:[%s665_s7 + $0x60] sm:$0xff]  ;;  %v187_v32 = vld [vmem:[%s665_s7 + $0x68] sm:$0xff] }
  0x16   : > { %577 = vmatpush.msra.mxu2 %v209_v5  ;;  %578 = vmatpush.msra.mxu3 %v209_v5  ;;  %v196_v33 = vld [vmem:[%s665_s7 + $0xb0] sm:$0xff]  ;;  %v197_v37 = vld [vmem:[%s665_s7 + $0xb8] sm:$0xff]  ;;  %v737_v41 = vld [vmem:[%s847_s2] ss:$0 sm:$0xff] }
  0x17   : > { %328 = vmatpush.msra.mxu0 %v209_v5  ;;  %576 = vmatpush.msra.mxu1 %v209_v5  ;;  %v204_v34 = vld [vmem:[%s665_s7 + $0xf0] sm:$0xff]  ;;  %v205_v38 = vld [vmem:[%s665_s7 + $0xf8] sm:$0xff] }
  0x18   : > { %580 = vmatpush.msra.mxu2 %v208_v6  ;;  %581 = vmatpush.msra.mxu3 %v208_v6  ;;  %v180_v35 = vld [vmem:[%s665_s7 + $0x30] sm:$0xff]  ;;  %v181_v39 = vld [vmem:[%s665_s7 + $0x38] sm:$0xff] }
  0x19   : > { %329 = vmatpush.msra.mxu0 %v208_v6  ;;  %579 = vmatpush.msra.mxu1 %v208_v6  ;;  %v188_v36 = vld [vmem:[%s665_s7 + $0x70] sm:$0xff]  ;;  %v189_v40 = vld [vmem:[%s665_s7 + $0x78] sm:$0xff] }
  0x1a   : > { %583 = vmatpush.msra.mxu2 %v207_v7  ;;  %584 = vmatpush.msra.mxu3 %v207_v7 }
  0x1b   : > { %330 = vmatpush.msra.mxu0 %v207_v7  ;;  %582 = vmatpush.msra.mxu1 %v207_v7 }
  0x1c   : > { %586 = vmatpush.msra.mxu2 %v206_v8  ;;  %587 = vmatpush.msra.mxu3 %v206_v8 }
  0x1d   : > { %543 = vmatmul.msk.f32.vlgmr.msra.gmra.mxu2 %vm219_vm0, %v190_v9  ;;  %551 = vmatmul.msk.f32.vlgmr.msra.gmra.mxu3 %vm219_vm0, %v198_v10 }
  0x1e   : > { %331 = vmatpush.msra.mxu0 %v206_v8  ;;  %585 = vmatpush.msra.mxu1 %v206_v8 }
  0x1f   : > { %527 = vmatmul.msk.f32.vlgmr.msra.gmra.mxu0 %vm219_vm0, %v174_v11  ;;  %535 = vmatmul.msk.f32.vlgmr.msra.gmra.mxu1 %vm219_vm0, %v182_v12 }
  0x25   : > { %544 = vmatmul.msk.f32.gmra.mxu2 %vm219_vm0, %v191_v13  ;;  %552 = vmatmul.msk.f32.gmra.mxu3 %vm219_vm0, %v199_v14 }
  0x27   : > { %528 = vmatmul.msk.f32.gmra.mxu0 %vm219_vm0, %v175_v15  ;;  %536 = vmatmul.msk.f32.gmra.mxu1 %vm219_vm0, %v183_v16 }
  0x2d   : > { %545 = vmatmul.msk.f32.gmra.mxu2 %vm219_vm0, %v192_v17  ;;  %553 = vmatmul.msk.f32.gmra.mxu3 %vm219_vm0, %v200_v18 }
  0x2f   : > { %529 = vmatmul.msk.f32.gmra.mxu0 %vm219_vm0, %v176_v19  ;;  %537 = vmatmul.msk.f32.gmra.mxu1 %vm219_vm0, %v184_v20 }
  0x35   : > { %546 = vmatmul.msk.f32.gmra.mxu2 %vm219_vm0, %v193_v21  ;;  %554 = vmatmul.msk.f32.gmra.mxu3 %vm219_vm0, %v201_v22 }
  0x37   : > { %530 = vmatmul.msk.f32.gmra.mxu0 %vm219_vm0, %v177_v23  ;;  %538 = vmatmul.msk.f32.gmra.mxu1 %vm219_vm0, %v185_v24 }
  0x3d   : > { %547 = vmatmul.msk.f32.gmra.mxu2 %vm219_vm0, %v194_v25  ;;  %555 = vmatmul.msk.f32.gmra.mxu3 %vm219_vm0, %v202_v26 }
  0x3f   : > { %531 = vmatmul.msk.f32.gmra.mxu0 %vm219_vm0, %v178_v27  ;;  %539 = vmatmul.msk.f32.gmra.mxu1 %vm219_vm0, %v186_v28 }
  0x45   : > { %548 = vmatmul.msk.f32.gmra.mxu2 %vm219_vm0, %v195_v29  ;;  %556 = vmatmul.msk.f32.gmra.mxu3 %vm219_vm0, %v203_v30 }
  0x47   : > { %532 = vmatmul.msk.f32.gmra.mxu0 %vm219_vm0, %v179_v31  ;;  %540 = vmatmul.msk.f32.gmra.mxu1 %vm219_vm0, %v187_v32 }
  0x4d   : > { %549 = vmatmul.msk.f32.gmra.mxu2 %vm219_vm0, %v196_v33  ;;  %557 = vmatmul.msk.f32.gmra.mxu3 %vm219_vm0, %v204_v34 }
  0x4f   : > { %533 = vmatmul.msk.f32.gmra.mxu0 %vm219_vm0, %v180_v35  ;;  %541 = vmatmul.msk.f32.gmra.mxu1 %vm219_vm0, %v188_v36 }
  0x55   : > { %550 = vmatmul.msk.f32.gmra.mxu2 %vm219_vm0, %v197_v37  ;;  %558 = vmatmul.msk.f32.gmra.mxu3 %vm219_vm0, %v205_v38 }
  0x57   : > { %534 = vmatmul.msk.f32.gmra.mxu0 %vm219_vm0, %v181_v39  ;;  %542 = vmatmul.msk.f32.gmra.mxu1 %vm219_vm0, %v189_v40 }
  0x9c   : > { %v333_v42 = vpop.f32.mrf.mxu0  ;;  %v357_v43 = vpop.f32.mrf.mxu1 }
  0x9d   : > { %v334_v44 = vadd.f32 %v737_v41, %v333_v42  ;;  %v358_v45 = vadd.f32 %v737_v41, %v357_v43 }
  0x9f   : > { %430 = vst.msk [vmem:[%s744_s15] sm:$0xff] %vm429_vm1, %v334_v44 }
  0xa0   : > { %438 = vst.msk [vmem:[%s744_s15 + $0x40] sm:$0xff] %vm429_vm1, %v358_v45  ;;  %v381_v46 = vpop.f32.mrf.mxu2  ;;  %v405_v47 = vpop.f32.mrf.mxu3 }
  0xa1   : > { %v382_v48 = vadd.f32 %v737_v41, %v381_v46  ;;  %v406_v49 = vadd.f32 %v737_v41, %v405_v47 }
  0xa3   : > { %446 = vst.msk [vmem:[%s744_s15 + $0x80] sm:$0xff] %vm429_vm1, %v382_v48 }
  0xa4   : > { %454 = vst.msk [vmem:[%s744_s15 + $0xc0] sm:$0xff] %vm429_vm1, %v406_v49  ;;  %v336_v50 = vpop.f32.mrf.mxu0  ;;  %v360_v51 = vpop.f32.mrf.mxu1 }
  0xa5   : > { %v337_v52 = vadd.f32 %v737_v41, %v336_v50  ;;  %v361_v53 = vadd.f32 %v737_v41, %v360_v51 }
  0xa7   : > { %431 = vst.msk [vmem:[%s744_s15 + $0x8] sm:$0xff] %vm429_vm1, %v337_v52 }
  0xa8   : > { %439 = vst.msk [vmem:[%s744_s15 + $0x48] sm:$0xff] %vm429_vm1, %v361_v53  ;;  %v384_v54 = vpop.f32.mrf.mxu2  ;;  %v408_v55 = vpop.f32.mrf.mxu3 }
  0xa9   : > { %v385_v56 = vadd.f32 %v737_v41, %v384_v54  ;;  %v409_v57 = vadd.f32 %v737_v41, %v408_v55 }
  0xab   : > { %447 = vst.msk [vmem:[%s744_s15 + $0x88] sm:$0xff] %vm429_vm1, %v385_v56 }
  0xac   : > { %455 = vst.msk [vmem:[%s744_s15 + $0xc8] sm:$0xff] %vm429_vm1, %v409_v57  ;;  %v339_v58 = vpop.f32.mrf.mxu0  ;;  %v363_v59 = vpop.f32.mrf.mxu1 }
  0xad   : > { %v340_v60 = vadd.f32 %v737_v41, %v339_v58  ;;  %v364_v61 = vadd.f32 %v737_v41, %v363_v59 }
  0xaf   : > { %432 = vst.msk [vmem:[%s744_s15 + $0x10] sm:$0xff] %vm429_vm1, %v340_v60 }
  0xb0   : > { %440 = vst.msk [vmem:[%s744_s15 + $0x50] sm:$0xff] %vm429_vm1, %v364_v61  ;;  %v387_v62 = vpop.f32.mrf.mxu2  ;;  %v411_v63 = vpop.f32.mrf.mxu3 }
  0xb1   : > { %v388_v0 = vadd.f32 %v737_v41, %v387_v62  ;;  %v412_v1 = vadd.f32 %v737_v41, %v411_v63 }
  0xb3   : > { %448 = vst.msk [vmem:[%s744_s15 + $0x90] sm:$0xff] %vm429_vm1, %v388_v0 }
  0xb4   : > { %456 = vst.msk [vmem:[%s744_s15 + $0xd0] sm:$0xff] %vm429_vm1, %v412_v1  ;;  %v342_v2 = vpop.f32.mrf.mxu0  ;;  %v366_v3 = vpop.f32.mrf.mxu1 }
  0xb5   : > { %v343_v4 = vadd.f32 %v737_v41, %v342_v2  ;;  %v367_v5 = vadd.f32 %v737_v41, %v366_v3 }
  0xb7   : > { %433 = vst.msk [vmem:[%s744_s15 + $0x18] sm:$0xff] %vm429_vm1, %v343_v4 }
  0xb8   : > { %441 = vst.msk [vmem:[%s744_s15 + $0x58] sm:$0xff] %vm429_vm1, %v367_v5  ;;  %v390_v6 = vpop.f32.mrf.mxu2  ;;  %v414_v7 = vpop.f32.mrf.mxu3 }
  0xb9   : > { %v391_v8 = vadd.f32 %v737_v41, %v390_v6  ;;  %v415_v9 = vadd.f32 %v737_v41, %v414_v7 }
  0xbb   : > { %449 = vst.msk [vmem:[%s744_s15 + $0x98] sm:$0xff] %vm429_vm1, %v391_v8 }
  0xbc   : > { %457 = vst.msk [vmem:[%s744_s15 + $0xd8] sm:$0xff] %vm429_vm1, %v415_v9  ;;  %v345_v10 = vpop.f32.mrf.mxu0  ;;  %v369_v11 = vpop.f32.mrf.mxu1 }
  0xbd   : > { %v346_v12 = vadd.f32 %v737_v41, %v345_v10  ;;  %v370_v13 = vadd.f32 %v737_v41, %v369_v11 }
  0xbf   : > { %434 = vst.msk [vmem:[%s744_s15 + $0x20] sm:$0xff] %vm429_vm1, %v346_v12 }
  0xc0   : > { %442 = vst.msk [vmem:[%s744_s15 + $0x60] sm:$0xff] %vm429_vm1, %v370_v13  ;;  %v393_v14 = vpop.f32.mrf.mxu2  ;;  %v417_v15 = vpop.f32.mrf.mxu3 }
  0xc1   : > { %v394_v16 = vadd.f32 %v737_v41, %v393_v14  ;;  %v418_v17 = vadd.f32 %v737_v41, %v417_v15 }
  0xc3   : > { %450 = vst.msk [vmem:[%s744_s15 + $0xa0] sm:$0xff] %vm429_vm1, %v394_v16 }
  0xc4   : > { %458 = vst.msk [vmem:[%s744_s15 + $0xe0] sm:$0xff] %vm429_vm1, %v418_v17  ;;  %v348_v18 = vpop.f32.mrf.mxu0  ;;  %v372_v19 = vpop.f32.mrf.mxu1 }
  0xc5   : > { %v349_v20 = vadd.f32 %v737_v41, %v348_v18  ;;  %v373_v21 = vadd.f32 %v737_v41, %v372_v19 }
  0xc7   : > { %435 = vst.msk [vmem:[%s744_s15 + $0x28] sm:$0xff] %vm429_vm1, %v349_v20 }
  0xc8   : > { %443 = vst.msk [vmem:[%s744_s15 + $0x68] sm:$0xff] %vm429_vm1, %v373_v21  ;;  %v396_v22 = vpop.f32.mrf.mxu2  ;;  %v420_v23 = vpop.f32.mrf.mxu3 }
  0xc9   : > { %v397_v24 = vadd.f32 %v737_v41, %v396_v22  ;;  %v421_v25 = vadd.f32 %v737_v41, %v420_v23 }
  0xcb   : > { %451 = vst.msk [vmem:[%s744_s15 + $0xa8] sm:$0xff] %vm429_vm1, %v397_v24 }
  0xcc   : > { %459 = vst.msk [vmem:[%s744_s15 + $0xe8] sm:$0xff] %vm429_vm1, %v421_v25  ;;  %v351_v26 = vpop.f32.mrf.mxu0  ;;  %v375_v27 = vpop.f32.mrf.mxu1 }
  0xcd   : > { %v352_v28 = vadd.f32 %v737_v41, %v351_v26  ;;  %v376_v29 = vadd.f32 %v737_v41, %v375_v27 }
  0xcf   : > { %436 = vst.msk [vmem:[%s744_s15 + $0x30] sm:$0xff] %vm429_vm1, %v352_v28 }
  0xd0   : > { %444 = vst.msk [vmem:[%s744_s15 + $0x70] sm:$0xff] %vm429_vm1, %v376_v29  ;;  %v399_v30 = vpop.f32.mrf.mxu2  ;;  %v423_v31 = vpop.f32.mrf.mxu3 }
  0xd1   : > { %v400_v32 = vadd.f32 %v737_v41, %v399_v30  ;;  %v424_v33 = vadd.f32 %v737_v41, %v423_v31 }
  0xd3   : > { %452 = vst.msk [vmem:[%s744_s15 + $0xb0] sm:$0xff] %vm429_vm1, %v400_v32 }
  0xd4   : > { %460 = vst.msk [vmem:[%s744_s15 + $0xf0] sm:$0xff] %vm429_vm1, %v424_v33  ;;  %v354_v34 = vpop.f32.mrf.mxu0  ;;  %v378_v35 = vpop.f32.mrf.mxu1 }
  0xd5   : > { %v355_v36 = vadd.f32 %v737_v41, %v354_v34  ;;  %v379_v37 = vadd.f32 %v737_v41, %v378_v35 }
  0xd7   : > { %437 = vst.msk [vmem:[%s744_s15 + $0x38] sm:$0xff] %vm429_vm1, %v355_v36 }
  0xd8   : > { %445 = vst.msk [vmem:[%s744_s15 + $0x78] sm:$0xff] %vm429_vm1, %v379_v37  ;;  %v402_v38 = vpop.f32.mrf.mxu2  ;;  %v426_v39 = vpop.f32.mrf.mxu3 }
  0xd9   : > { %v403_v40 = vadd.f32 %v737_v41, %v402_v38  ;;  %v427_v42 = vadd.f32 %v737_v41, %v426_v39 }
  0xdb   : > { %453 = vst.msk [vmem:[%s744_s15 + $0xb8] sm:$0xff] %vm429_vm1, %v403_v40 }
  0xdc   : > { %461 = vst.msk [vmem:[%s744_s15 + $0xf8] sm:$0xff] %vm429_vm1, %v427_v42 }
  0xdd PF: > { %s13_s12 = sadd.s32 1, %s603_s12  }
  0xde   : > { %p10_p4 = scmp.ge.s32.totalorder %s13_s12, 4  }
  0xe0   :  { %12 = sbr.rel (!%p10_p4) target bundleno = 1 (0x1), region = 62 }

</bundles_post_ra>
